<compile_context>
chip_gen: v5e
topology: v5e:2x2
jax: 0.10.0
libtpu: 0.0.40
codegen_flags: <defaults>
</compile_context>

<pallas_src>
import jax
import jax.numpy as jnp
from jax.experimental import pallas as pl
from jax.experimental.pallas import tpu as pltpu

PROTEIN = 1512

# ---- model dims (nn.Linear(16*2*200, 2) forces GCN_OUT + GAT_OUT == 400) ----
N_DRUG = 4
N_PROT = 6
N_NODES = N_DRUG + N_PROT
GCN_PROTEIN_DIM = 64
GCN_NODE_DIM = 1024          # fixed: nn.Linear(GCN_protein_dim, 1024)
GCN_OUT = 200
GAT_NODE_DIM = 32
GAT_OUT = 200
FEAT = GCN_OUT + GAT_OUT     # 400
C_OUT = 16
KH, KW = 3, 5
PAD = 2
H_IN, W_IN = 2, FEAT
H_PAD, W_PAD = H_IN + 2 * PAD, W_IN + 2 * PAD          # 6, 404
H_CONV, W_CONV = H_PAD - KH + 1, W_PAD - KW + 1        # 4, 400
H_POOL, W_POOL = H_CONV // 2, W_CONV // 2              # 2, 200
OUT_DIM = 2
B = 3

VMEM = pltpu.MemorySpace.VMEM
SMEM = pltpu.MemorySpace.SMEM


# ------------------------------ fused kernel --------------------------------

def _log_softmax_over_nodes(x):
    # F.log_softmax(x, dim=0): normalize across the node (sublane) axis.
    m = jnp.max(x, axis=0, keepdims=True)
    z = x - m
    return z - jnp.log(jnp.sum(jnp.exp(z), axis=0, keepdims=True))


def _fused_forward_kernel(
        rp_ref,                                    # SMEM (2, B) int32 [r_no; p_no]
        drug_ref, prot_ref, w_pre_ref, b_pre_ref,  # GCN inputs / preprocess
        w_gcn_ref, b_gcn_ref, adj_ref,             # GCNConv (dense normalized adj)
        gat_x_ref, w_gat_ref, att_ref, b_gat_ref, mask_ref,   # GATConv
        wconv_ref, bconv_ref, hp_ref, wp_ref,      # CNN (refolded conv + pools)
        ow_ref, outb_ref,                          # final Linear(6400, 2)
        o_ref,                                     # (B, 2) output
        feat_ref):                                 # VMEM scratch (N_NODES, FEAT)
    f32 = jnp.float32

    # ---- GCN branch: Linear(64,1024) -> GCNConv -> log_softmax(dim=0) -------
    prot = jnp.dot(prot_ref[...], w_pre_ref[...], preferred_element_type=f32)
    prot = prot + b_pre_ref[...]
    gcn_x = jnp.concatenate([drug_ref[...], prot], axis=0)            # (N, 1024)
    h = jnp.dot(gcn_x, w_gcn_ref[...], preferred_element_type=f32)    # (N, 200)
    gcn = jnp.dot(adj_ref[...], h, preferred_element_type=f32) + b_gcn_ref[...]
    # TODO(synk): F.dropout(p=0.3) treated as eval-mode identity (deterministic).
    gcn = _log_softmax_over_nodes(gcn)

    # ---- GAT branch: GATConv -> log_softmax(dim=0) ---------------------------
    hg = jnp.dot(gat_x_ref[...], w_gat_ref[...], preferred_element_type=f32)
    s = jnp.dot(hg, att_ref[...], preferred_element_type=f32)          # (N, 2)
    # edge j -> i : e[i, j] = att_dst . h_i + att_src . h_j
    e = s[:, 1:2] + jnp.transpose(s[:, 0:1])
    e = jnp.where(e > 0.0, e, 0.2 * e)                 # LeakyReLU(0.2)
    e = jnp.where(mask_ref[...] > 0.0, e, -1e30)       # mask non-edges
    e = e - jnp.max(e, axis=1, keepdims=True)
    pz = jnp.exp(e)
    att_p = pz * pl.reciprocal(jnp.sum(pz, axis=1, keepdims=True), approx=True)
    gat = jnp.dot(att_p, hg, preferred_element_type=f32) + b_gat_ref[...]
    gat = _log_softmax_over_nodes(gat)

    # Features stay resident in VMEM; the per-pair gather reads them back below.
    feat_ref[...] = jnp.concatenate([gcn, gat], axis=1)                # (N, 400)

    # ---- per-pair CNN_layer1 + tanh + Linear(6400, 2) ------------------------
    bsz = rp_ref.shape[1]
    zpad = jnp.zeros((2, PAD), f32)
    rows_out = []
    for b in range(bsz):                       # B=3: fully unrolled, all in VMEM
        r_no = rp_ref[0, b]
        p_no = rp_ref[1, b]
        fr = feat_ref[pl.ds(r_no, 1), :]                               # (1, 400)
        fp = feat_ref[pl.ds(p_no, 1), :]
        frp = jnp.concatenate([fr, fp], axis=0)                        # (2, 400)
        padded = jnp.concatenate([zpad, frp, zpad], axis=1)            # (2, 404)
        # Only padded rows 2/3 are non-zero, so the im2col patch matrix is just
        # the 5 lane shifts of those two rows -> 10 rows, ONE matmul.
        xs = [padded[s_:s_ + 1, kj:kj + W_CONV]
              for kj in range(KW) for s_ in range(2)]
        xmat = jnp.concatenate(xs, axis=0)                             # (10, 400)
        conv = jnp.dot(wconv_ref[...], xmat, preferred_element_type=f32)
        conv = conv + bconv_ref[...]                                   # (64, 400)
        conv = jnp.where(conv > 0.0, conv, 0.01 * conv)                # LeakyReLU
        hpool = jnp.dot(hp_ref[...], conv, preferred_element_type=f32)    # (32, 400)
        pooled = jnp.dot(hpool, wp_ref[...], preferred_element_type=f32)  # (32, 200)
        t = jnp.tanh(pooled)
        # Linear(6400, 2) without flattening: multiply against the two
        # NCHW-flattened weight planes and reduce.
        s0 = jnp.sum(t * ow_ref[0, :, :], axis=1, keepdims=True)       # (32, 1)
        s1 = jnp.sum(t * ow_ref[1, :, :], axis=1, keepdims=True)
        rows_out.append(jnp.sum(jnp.concatenate([s0, s1], axis=1),
                                axis=0, keepdims=True))                # (1, 2)
    o_ref[...] = jnp.concatenate(rows_out, axis=0) + outb_ref[...]


# --------------------------------- glue JAX ---------------------------------

def build_gcn_adj(edge, weight, n):
    # edge rows are (source, target); GCNConv: add self-loops (weight 1) and
    # symmetric D^-1/2 (A+I) D^-1/2 normalization, aggregate at target.
    src, tgt = edge[:, 0], edge[:, 1]
    a = jnp.zeros((n, n), jnp.float32).at[tgt, src].add(weight)
    a = a + jnp.eye(n, dtype=jnp.float32)
    dinv = 1.0 / jnp.sqrt(jnp.sum(a, axis=1))
    return a * dinv[:, None] * dinv[None, :]


def build_gat_mask(edge, n):
    src, tgt = edge[:, 0], edge[:, 1]
    m = jnp.zeros((n, n), jnp.float32).at[tgt, src].set(1.0)
    return jnp.maximum(m, jnp.eye(n, dtype=jnp.float32))   # self-loops


def build_conv_lhs(conv_w):
    # Pack Conv2d(1->16,(3,5),pad=2) weights into a (C_OUT*H_CONV, KW*2) matrix
    # acting on the 10 lane-shifted copies of the two non-zero padded rows.
    # Row c*H_CONV + i = conv output row i of channel c; column kj*2 + s = the
    # kj-shift of feature row s (padded row PAD+s).
    w4 = jnp.zeros((C_OUT, H_CONV, KW, 2), jnp.float32)
    for i in range(H_CONV):
        for s in range(2):
            ki = PAD + s - i            # kernel row that hits padded row PAD+s
            if 0 <= ki < KH:
                w4 = w4.at[:, i, :, s].set(conv_w[:, ki, :])
    return w4.reshape(C_OUT * H_CONV, KW * 2)


def build_hpool():
    # (32, 64): averages conv rows (c*4+2k, c*4+2k+1) into pooled row c*2+k.
    rows = jnp.arange(C_OUT * H_POOL)
    c, k = rows // H_POOL, rows % H_POOL
    hp = jnp.zeros((C_OUT * H_POOL, C_OUT * H_CONV), jnp.float32)
    hp = hp.at[rows, c * H_CONV + 2 * k].set(0.5)
    hp = hp.at[rows, c * H_CONV + 2 * k + 1].set(0.5)
    return hp


def build_wpool():
    # (400, 200): averages adjacent lane pairs (W direction of AvgPool2d(2)).
    return (jnp.zeros((W_CONV, W_POOL), jnp.float32)
            .at[jnp.arange(W_CONV), jnp.arange(W_CONV) // 2].set(0.5))


def one_class_forward(params, gcn_input_drug, gcn_input_protein, gcn_edge,
                      gcn_weight, gat_input, gat_edge, idx):
    n = N_NODES
    a_norm = build_gcn_adj(gcn_edge, gcn_weight, n)
    mask = build_gat_mask(gat_edge, n)
    rp = jnp.stack([idx // PROTEIN, idx % PROTEIN], axis=0).astype(jnp.int32)

    wconv = build_conv_lhs(params["conv_w"])                        # (64, 10)
    bconv = jnp.repeat(params["conv_b"], H_CONV).reshape(C_OUT * H_CONV, 1)
    hpool = build_hpool()                                           # (32, 64)
    wpool = build_wpool()                                           # (400, 200)
    # NCHW flatten order of (16, 2, 200) == row (c*2+h), lane w of a (32, 200).
    ow = params["out_w"].T.reshape(OUT_DIM, C_OUT * H_POOL, W_POOL)
    outb = params["out_b"].reshape(1, OUT_DIM)

    bsz = rp.shape[1]
    return pl.pallas_call(
        _fused_forward_kernel,
        out_shape=jax.ShapeDtypeStruct((bsz, OUT_DIM), jnp.float32),
        in_specs=([pl.BlockSpec(memory_space=SMEM)]
                  + [pl.BlockSpec(memory_space=VMEM)] * 18),
        out_specs=pl.BlockSpec(memory_space=VMEM),
        scratch_shapes=[pltpu.VMEM((N_NODES, FEAT), jnp.float32)],
    )(rp,
      gcn_input_drug, gcn_input_protein,
      params["w_pre"], params["b_pre"].reshape(1, -1),
      params["w_gcn"], params["b_gcn"].reshape(1, -1),
      a_norm,
      gat_input, params["w_gat"], params["att"], params["b_gat"].reshape(1, -1),
      mask,
      wconv, bconv, hpool, wpool, ow, outb)


# ----------------------------------- main -----------------------------------

if __name__ == "__main__":
    key = jax.random.PRNGKey(0)
    ks = jax.random.split(key, 18)

    params = {
        "w_pre": 0.05 * jax.random.normal(ks[0], (GCN_PROTEIN_DIM, 1024), jnp.float32),
        "b_pre": 0.05 * jax.random.normal(ks[1], (1024,), jnp.float32),
        "w_gcn": 0.05 * jax.random.normal(ks[2], (GCN_NODE_DIM, GCN_OUT), jnp.float32),
        "b_gcn": 0.05 * jax.random.normal(ks[3], (GCN_OUT,), jnp.float32),
        "w_gat": 0.10 * jax.random.normal(ks[4], (GAT_NODE_DIM, GAT_OUT), jnp.float32),
        # att columns: [att_src, att_dst]
        "att":   0.10 * jax.random.normal(ks[5], (GAT_OUT, 2), jnp.float32),
        "b_gat": 0.05 * jax.random.normal(ks[6], (GAT_OUT,), jnp.float32),
        "conv_w": 0.10 * jax.random.normal(ks[7], (C_OUT, KH, KW), jnp.float32),
        "conv_b": 0.10 * jax.random.normal(ks[8], (C_OUT,), jnp.float32),
        "out_w": 0.02 * jax.random.normal(ks[9], (C_OUT * H_POOL * W_POOL, OUT_DIM),
                                          jnp.float32),
        "out_b": 0.02 * jax.random.normal(ks[10], (OUT_DIM,), jnp.float32),
    }

    gcn_input_drug = jax.random.normal(ks[11], (N_DRUG, GCN_NODE_DIM), jnp.float32)
    gcn_input_protein = jax.random.normal(ks[12], (N_PROT, GCN_PROTEIN_DIM), jnp.float32)
    gcn_edge = jax.random.randint(ks[13], (12, 2), 0, N_NODES, dtype=jnp.int32)
    gcn_weight = jax.random.uniform(ks[14], (12,), jnp.float32, 0.5, 1.5)
    gat_input = jax.random.normal(ks[15], (N_NODES, GAT_NODE_DIM), jnp.float32)
    gat_edge = jax.random.randint(ks[16], (14, 2), 0, N_NODES, dtype=jnp.int32)
    rpairs = jax.random.randint(ks[17], (B, 2), 0, N_NODES, dtype=jnp.int32)
    idx = rpairs[:, 0] * PROTEIN + rpairs[:, 1]

    fwd = jax.jit(one_class_forward)
    out = fwd(params, gcn_input_drug, gcn_input_protein, gcn_edge,
              gcn_weight, gat_input, gat_edge, idx)
    out = jax.block_until_ready(out)
    assert out.shape == (B, OUT_DIM) and out.dtype == jnp.float32
    print("KERNEL_OK")
</pallas_src>

<mosaic_0001>
module attributes {stable_mosaic.version = 11 : i64} {
  func.func @_fused_forward_kernel(%arg0: memref<2x3xi32, #tpu.memory_space<smem>>, %arg1: memref<4x1024xf32, #tpu.memory_space<vmem>>, %arg2: memref<6x64xf32, #tpu.memory_space<vmem>>, %arg3: memref<64x1024xf32, #tpu.memory_space<vmem>>, %arg4: memref<1x1024xf32, #tpu.memory_space<vmem>>, %arg5: memref<1024x200xf32, #tpu.memory_space<vmem>>, %arg6: memref<1x200xf32, #tpu.memory_space<vmem>>, %arg7: memref<10x10xf32, #tpu.memory_space<vmem>>, %arg8: memref<10x32xf32, #tpu.memory_space<vmem>>, %arg9: memref<32x200xf32, #tpu.memory_space<vmem>>, %arg10: memref<200x2xf32, #tpu.memory_space<vmem>>, %arg11: memref<1x200xf32, #tpu.memory_space<vmem>>, %arg12: memref<10x10xf32, #tpu.memory_space<vmem>>, %arg13: memref<64x10xf32, #tpu.memory_space<vmem>>, %arg14: memref<64x1xf32, #tpu.memory_space<vmem>>, %arg15: memref<32x64xf32, #tpu.memory_space<vmem>>, %arg16: memref<400x200xf32, #tpu.memory_space<vmem>>, %arg17: memref<2x32x200xf32, #tpu.memory_space<vmem>>, %arg18: memref<1x2xf32, #tpu.memory_space<vmem>>, %arg19: memref<3x2xf32, #tpu.memory_space<vmem>>, %arg20: memref<10x400xf32, #tpu.memory_space<vmem>>) attributes {dimension_semantics = [], scalar_prefetch = 0 : i64, scratch_operands = 1 : i64, tpu.core_type = #tpu.core_type<tc>} {
    %c0 = arith.constant 0 : index
    %c0_0 = arith.constant 0 : index
    %0 = vector.load %arg2[%c0, %c0_0] : memref<6x64xf32, #tpu.memory_space<vmem>>, vector<6x64xf32>
    %c0_1 = arith.constant 0 : index
    %c0_2 = arith.constant 0 : index
    %1 = vector.load %arg3[%c0_1, %c0_2] : memref<64x1024xf32, #tpu.memory_space<vmem>>, vector<64x1024xf32>
    %cst = arith.constant dense<0.000000e+00> : vector<6x1024xf32>
    %2 = tpu.matmul %0, %1, %cst {dimension_numbers = #tpu.dot_dimension_numbers<[1], [0], [0], [1], [0, 0, 1, 1], [], []>} : vector<6x64xf32>, vector<64x1024xf32>, vector<6x1024xf32> -> vector<6x1024xf32>
    %c0_3 = arith.constant 0 : index
    %c0_4 = arith.constant 0 : index
    %3 = vector.load %arg4[%c0_3, %c0_4] : memref<1x1024xf32, #tpu.memory_space<vmem>>, vector<1x1024xf32>
    %4 = vector.broadcast %3 : vector<1x1024xf32> to vector<6x1024xf32>
    %5 = arith.addf %2, %4 : vector<6x1024xf32>
    %c0_5 = arith.constant 0 : index
    %c0_6 = arith.constant 0 : index
    %6 = vector.load %arg1[%c0_5, %c0_6] : memref<4x1024xf32, #tpu.memory_space<vmem>>, vector<4x1024xf32>
    %7 = tpu.concatenate %6, %5 in 0 : vector<4x1024xf32>, vector<6x1024xf32> -> vector<10x1024xf32>
    %c0_7 = arith.constant 0 : index
    %c0_8 = arith.constant 0 : index
    %8 = vector.load %arg5[%c0_7, %c0_8] : memref<1024x200xf32, #tpu.memory_space<vmem>>, vector<1024x200xf32>
    %cst_9 = arith.constant dense<0.000000e+00> : vector<10x200xf32>
    %9 = tpu.matmul %7, %8, %cst_9 {dimension_numbers = #tpu.dot_dimension_numbers<[1], [0], [0], [1], [0, 0, 1, 1], [], []>} : vector<10x1024xf32>, vector<1024x200xf32>, vector<10x200xf32> -> vector<10x200xf32>
    %c0_10 = arith.constant 0 : index
    %c0_11 = arith.constant 0 : index
    %10 = vector.load %arg7[%c0_10, %c0_11] : memref<10x10xf32, #tpu.memory_space<vmem>>, vector<10x10xf32>
    %cst_12 = arith.constant dense<0.000000e+00> : vector<10x200xf32>
    %11 = tpu.matmul %10, %9, %cst_12 {dimension_numbers = #tpu.dot_dimension_numbers<[1], [0], [0], [1], [0, 0, 1, 1], [], []>} : vector<10x10xf32>, vector<10x200xf32>, vector<10x200xf32> -> vector<10x200xf32>
    %c0_13 = arith.constant 0 : index
    %c0_14 = arith.constant 0 : index
    %12 = vector.load %arg6[%c0_13, %c0_14] : memref<1x200xf32, #tpu.memory_space<vmem>>, vector<1x200xf32>
    %13 = vector.broadcast %12 : vector<1x200xf32> to vector<10x200xf32>
    %14 = arith.addf %11, %13 : vector<10x200xf32>
    %cst_15 = arith.constant dense<0xFF800000> : vector<200xf32>
    %15 = vector.multi_reduction <maximumf>, %14, %cst_15 [0] : vector<10x200xf32> to vector<200xf32>
    %16 = vector.shape_cast %15 : vector<200xf32> to vector<1x200xf32>
    %17 = vector.broadcast %16 : vector<1x200xf32> to vector<10x200xf32>
    %18 = arith.subf %14, %17 : vector<10x200xf32>
    %19 = math.exp %18 : vector<10x200xf32>
    %cst_16 = arith.constant dense<0.000000e+00> : vector<200xf32>
    %20 = vector.multi_reduction <add>, %19, %cst_16 [0] : vector<10x200xf32> to vector<200xf32>
    %21 = vector.shape_cast %20 : vector<200xf32> to vector<1x200xf32>
    %22 = math.log %21 : vector<1x200xf32>
    %23 = vector.broadcast %22 : vector<1x200xf32> to vector<10x200xf32>
    %24 = arith.subf %18, %23 : vector<10x200xf32>
    %c0_17 = arith.constant 0 : index
    %c0_18 = arith.constant 0 : index
    %25 = vector.load %arg8[%c0_17, %c0_18] : memref<10x32xf32, #tpu.memory_space<vmem>>, vector<10x32xf32>
    %c0_19 = arith.constant 0 : index
    %c0_20 = arith.constant 0 : index
    %26 = vector.load %arg9[%c0_19, %c0_20] : memref<32x200xf32, #tpu.memory_space<vmem>>, vector<32x200xf32>
    %cst_21 = arith.constant dense<0.000000e+00> : vector<10x200xf32>
    %27 = tpu.matmul %25, %26, %cst_21 {dimension_numbers = #tpu.dot_dimension_numbers<[1], [0], [0], [1], [0, 0, 1, 1], [], []>} : vector<10x32xf32>, vector<32x200xf32>, vector<10x200xf32> -> vector<10x200xf32>
    %c0_22 = arith.constant 0 : index
    %c0_23 = arith.constant 0 : index
    %28 = vector.load %arg10[%c0_22, %c0_23] : memref<200x2xf32, #tpu.memory_space<vmem>>, vector<200x2xf32>
    %cst_24 = arith.constant dense<0.000000e+00> : vector<10x2xf32>
    %29 = tpu.matmul %27, %28, %cst_24 {dimension_numbers = #tpu.dot_dimension_numbers<[1], [0], [0], [1], [0, 0, 1, 1], [], []>} : vector<10x200xf32>, vector<200x2xf32>, vector<10x2xf32> -> vector<10x2xf32>
    %30 = vector.extract_strided_slice %29 {offsets = [0, 1], sizes = [10, 1], strides = [1, 1]} : vector<10x2xf32> to vector<10x1xf32>
    %31 = vector.extract_strided_slice %29 {offsets = [0, 0], sizes = [10, 1], strides = [1, 1]} : vector<10x2xf32> to vector<10x1xf32>
    %32 = tpu.transpose %31, [1, 0] : vector<10x1xf32> -> vector<1x10xf32>
    %33 = vector.broadcast %30 : vector<10x1xf32> to vector<10x10xf32>
    %34 = vector.broadcast %32 : vector<1x10xf32> to vector<10x10xf32>
    %35 = arith.addf %33, %34 : vector<10x10xf32>
    %cst_25 = arith.constant 0.000000e+00 : f32
    %36 = vector.broadcast %cst_25 : f32 to vector<10x10xf32>
    %37 = arith.cmpf ogt, %35, %36 : vector<10x10xf32>
    %cst_26 = arith.constant 2.000000e-01 : f32
    %38 = vector.broadcast %cst_26 : f32 to vector<10x10xf32>
    %39 = arith.mulf %38, %35 : vector<10x10xf32>
    %40 = arith.select %37, %35, %39 : vector<10x10xi1>, vector<10x10xf32>
    %c0_27 = arith.constant 0 : index
    %c0_28 = arith.constant 0 : index
    %41 = vector.load %arg12[%c0_27, %c0_28] : memref<10x10xf32, #tpu.memory_space<vmem>>, vector<10x10xf32>
    %cst_29 = arith.constant 0.000000e+00 : f32
    %42 = vector.broadcast %cst_29 : f32 to vector<10x10xf32>
    %43 = arith.cmpf ogt, %41, %42 : vector<10x10xf32>
    %cst_30 = arith.constant -1.000000e+30 : f32
    %44 = vector.broadcast %cst_30 : f32 to vector<10x10xf32>
    %45 = arith.select %43, %40, %44 : vector<10x10xi1>, vector<10x10xf32>
    %cst_31 = arith.constant dense<0xFF800000> : vector<10xf32>
    %46 = vector.multi_reduction <maximumf>, %45, %cst_31 [1] : vector<10x10xf32> to vector<10xf32>
    %47 = vector.shape_cast %46 : vector<10xf32> to vector<10x1xf32>
    %48 = vector.broadcast %47 : vector<10x1xf32> to vector<10x10xf32>
    %49 = arith.subf %45, %48 : vector<10x10xf32>
    %50 = math.exp %49 : vector<10x10xf32>
    %cst_32 = arith.constant dense<0.000000e+00> : vector<10xf32>
    %51 = vector.multi_reduction <add>, %50, %cst_32 [1] : vector<10x10xf32> to vector<10xf32>
    %52 = vector.shape_cast %51 : vector<10xf32> to vector<10x1xf32>
    %53 = tpu.reciprocal %52 {approx = true} : vector<10x1xf32> -> vector<10x1xf32>
    %54 = vector.broadcast %53 : vector<10x1xf32> to vector<10x10xf32>
    %55 = arith.mulf %50, %54 : vector<10x10xf32>
    %cst_33 = arith.constant dense<0.000000e+00> : vector<10x200xf32>
    %56 = tpu.matmul %55, %27, %cst_33 {dimension_numbers = #tpu.dot_dimension_numbers<[1], [0], [0], [1], [0, 0, 1, 1], [], []>} : vector<10x10xf32>, vector<10x200xf32>, vector<10x200xf32> -> vector<10x200xf32>
    %c0_34 = arith.constant 0 : index
    %c0_35 = arith.constant 0 : index
    %57 = vector.load %arg11[%c0_34, %c0_35] : memref<1x200xf32, #tpu.memory_space<vmem>>, vector<1x200xf32>
    %58 = vector.broadcast %57 : vector<1x200xf32> to vector<10x200xf32>
    %59 = arith.addf %56, %58 : vector<10x200xf32>
    %cst_36 = arith.constant dense<0xFF800000> : vector<200xf32>
    %60 = vector.multi_reduction <maximumf>, %59, %cst_36 [0] : vector<10x200xf32> to vector<200xf32>
    %61 = vector.shape_cast %60 : vector<200xf32> to vector<1x200xf32>
    %62 = vector.broadcast %61 : vector<1x200xf32> to vector<10x200xf32>
    %63 = arith.subf %59, %62 : vector<10x200xf32>
    %64 = math.exp %63 : vector<10x200xf32>
    %cst_37 = arith.constant dense<0.000000e+00> : vector<200xf32>
    %65 = vector.multi_reduction <add>, %64, %cst_37 [0] : vector<10x200xf32> to vector<200xf32>
    %66 = vector.shape_cast %65 : vector<200xf32> to vector<1x200xf32>
    %67 = math.log %66 : vector<1x200xf32>
    %68 = vector.broadcast %67 : vector<1x200xf32> to vector<10x200xf32>
    %69 = arith.subf %63, %68 : vector<10x200xf32>
    %70 = tpu.concatenate %24, %69 in 1 : vector<10x200xf32>, vector<10x200xf32> -> vector<10x400xf32>
    %c0_38 = arith.constant 0 : index
    %c0_39 = arith.constant 0 : index
    %71 = vector.load %arg20[%c0_38, %c0_39] : memref<10x400xf32, #tpu.memory_space<vmem>>, vector<10x400xf32>
    tpu.vector_store %arg20[%c0_38, %c0_39], %70 {strides = array<i32>} : memref<10x400xf32, #tpu.memory_space<vmem>>, vector<10x400xf32>,
    %cst_40 = arith.constant 0.000000e+00 : f32
    %72 = vector.broadcast %cst_40 : f32 to vector<2x2xf32>
    %c0_41 = arith.constant 0 : index
    %c0_42 = arith.constant 0 : index
    %73 = memref.load %arg0[%c0_41, %c0_42] : memref<2x3xi32, #tpu.memory_space<smem>>
    %c1 = arith.constant 1 : index
    %c0_43 = arith.constant 0 : index
    %74 = memref.load %arg0[%c1, %c0_43] : memref<2x3xi32, #tpu.memory_space<smem>>
    %75 = arith.index_cast %73 : i32 to index
    %c0_44 = arith.constant 0 : index
    %76 = vector.load %arg20[%75, %c0_44] : memref<10x400xf32, #tpu.memory_space<vmem>>, vector<1x400xf32>
    %77 = arith.index_cast %74 : i32 to index
    %c0_45 = arith.constant 0 : index
    %78 = vector.load %arg20[%77, %c0_45] : memref<10x400xf32, #tpu.memory_space<vmem>>, vector<1x400xf32>
    %79 = tpu.concatenate %76, %78 in 0 : vector<1x400xf32>, vector<1x400xf32> -> vector<2x400xf32>
    %80 = tpu.concatenate %72, %79, %72 in 1 : vector<2x2xf32>, vector<2x400xf32>, vector<2x2xf32> -> vector<2x404xf32>
    %81 = vector.extract_strided_slice %80 {offsets = [0, 0], sizes = [1, 400], strides = [1, 1]} : vector<2x404xf32> to vector<1x400xf32>
    %82 = vector.extract_strided_slice %80 {offsets = [1, 0], sizes = [1, 400], strides = [1, 1]} : vector<2x404xf32> to vector<1x400xf32>
    %83 = vector.extract_strided_slice %80 {offsets = [0, 1], sizes = [1, 400], strides = [1, 1]} : vector<2x404xf32> to vector<1x400xf32>
    %84 = vector.extract_strided_slice %80 {offsets = [1, 1], sizes = [1, 400], strides = [1, 1]} : vector<2x404xf32> to vector<1x400xf32>
    %85 = vector.extract_strided_slice %80 {offsets = [0, 2], sizes = [1, 400], strides = [1, 1]} : vector<2x404xf32> to vector<1x400xf32>
    %86 = vector.extract_strided_slice %80 {offsets = [1, 2], sizes = [1, 400], strides = [1, 1]} : vector<2x404xf32> to vector<1x400xf32>
    %87 = vector.extract_strided_slice %80 {offsets = [0, 3], sizes = [1, 400], strides = [1, 1]} : vector<2x404xf32> to vector<1x400xf32>
    %88 = vector.extract_strided_slice %80 {offsets = [1, 3], sizes = [1, 400], strides = [1, 1]} : vector<2x404xf32> to vector<1x400xf32>
    %89 = vector.extract_strided_slice %80 {offsets = [0, 4], sizes = [1, 400], strides = [1, 1]} : vector<2x404xf32> to vector<1x400xf32>
    %90 = vector.extract_strided_slice %80 {offsets = [1, 4], sizes = [1, 400], strides = [1, 1]} : vector<2x404xf32> to vector<1x400xf32>
    %91 = tpu.concatenate %81, %82, %83, %84, %85, %86, %87, %88, %89, %90 in 0 : vector<1x400xf32>, vector<1x400xf32>, vector<1x400xf32>, vector<1x400xf32>, vector<1x400xf32>, vector<1x400xf32>, vector<1x400xf32>, vector<1x400xf32>, vector<1x400xf32>, vector<1x400xf32> -> vector<10x400xf32>
    %c0_46 = arith.constant 0 : index
    %c0_47 = arith.constant 0 : index
    %92 = vector.load %arg13[%c0_46, %c0_47] : memref<64x10xf32, #tpu.memory_space<vmem>>, vector<64x10xf32>
    %cst_48 = arith.constant dense<0.000000e+00> : vector<64x400xf32>
    %93 = tpu.matmul %92, %91, %cst_48 {dimension_numbers = #tpu.dot_dimension_numbers<[1], [0], [0], [1], [0, 0, 1, 1], [], []>} : vector<64x10xf32>, vector<10x400xf32>, vector<64x400xf32> -> vector<64x400xf32>
    %c0_49 = arith.constant 0 : index
    %c0_50 = arith.constant 0 : index
    %94 = vector.load %arg14[%c0_49, %c0_50] : memref<64x1xf32, #tpu.memory_space<vmem>>, vector<64x1xf32>
    %95 = vector.broadcast %94 : vector<64x1xf32> to vector<64x400xf32>
    %96 = arith.addf %93, %95 : vector<64x400xf32>
    %cst_51 = arith.constant 0.000000e+00 : f32
    %97 = vector.broadcast %cst_51 : f32 to vector<64x400xf32>
    %98 = arith.cmpf ogt, %96, %97 : vector<64x400xf32>
    %cst_52 = arith.constant 0.00999999977 : f32
    %99 = vector.broadcast %cst_52 : f32 to vector<64x400xf32>
    %100 = arith.mulf %99, %96 : vector<64x400xf32>
    %101 = arith.select %98, %96, %100 : vector<64x400xi1>, vector<64x400xf32>
    %c0_53 = arith.constant 0 : index
    %c0_54 = arith.constant 0 : index
    %102 = vector.load %arg15[%c0_53, %c0_54] : memref<32x64xf32, #tpu.memory_space<vmem>>, vector<32x64xf32>
    %cst_55 = arith.constant dense<0.000000e+00> : vector<32x400xf32>
    %103 = tpu.matmul %102, %101, %cst_55 {dimension_numbers = #tpu.dot_dimension_numbers<[1], [0], [0], [1], [0, 0, 1, 1], [], []>} : vector<32x64xf32>, vector<64x400xf32>, vector<32x400xf32> -> vector<32x400xf32>
    %c0_56 = arith.constant 0 : index
    %c0_57 = arith.constant 0 : index
    %104 = vector.load %arg16[%c0_56, %c0_57] : memref<400x200xf32, #tpu.memory_space<vmem>>, vector<400x200xf32>
    %cst_58 = arith.constant dense<0.000000e+00> : vector<32x200xf32>
    %105 = tpu.matmul %103, %104, %cst_58 {dimension_numbers = #tpu.dot_dimension_numbers<[1], [0], [0], [1], [0, 0, 1, 1], [], []>} : vector<32x400xf32>, vector<400x200xf32>, vector<32x200xf32> -> vector<32x200xf32>
    %106 = math.tanh %105 : vector<32x200xf32>
    %c0_59 = arith.constant 0 : index
    %c0_60 = arith.constant 0 : index
    %c0_61 = arith.constant 0 : index
    %107 = vector.load %arg17[%c0_59, %c0_60, %c0_61] : memref<2x32x200xf32, #tpu.memory_space<vmem>>, vector<1x32x200xf32>
    %108 = vector.shape_cast %107 : vector<1x32x200xf32> to vector<32x200xf32>
    %109 = arith.mulf %106, %108 : vector<32x200xf32>
    %cst_62 = arith.constant dense<0.000000e+00> : vector<32xf32>
    %110 = vector.multi_reduction <add>, %109, %cst_62 [1] : vector<32x200xf32> to vector<32xf32>
    %111 = vector.shape_cast %110 : vector<32xf32> to vector<32x1xf32>
    %c1_63 = arith.constant 1 : index
    %c0_64 = arith.constant 0 : index
    %c0_65 = arith.constant 0 : index
    %112 = vector.load %arg17[%c1_63, %c0_64, %c0_65] : memref<2x32x200xf32, #tpu.memory_space<vmem>>, vector<1x32x200xf32>
    %113 = vector.shape_cast %112 : vector<1x32x200xf32> to vector<32x200xf32>
    %114 = arith.mulf %106, %113 : vector<32x200xf32>
    %cst_66 = arith.constant dense<0.000000e+00> : vector<32xf32>
    %115 = vector.multi_reduction <add>, %114, %cst_66 [1] : vector<32x200xf32> to vector<32xf32>
    %116 = vector.shape_cast %115 : vector<32xf32> to vector<32x1xf32>
    %117 = tpu.concatenate %111, %116 in 1 : vector<32x1xf32>, vector<32x1xf32> -> vector<32x2xf32>
    %cst_67 = arith.constant dense<0.000000e+00> : vector<2xf32>
    %118 = vector.multi_reduction <add>, %117, %cst_67 [0] : vector<32x2xf32> to vector<2xf32>
    %119 = vector.shape_cast %118 : vector<2xf32> to vector<1x2xf32>
    %c0_68 = arith.constant 0 : index
    %c1_69 = arith.constant 1 : index
    %120 = memref.load %arg0[%c0_68, %c1_69] : memref<2x3xi32, #tpu.memory_space<smem>>
    %c1_70 = arith.constant 1 : index
    %c1_71 = arith.constant 1 : index
    %121 = memref.load %arg0[%c1_70, %c1_71] : memref<2x3xi32, #tpu.memory_space<smem>>
    %122 = arith.index_cast %120 : i32 to index
    %c0_72 = arith.constant 0 : index
    %123 = vector.load %arg20[%122, %c0_72] : memref<10x400xf32, #tpu.memory_space<vmem>>, vector<1x400xf32>
    %124 = arith.index_cast %121 : i32 to index
    %c0_73 = arith.constant 0 : index
    %125 = vector.load %arg20[%124, %c0_73] : memref<10x400xf32, #tpu.memory_space<vmem>>, vector<1x400xf32>
    %126 = tpu.concatenate %123, %125 in 0 : vector<1x400xf32>, vector<1x400xf32> -> vector<2x400xf32>
    %127 = tpu.concatenate %72, %126, %72 in 1 : vector<2x2xf32>, vector<2x400xf32>, vector<2x2xf32> -> vector<2x404xf32>
    %128 = vector.extract_strided_slice %127 {offsets = [0, 0], sizes = [1, 400], strides = [1, 1]} : vector<2x404xf32> to vector<1x400xf32>
    %129 = vector.extract_strided_slice %127 {offsets = [1, 0], sizes = [1, 400], strides = [1, 1]} : vector<2x404xf32> to vector<1x400xf32>
    %130 = vector.extract_strided_slice %127 {offsets = [0, 1], sizes = [1, 400], strides = [1, 1]} : vector<2x404xf32> to vector<1x400xf32>
    %131 = vector.extract_strided_slice %127 {offsets = [1, 1], sizes = [1, 400], strides = [1, 1]} : vector<2x404xf32> to vector<1x400xf32>
    %132 = vector.extract_strided_slice %127 {offsets = [0, 2], sizes = [1, 400], strides = [1, 1]} : vector<2x404xf32> to vector<1x400xf32>
    %133 = vector.extract_strided_slice %127 {offsets = [1, 2], sizes = [1, 400], strides = [1, 1]} : vector<2x404xf32> to vector<1x400xf32>
    %134 = vector.extract_strided_slice %127 {offsets = [0, 3], sizes = [1, 400], strides = [1, 1]} : vector<2x404xf32> to vector<1x400xf32>
    %135 = vector.extract_strided_slice %127 {offsets = [1, 3], sizes = [1, 400], strides = [1, 1]} : vector<2x404xf32> to vector<1x400xf32>
    %136 = vector.extract_strided_slice %127 {offsets = [0, 4], sizes = [1, 400], strides = [1, 1]} : vector<2x404xf32> to vector<1x400xf32>
    %137 = vector.extract_strided_slice %127 {offsets = [1, 4], sizes = [1, 400], strides = [1, 1]} : vector<2x404xf32> to vector<1x400xf32>
    %138 = tpu.concatenate %128, %129, %130, %131, %132, %133, %134, %135, %136, %137 in 0 : vector<1x400xf32>, vector<1x400xf32>, vector<1x400xf32>, vector<1x400xf32>, vector<1x400xf32>, vector<1x400xf32>, vector<1x400xf32>, vector<1x400xf32>, vector<1x400xf32>, vector<1x400xf32> -> vector<10x400xf32>
    %c0_74 = arith.constant 0 : index
    %c0_75 = arith.constant 0 : index
    %139 = vector.load %arg13[%c0_74, %c0_75] : memref<64x10xf32, #tpu.memory_space<vmem>>, vector<64x10xf32>
    %cst_76 = arith.constant dense<0.000000e+00> : vector<64x400xf32>
    %140 = tpu.matmul %139, %138, %cst_76 {dimension_numbers = #tpu.dot_dimension_numbers<[1], [0], [0], [1], [0, 0, 1, 1], [], []>} : vector<64x10xf32>, vector<10x400xf32>, vector<64x400xf32> -> vector<64x400xf32>
    %c0_77 = arith.constant 0 : index
    %c0_78 = arith.constant 0 : index
    %141 = vector.load %arg14[%c0_77, %c0_78] : memref<64x1xf32, #tpu.memory_space<vmem>>, vector<64x1xf32>
    %142 = vector.broadcast %141 : vector<64x1xf32> to vector<64x400xf32>
    %143 = arith.addf %140, %142 : vector<64x400xf32>
    %cst_79 = arith.constant 0.000000e+00 : f32
    %144 = vector.broadcast %cst_79 : f32 to vector<64x400xf32>
    %145 = arith.cmpf ogt, %143, %144 : vector<64x400xf32>
    %cst_80 = arith.constant 0.00999999977 : f32
    %146 = vector.broadcast %cst_80 : f32 to vector<64x400xf32>
    %147 = arith.mulf %146, %143 : vector<64x400xf32>
    %148 = arith.select %145, %143, %147 : vector<64x400xi1>, vector<64x400xf32>
    %c0_81 = arith.constant 0 : index
    %c0_82 = arith.constant 0 : index
    %149 = vector.load %arg15[%c0_81, %c0_82] : memref<32x64xf32, #tpu.memory_space<vmem>>, vector<32x64xf32>
    %cst_83 = arith.constant dense<0.000000e+00> : vector<32x400xf32>
    %150 = tpu.matmul %149, %148, %cst_83 {dimension_numbers = #tpu.dot_dimension_numbers<[1], [0], [0], [1], [0, 0, 1, 1], [], []>} : vector<32x64xf32>, vector<64x400xf32>, vector<32x400xf32> -> vector<32x400xf32>
    %c0_84 = arith.constant 0 : index
    %c0_85 = arith.constant 0 : index
    %151 = vector.load %arg16[%c0_84, %c0_85] : memref<400x200xf32, #tpu.memory_space<vmem>>, vector<400x200xf32>
    %cst_86 = arith.constant dense<0.000000e+00> : vector<32x200xf32>
    %152 = tpu.matmul %150, %151, %cst_86 {dimension_numbers = #tpu.dot_dimension_numbers<[1], [0], [0], [1], [0, 0, 1, 1], [], []>} : vector<32x400xf32>, vector<400x200xf32>, vector<32x200xf32> -> vector<32x200xf32>
    %153 = math.tanh %152 : vector<32x200xf32>
    %c0_87 = arith.constant 0 : index
    %c0_88 = arith.constant 0 : index
    %c0_89 = arith.constant 0 : index
    %154 = vector.load %arg17[%c0_87, %c0_88, %c0_89] : memref<2x32x200xf32, #tpu.memory_space<vmem>>, vector<1x32x200xf32>
    %155 = vector.shape_cast %154 : vector<1x32x200xf32> to vector<32x200xf32>
    %156 = arith.mulf %153, %155 : vector<32x200xf32>
    %cst_90 = arith.constant dense<0.000000e+00> : vector<32xf32>
    %157 = vector.multi_reduction <add>, %156, %cst_90 [1] : vector<32x200xf32> to vector<32xf32>
    %158 = vector.shape_cast %157 : vector<32xf32> to vector<32x1xf32>
    %c1_91 = arith.constant 1 : index
    %c0_92 = arith.constant 0 : index
    %c0_93 = arith.constant 0 : index
    %159 = vector.load %arg17[%c1_91, %c0_92, %c0_93] : memref<2x32x200xf32, #tpu.memory_space<vmem>>, vector<1x32x200xf32>
    %160 = vector.shape_cast %159 : vector<1x32x200xf32> to vector<32x200xf32>
    %161 = arith.mulf %153, %160 : vector<32x200xf32>
    %cst_94 = arith.constant dense<0.000000e+00> : vector<32xf32>
    %162 = vector.multi_reduction <add>, %161, %cst_94 [1] : vector<32x200xf32> to vector<32xf32>
    %163 = vector.shape_cast %162 : vector<32xf32> to vector<32x1xf32>
    %164 = tpu.concatenate %158, %163 in 1 : vector<32x1xf32>, vector<32x1xf32> -> vector<32x2xf32>
    %cst_95 = arith.constant dense<0.000000e+00> : vector<2xf32>
    %165 = vector.multi_reduction <add>, %164, %cst_95 [0] : vector<32x2xf32> to vector<2xf32>
    %166 = vector.shape_cast %165 : vector<2xf32> to vector<1x2xf32>
    %c0_96 = arith.constant 0 : index
    %c2 = arith.constant 2 : index
    %167 = memref.load %arg0[%c0_96, %c2] : memref<2x3xi32, #tpu.memory_space<smem>>
    %c1_97 = arith.constant 1 : index
    %c2_98 = arith.constant 2 : index
    %168 = memref.load %arg0[%c1_97, %c2_98] : memref<2x3xi32, #tpu.memory_space<smem>>
    %169 = arith.index_cast %167 : i32 to index
    %c0_99 = arith.constant 0 : index
    %170 = vector.load %arg20[%169, %c0_99] : memref<10x400xf32, #tpu.memory_space<vmem>>, vector<1x400xf32>
    %171 = arith.index_cast %168 : i32 to index
    %c0_100 = arith.constant 0 : index
    %172 = vector.load %arg20[%171, %c0_100] : memref<10x400xf32, #tpu.memory_space<vmem>>, vector<1x400xf32>
    %173 = tpu.concatenate %170, %172 in 0 : vector<1x400xf32>, vector<1x400xf32> -> vector<2x400xf32>
    %174 = tpu.concatenate %72, %173, %72 in 1 : vector<2x2xf32>, vector<2x400xf32>, vector<2x2xf32> -> vector<2x404xf32>
    %175 = vector.extract_strided_slice %174 {offsets = [0, 0], sizes = [1, 400], strides = [1, 1]} : vector<2x404xf32> to vector<1x400xf32>
    %176 = vector.extract_strided_slice %174 {offsets = [1, 0], sizes = [1, 400], strides = [1, 1]} : vector<2x404xf32> to vector<1x400xf32>
    %177 = vector.extract_strided_slice %174 {offsets = [0, 1], sizes = [1, 400], strides = [1, 1]} : vector<2x404xf32> to vector<1x400xf32>
    %178 = vector.extract_strided_slice %174 {offsets = [1, 1], sizes = [1, 400], strides = [1, 1]} : vector<2x404xf32> to vector<1x400xf32>
    %179 = vector.extract_strided_slice %174 {offsets = [0, 2], sizes = [1, 400], strides = [1, 1]} : vector<2x404xf32> to vector<1x400xf32>
    %180 = vector.extract_strided_slice %174 {offsets = [1, 2], sizes = [1, 400], strides = [1, 1]} : vector<2x404xf32> to vector<1x400xf32>
    %181 = vector.extract_strided_slice %174 {offsets = [0, 3], sizes = [1, 400], strides = [1, 1]} : vector<2x404xf32> to vector<1x400xf32>
    %182 = vector.extract_strided_slice %174 {offsets = [1, 3], sizes = [1, 400], strides = [1, 1]} : vector<2x404xf32> to vector<1x400xf32>
    %183 = vector.extract_strided_slice %174 {offsets = [0, 4], sizes = [1, 400], strides = [1, 1]} : vector<2x404xf32> to vector<1x400xf32>
    %184 = vector.extract_strided_slice %174 {offsets = [1, 4], sizes = [1, 400], strides = [1, 1]} : vector<2x404xf32> to vector<1x400xf32>
    %185 = tpu.concatenate %175, %176, %177, %178, %179, %180, %181, %182, %183, %184 in 0 : vector<1x400xf32>, vector<1x400xf32>, vector<1x400xf32>, vector<1x400xf32>, vector<1x400xf32>, vector<1x400xf32>, vector<1x400xf32>, vector<1x400xf32>, vector<1x400xf32>, vector<1x400xf32> -> vector<10x400xf32>
    %c0_101 = arith.constant 0 : index
    %c0_102 = arith.constant 0 : index
    %186 = vector.load %arg13[%c0_101, %c0_102] : memref<64x10xf32, #tpu.memory_space<vmem>>, vector<64x10xf32>
    %cst_103 = arith.constant dense<0.000000e+00> : vector<64x400xf32>
    %187 = tpu.matmul %186, %185, %cst_103 {dimension_numbers = #tpu.dot_dimension_numbers<[1], [0], [0], [1], [0, 0, 1, 1], [], []>} : vector<64x10xf32>, vector<10x400xf32>, vector<64x400xf32> -> vector<64x400xf32>
    %c0_104 = arith.constant 0 : index
    %c0_105 = arith.constant 0 : index
    %188 = vector.load %arg14[%c0_104, %c0_105] : memref<64x1xf32, #tpu.memory_space<vmem>>, vector<64x1xf32>
    %189 = vector.broadcast %188 : vector<64x1xf32> to vector<64x400xf32>
    %190 = arith.addf %187, %189 : vector<64x400xf32>
    %cst_106 = arith.constant 0.000000e+00 : f32
    %191 = vector.broadcast %cst_106 : f32 to vector<64x400xf32>
    %192 = arith.cmpf ogt, %190, %191 : vector<64x400xf32>
    %cst_107 = arith.constant 0.00999999977 : f32
    %193 = vector.broadcast %cst_107 : f32 to vector<64x400xf32>
    %194 = arith.mulf %193, %190 : vector<64x400xf32>
    %195 = arith.select %192, %190, %194 : vector<64x400xi1>, vector<64x400xf32>
    %c0_108 = arith.constant 0 : index
    %c0_109 = arith.constant 0 : index
    %196 = vector.load %arg15[%c0_108, %c0_109] : memref<32x64xf32, #tpu.memory_space<vmem>>, vector<32x64xf32>
    %cst_110 = arith.constant dense<0.000000e+00> : vector<32x400xf32>
    %197 = tpu.matmul %196, %195, %cst_110 {dimension_numbers = #tpu.dot_dimension_numbers<[1], [0], [0], [1], [0, 0, 1, 1], [], []>} : vector<32x64xf32>, vector<64x400xf32>, vector<32x400xf32> -> vector<32x400xf32>
    %c0_111 = arith.constant 0 : index
    %c0_112 = arith.constant 0 : index
    %198 = vector.load %arg16[%c0_111, %c0_112] : memref<400x200xf32, #tpu.memory_space<vmem>>, vector<400x200xf32>
    %cst_113 = arith.constant dense<0.000000e+00> : vector<32x200xf32>
    %199 = tpu.matmul %197, %198, %cst_113 {dimension_numbers = #tpu.dot_dimension_numbers<[1], [0], [0], [1], [0, 0, 1, 1], [], []>} : vector<32x400xf32>, vector<400x200xf32>, vector<32x200xf32> -> vector<32x200xf32>
    %200 = math.tanh %199 : vector<32x200xf32>
    %c0_114 = arith.constant 0 : index
    %c0_115 = arith.constant 0 : index
    %c0_116 = arith.constant 0 : index
    %201 = vector.load %arg17[%c0_114, %c0_115, %c0_116] : memref<2x32x200xf32, #tpu.memory_space<vmem>>, vector<1x32x200xf32>
    %202 = vector.shape_cast %201 : vector<1x32x200xf32> to vector<32x200xf32>
    %203 = arith.mulf %200, %202 : vector<32x200xf32>
    %cst_117 = arith.constant dense<0.000000e+00> : vector<32xf32>
    %204 = vector.multi_reduction <add>, %203, %cst_117 [1] : vector<32x200xf32> to vector<32xf32>
    %205 = vector.shape_cast %204 : vector<32xf32> to vector<32x1xf32>
    %c1_118 = arith.constant 1 : index
    %c0_119 = arith.constant 0 : index
    %c0_120 = arith.constant 0 : index
    %206 = vector.load %arg17[%c1_118, %c0_119, %c0_120] : memref<2x32x200xf32, #tpu.memory_space<vmem>>, vector<1x32x200xf32>
    %207 = vector.shape_cast %206 : vector<1x32x200xf32> to vector<32x200xf32>
    %208 = arith.mulf %200, %207 : vector<32x200xf32>
    %cst_121 = arith.constant dense<0.000000e+00> : vector<32xf32>
    %209 = vector.multi_reduction <add>, %208, %cst_121 [1] : vector<32x200xf32> to vector<32xf32>
    %210 = vector.shape_cast %209 : vector<32xf32> to vector<32x1xf32>
    %211 = tpu.concatenate %205, %210 in 1 : vector<32x1xf32>, vector<32x1xf32> -> vector<32x2xf32>
    %cst_122 = arith.constant dense<0.000000e+00> : vector<2xf32>
    %212 = vector.multi_reduction <add>, %211, %cst_122 [0] : vector<32x2xf32> to vector<2xf32>
    %213 = vector.shape_cast %212 : vector<2xf32> to vector<1x2xf32>
    %214 = tpu.concatenate %119, %166, %213 in 0 : vector<1x2xf32>, vector<1x2xf32>, vector<1x2xf32> -> vector<3x2xf32>
    %c0_123 = arith.constant 0 : index
    %c0_124 = arith.constant 0 : index
    %215 = vector.load %arg18[%c0_123, %c0_124] : memref<1x2xf32, #tpu.memory_space<vmem>>, vector<1x2xf32>
    %216 = vector.broadcast %215 : vector<1x2xf32> to vector<3x2xf32>
    %217 = arith.addf %214, %216 : vector<3x2xf32>
    %c0_125 = arith.constant 0 : index
    %c0_126 = arith.constant 0 : index
    %218 = vector.load %arg19[%c0_125, %c0_126] : memref<3x2xf32, #tpu.memory_space<vmem>>, vector<3x2xf32>
    tpu.vector_store %arg19[%c0_125, %c0_126], %217 {strides = array<i32>} : memref<3x2xf32, #tpu.memory_space<vmem>>, vector<3x2xf32>,
    return
  }
}

</mosaic_0001>

<bundles_post_ra>
// kernel: one_class_forward.1
= control target key start
LH: loop header
LB: loop body
LE: loop exit
PB: predicated region body
PF: predicated region fallthrough
CT: control target
= control target key end

     0   :  { %s8629_s0 = inlined_call_operand.vmem [shape: s32[2,3], index: 0, kind: input, shape index: {}]   ;;  %s8630_s1 = inlined_call_operand.vmem [shape: f32[4,1024], index: 1, kind: input, shape index: {}]   ;;  %s8631_s2 = inlined_call_operand.vmem [shape: f32[6,64], index: 2, kind: input, shape index: {}]   ;;  %s8632_s3 = inlined_call_operand.vmem [shape: f32[64,1024], index: 3, kind: input, shape index: {}]   ;;  %s8633_s4 = inlined_call_operand.vmem [shape: f32[1,1024], index: 4, kind: input, shape index: {}]   ;;  %s8634_s5 = inlined_call_operand.vmem [shape: f32[1024,200], index: 5, kind: input, shape index: {}]   ;;  %s8635_s6 = inlined_call_operand.vmem [shape: f32[1,200], index: 6, kind: input, shape index: {}]   ;;  %s8636_s7 = inlined_call_operand.vmem [shape: f32[10,10], index: 7, kind: input, shape index: {}]   ;;  %s8637_s8 = inlined_call_operand.vmem [shape: f32[10,32], index: 8, kind: input, shape index: {}]   ;;  %s8638_s9 = inlined_call_operand.vmem [shape: f32[32,200], index: 9, kind: input, shape index: {}]   ;;  %s8639_s10 = inlined_call_operand.vmem [shape: f32[200,2], index: 10, kind: input, shape index: {}]   ;;  %s8640_s11 = inlined_call_operand.vmem [shape: f32[1,200], index: 11, kind: input, shape index: {}]   ;;  %s8641_s12 = inlined_call_operand.vmem [shape: f32[10,10], index: 12, kind: input, shape index: {}]   ;;  %s8642_s13 = inlined_call_operand.vmem [shape: f32[64,10], index: 13, kind: input, shape index: {}]   ;;  %s8643_s14 = inlined_call_operand.vmem [shape: f32[64,1], index: 14, kind: input, shape index: {}]   ;;  %s8644_s15 = inlined_call_operand.vmem [shape: f32[32,64], index: 15, kind: input, shape index: {}]   ;;  %s8645_s16 = inlined_call_operand.vmem [shape: f32[400,200], index: 16, kind: input, shape index: {}]   ;;  %s8646_s17 = inlined_call_operand.vmem [shape: f32[2,32,200], index: 17, kind: input, shape index: {}]   ;;  %s8647_s18 = inlined_call_operand.vmem [shape: f32[1,2], index: 18, kind: input, shape index: {}]   ;;  %s8648_s19 = inlined_call_operand.vmem [shape: f32[3,2], index: 19, kind: output, shape index: {}]  }
   0x1   :  { %8664 = sst [smem:[#allocation10_spill]] %s8629_s0 }
   0x2   :  { %8665 = sst [smem:[#allocation11_spill]] %s8630_s1 }
   0x3   :  { %8666 = sst [smem:[#allocation12_spill]] %s8631_s2 }
   0x4   :  { %8667 = sst [smem:[#allocation13_spill]] %s8632_s3 }
   0x5   :  { %24 = vsyncpa [#allocation4], 0  ;;  %s8668_s20 = sld [smem:[#allocation10_spill]]  ;;  %s4987_s1 = smov [#allocation3]  }
   0xb   :  { %s30_s21 = sshll.u32 %s8668_s20, 4  ;;  %s31_s21 = int_to_ptr.vmem [resolvable:$true] %s30_s21 }
   0xc   :  { %33 = dma.vmem_to_smem %s31_s21, 32, %s4987_s1, [#allocation4]  }
   0xd   :  { %4985 = dma.done.wait [#allocation4], 32  }
   0xe   :  { %4986 = vsyncadd [#allocation4], 4294967264 }
   0xf   :  { %74 = sfence }
  0x10   :  { %s8669_s23 = sld [smem:[#allocation13_spill]]  ;;  %vm158_vm0 = vcmask 523264   ;;  %vm8660_vm1 = vcmask 1043456   ;;  %vm1144_vm2 = vcmask 261120   ;;  %vm1025_vm3 = vcmask 1041408  }
  0x11   :  { %s8670_s30 = sld [smem:[#allocation12_spill]]  ;;  %vm8657_vm4 = vcmask 80896   ;;  %vm8651_vm5 = vcmask 588800   ;;  %vm1334_vm10 = vcmask 74752   ;;  %vm1088_vm11 = vcmask 582656  }
  0x12   :  { %s8671_s24 = sld [smem:[#allocation11_spill]]  ;;  %vm8659_vm12 = vcmask 130048   ;;  %vm1501_vm13 = vcmask 123904   ;;  %vm8652_vm14 = vcmask 1040384   ;;  %vm1558_vm15 = vcmask 15360  }
  0x13   :  { %s1503_s26 = sld [smem:[#allocation3]] }
  0x14   :  { %s4458_s27 = sld [smem:[#allocation3 + $0x81]] }
  0x16   :  { %v132_v0 = vld [vmem:[%s8669_s23 + $0x1c0] sm:$0xff]  ;;  %v133_v1 = vld [vmem:[%s8669_s23 + $0x1c8] sm:$0xff]  ;;  %v134_v2 = vld [vmem:[%s8669_s23 + $0x1d0] sm:$0xff] }
  0x17   :  { %170 = vmatpush.msra.mxu0 %v132_v0  ;;  %190 = vmatpush.msra.mxu1 %v133_v1  ;;  %v135_v3 = vld [vmem:[%s8669_s23 + $0x1d8] sm:$0xff]  ;;  %v124_v4 = vld [vmem:[%s8669_s23 + $0x180] sm:$0xff]  ;;  %v125_v5 = vld [vmem:[%s8669_s23 + $0x188] sm:$0xff] }
  0x18   :  { %210 = vmatpush.msra.mxu2 %v134_v2  ;;  %230 = vmatpush.msra.mxu3 %v135_v3  ;;  %v126_v6 = vld [vmem:[%s8669_s23 + $0x190] sm:$0xff]  ;;  %v127_v7 = vld [vmem:[%s8669_s23 + $0x198] sm:$0xff]  ;;  %v116_v8 = vld [vmem:[%s8669_s23 + $0x140] sm:$0xff] }
  0x19   :  { %171 = vmatpush.msra.mxu0 %v124_v4  ;;  %191 = vmatpush.msra.mxu1 %v125_v5  ;;  %v117_v9 = vld [vmem:[%s8669_s23 + $0x148] sm:$0xff]  ;;  %v118_v10 = vld [vmem:[%s8669_s23 + $0x150] sm:$0xff]  ;;  %v119_v11 = vld [vmem:[%s8669_s23 + $0x158] sm:$0xff]  ;;  %s1505_s28 = sshra.s32 %s1503_s26, 3 }
  0x1a   :  { %211 = vmatpush.msra.mxu2 %v126_v6  ;;  %231 = vmatpush.msra.mxu3 %v127_v7  ;;  %v108_v12 = vld [vmem:[%s8669_s23 + $0x100] sm:$0xff]  ;;  %v109_v13 = vld [vmem:[%s8669_s23 + $0x108] sm:$0xff]  ;;  %v110_v14 = vld [vmem:[%s8669_s23 + $0x110] sm:$0xff]  ;;  %s4589_s0 = sshll.u32 %s1505_s28, 5  ;;  %s2608_s22 = sand.u32 7, %s4458_s27 }
  0x1b   :  { %172 = vmatpush.msra.mxu0 %v116_v8  ;;  %192 = vmatpush.msra.mxu1 %v117_v9  ;;  %v111_v15 = vld [vmem:[%s8669_s23 + $0x118] sm:$0xff]  ;;  %v100_v16 = vld [vmem:[%s8669_s23 + $0xc0] sm:$0xff]  ;;  %v101_v17 = vld [vmem:[%s8669_s23 + $0xc8] sm:$0xff] }
  0x1c   :  { %212 = vmatpush.msra.mxu2 %v118_v10  ;;  %232 = vmatpush.msra.mxu3 %v119_v11  ;;  %v102_v18 = vld [vmem:[%s8669_s23 + $0xd0] sm:$0xff]  ;;  %v103_v19 = vld [vmem:[%s8669_s23 + $0xd8] sm:$0xff]  ;;  %v92_v20 = vld [vmem:[%s8669_s23 + $0x80] sm:$0xff] }
  0x1d   :  { %173 = vmatpush.msra.mxu0 %v108_v12  ;;  %193 = vmatpush.msra.mxu1 %v109_v13  ;;  %v93_v21 = vld [vmem:[%s8669_s23 + $0x88] sm:$0xff]  ;;  %v94_v22 = vld [vmem:[%s8669_s23 + $0x90] sm:$0xff]  ;;  %v95_v23 = vld [vmem:[%s8669_s23 + $0x98] sm:$0xff] }
  0x1e   :  { %213 = vmatpush.msra.mxu2 %v110_v14  ;;  %233 = vmatpush.msra.mxu3 %v111_v15  ;;  %v84_v24 = vld [vmem:[%s8669_s23 + $0x40] sm:$0xff]  ;;  %v85_v25 = vld [vmem:[%s8669_s23 + $0x48] sm:$0xff]  ;;  %v86_v26 = vld [vmem:[%s8669_s23 + $0x50] sm:$0xff] }
  0x1f   :  { %174 = vmatpush.msra.mxu0 %v100_v16  ;;  %194 = vmatpush.msra.mxu1 %v101_v17  ;;  %v87_v27 = vld [vmem:[%s8669_s23 + $0x58] sm:$0xff]  ;;  %v76_v28 = vld [vmem:[%s8669_s23] sm:$0xff]  ;;  %v77_v29 = vld [vmem:[%s8669_s23 + $0x8] sm:$0xff] }
  0x20   :  { %214 = vmatpush.msra.mxu2 %v102_v18  ;;  %234 = vmatpush.msra.mxu3 %v103_v19  ;;  %v78_v30 = vld [vmem:[%s8669_s23 + $0x10] sm:$0xff]  ;;  %v79_v31 = vld [vmem:[%s8669_s23 + $0x18] sm:$0xff]  ;;  %v5198_v32 = vld [vmem:[%s8670_s30] sm:$0x3f]  ;;  %s2605_s30 = sshra.s32 %s4458_s27, 3 }
  0x21   :  { %175 = vmatpush.msra.mxu0 %v92_v20  ;;  %195 = vmatpush.msra.mxu1 %v93_v21  ;;  %v136_v33 = vld [vmem:[%s8669_s23 + $0x1e0] sm:$0xff]  ;;  %v137_v34 = vld [vmem:[%s8669_s23 + $0x1e8] sm:$0xff]  ;;  %v138_v35 = vld [vmem:[%s8669_s23 + $0x1f0] sm:$0xff]  ;;  %s4592_s2 = sshll.u32 %s2605_s30, 5 }
  0x22   :  { %215 = vmatpush.msra.mxu2 %v94_v22  ;;  %235 = vmatpush.msra.mxu3 %v95_v23  ;;  %v139_v36 = vld [vmem:[%s8669_s23 + $0x1f8] sm:$0xff]  ;;  %v128_v37 = vld [vmem:[%s8669_s23 + $0x1a0] sm:$0xff]  ;;  %v129_v38 = vld [vmem:[%s8669_s23 + $0x1a8] sm:$0xff]  ;;  %s2611_s3 = sadd.s32 %s4592_s2, %s2608_s22  ;;  %s4523_s2 = sld [smem:[#allocation3 + $0x2]] }
  0x23   :  { %176 = vmatpush.msra.mxu0 %v84_v24  ;;  %196 = vmatpush.msra.mxu1 %v85_v25  ;;  %v130_v39 = vld [vmem:[%s8669_s23 + $0x1b0] sm:$0xff]  ;;  %v131_v40 = vld [vmem:[%s8669_s23 + $0x1b8] sm:$0xff]  ;;  %v120_v41 = vld [vmem:[%s8669_s23 + $0x160] sm:$0xff] }
  0x24   :  { %216 = vmatpush.msra.mxu2 %v86_v26  ;;  %236 = vmatpush.msra.mxu3 %v87_v27  ;;  %v121_v42 = vld [vmem:[%s8669_s23 + $0x168] sm:$0xff]  ;;  %v122_v43 = vld [vmem:[%s8669_s23 + $0x170] sm:$0xff]  ;;  %v123_v44 = vld [vmem:[%s8669_s23 + $0x178] sm:$0xff] }
  0x25   :  { %177 = vmatpush.msra.mxu0 %v76_v28  ;;  %197 = vmatpush.msra.mxu1 %v77_v29  ;;  %v112_v45 = vld [vmem:[%s8669_s23 + $0x120] sm:$0xff]  ;;  %v113_v46 = vld [vmem:[%s8669_s23 + $0x128] sm:$0xff]  ;;  %v114_v47 = vld [vmem:[%s8669_s23 + $0x130] sm:$0xff] }
  0x26   :  { %217 = vmatpush.msra.mxu2 %v78_v30  ;;  %237 = vmatpush.msra.mxu3 %v79_v31  ;;  %v115_v48 = vld [vmem:[%s8669_s23 + $0x138] sm:$0xff]  ;;  %v104_v49 = vld [vmem:[%s8669_s23 + $0xe0] sm:$0xff]  ;;  %v105_v50 = vld [vmem:[%s8669_s23 + $0xe8] sm:$0xff] }
  0x27   :  { %4358 = vmatmul.msk.f32.vlgmr.msra.gmra.mxu0 %vm158_vm0, %v5198_v32  ;;  %4359 = vmatmul.msk.f32.vlgmr.msra.gmra.mxu1 %vm158_vm0, %v5198_v32  ;;  %v106_v51 = vld [vmem:[%s8669_s23 + $0xf0] sm:$0xff]  ;;  %v107_v52 = vld [vmem:[%s8669_s23 + $0xf8] sm:$0xff]  ;;  %v96_v53 = vld [vmem:[%s8669_s23 + $0xa0] sm:$0xff] }
  0x28   :  { %4360 = vmatmul.msk.f32.vlgmr.msra.gmra.mxu2 %vm158_vm0, %v5198_v32  ;;  %4361 = vmatmul.msk.f32.vlgmr.msra.gmra.mxu3 %vm158_vm0, %v5198_v32  ;;  %v97_v54 = vld [vmem:[%s8669_s23 + $0xa8] sm:$0xff]  ;;  %v98_v55 = vld [vmem:[%s8669_s23 + $0xb0] sm:$0xff]  ;;  %v99_v56 = vld [vmem:[%s8669_s23 + $0xb8] sm:$0xff] }
  0x29   :  { %250 = vmatpush.msrb.mxu0 %v136_v33  ;;  %270 = vmatpush.msrb.mxu1 %v137_v34  ;;  %v88_v57 = vld [vmem:[%s8669_s23 + $0x60] sm:$0xff]  ;;  %v89_v58 = vld [vmem:[%s8669_s23 + $0x68] sm:$0xff]  ;;  %v90_v59 = vld [vmem:[%s8669_s23 + $0x70] sm:$0xff] }
  0x2a   :  { %290 = vmatpush.msrb.mxu2 %v138_v35  ;;  %310 = vmatpush.msrb.mxu3 %v139_v36  ;;  %v91_v60 = vld [vmem:[%s8669_s23 + $0x78] sm:$0xff]  ;;  %v80_v61 = vld [vmem:[%s8669_s23 + $0x20] sm:$0xff]  ;;  %v81_v62 = vld [vmem:[%s8669_s23 + $0x28] sm:$0xff] }
  0x2b   :  { %251 = vmatpush.msrb.mxu0 %v128_v37  ;;  %271 = vmatpush.msrb.mxu1 %v129_v38  ;;  %v82_v63 = vld [vmem:[%s8669_s23 + $0x30] sm:$0xff]  ;;  %v83_v0 = vld [vmem:[%s8669_s23 + $0x38] sm:$0xff]  ;;  %v414_v5 = vld [vmem:[%s8634_s5 + $0xe0] sm:$0xff] }
  0x2c   :  { %291 = vmatpush.msrb.mxu2 %v130_v39  ;;  %311 = vmatpush.msrb.mxu3 %v131_v40  ;;  %v416_v1 = vld [vmem:[%s8634_s5 + $0xf0] sm:$0xff]  ;;  %v446_v6 = vld [vmem:[%s8634_s5 + $0x1e0] sm:$0xff] }
  0x2d   :  { %252 = vmatpush.msrb.mxu0 %v120_v41  ;;  %272 = vmatpush.msrb.mxu1 %v121_v42  ;;  %v448_v2 = vld [vmem:[%s8634_s5 + $0x1f0] sm:$0xff]  ;;  %v478_v7 = vld [vmem:[%s8634_s5 + $0x2e0] sm:$0xff] }
  0x2e   :  { %292 = vmatpush.msrb.mxu2 %v122_v43  ;;  %312 = vmatpush.msrb.mxu3 %v123_v44  ;;  %v480_v3 = vld [vmem:[%s8634_s5 + $0x2f0] sm:$0xff]  ;;  %v510_v8 = vld [vmem:[%s8634_s5 + $0x3e0] sm:$0xff] }
  0x2f   :  { %253 = vmatpush.msrb.mxu0 %v112_v45  ;;  %273 = vmatpush.msrb.mxu1 %v113_v46  ;;  %v512_v4 = vld [vmem:[%s8634_s5 + $0x3f0] sm:$0xff]  ;;  %v410_v13 = vld [vmem:[%s8634_s5 + $0xc0] sm:$0xff] }
  0x30   :  { %293 = vmatpush.msrb.mxu2 %v114_v47  ;;  %313 = vmatpush.msrb.mxu3 %v115_v48  ;;  %v412_v9 = vld [vmem:[%s8634_s5 + $0xd0] sm:$0xff]  ;;  %v442_v14 = vld [vmem:[%s8634_s5 + $0x1c0] sm:$0xff] }
  0x31   :  { %254 = vmatpush.msrb.mxu0 %v104_v49  ;;  %274 = vmatpush.msrb.mxu1 %v105_v50  ;;  %v444_v10 = vld [vmem:[%s8634_s5 + $0x1d0] sm:$0xff]  ;;  %v474_v15 = vld [vmem:[%s8634_s5 + $0x2c0] sm:$0xff] }
  0x32   :  { %294 = vmatpush.msrb.mxu2 %v106_v51  ;;  %314 = vmatpush.msrb.mxu3 %v107_v52  ;;  %v476_v11 = vld [vmem:[%s8634_s5 + $0x2d0] sm:$0xff]  ;;  %v506_v16 = vld [vmem:[%s8634_s5 + $0x3c0] sm:$0xff] }
  0x33   :  { %255 = vmatpush.msrb.mxu0 %v96_v53  ;;  %275 = vmatpush.msrb.mxu1 %v97_v54  ;;  %v508_v12 = vld [vmem:[%s8634_s5 + $0x3d0] sm:$0xff]  ;;  %v406_v21 = vld [vmem:[%s8634_s5 + $0xa0] sm:$0xff] }
  0x34   :  { %295 = vmatpush.msrb.mxu2 %v98_v55  ;;  %315 = vmatpush.msrb.mxu3 %v99_v56  ;;  %v408_v17 = vld [vmem:[%s8634_s5 + $0xb0] sm:$0xff]  ;;  %v438_v22 = vld [vmem:[%s8634_s5 + $0x1a0] sm:$0xff] }
  0x35   :  { %256 = vmatpush.msrb.mxu0 %v88_v57  ;;  %276 = vmatpush.msrb.mxu1 %v89_v58  ;;  %v440_v18 = vld [vmem:[%s8634_s5 + $0x1b0] sm:$0xff]  ;;  %v470_v23 = vld [vmem:[%s8634_s5 + $0x2a0] sm:$0xff] }
  0x36   :  { %296 = vmatpush.msrb.mxu2 %v90_v59  ;;  %316 = vmatpush.msrb.mxu3 %v91_v60  ;;  %v472_v19 = vld [vmem:[%s8634_s5 + $0x2b0] sm:$0xff]  ;;  %v502_v24 = vld [vmem:[%s8634_s5 + $0x3a0] sm:$0xff] }
  0x37   :  { %257 = vmatpush.msrb.mxu0 %v80_v61  ;;  %277 = vmatpush.msrb.mxu1 %v81_v62  ;;  %v504_v20 = vld [vmem:[%s8634_s5 + $0x3b0] sm:$0xff]  ;;  %v402_v29 = vld [vmem:[%s8634_s5 + $0x80] sm:$0xff] }
  0x38   :  { %297 = vmatpush.msrb.mxu2 %v82_v63  ;;  %317 = vmatpush.msrb.mxu3 %v83_v0  ;;  %v404_v25 = vld [vmem:[%s8634_s5 + $0x90] sm:$0xff]  ;;  %v434_v30 = vld [vmem:[%s8634_s5 + $0x180] sm:$0xff] }
  0x39   :  { %4362 = vmatmul.msk.f32.vlgmr.msrb.gmra.mxu0 %vm158_vm0, %v5198_v32  ;;  %4363 = vmatmul.msk.f32.vlgmr.msrb.gmra.mxu1 %vm158_vm0, %v5198_v32  ;;  %v436_v26 = vld [vmem:[%s8634_s5 + $0x190] sm:$0xff]  ;;  %v466_v31 = vld [vmem:[%s8634_s5 + $0x280] sm:$0xff] }
  0x3a   :  { %4364 = vmatmul.msk.f32.vlgmr.msrb.gmra.mxu2 %vm158_vm0, %v5198_v32  ;;  %4365 = vmatmul.msk.f32.vlgmr.msrb.gmra.mxu3 %vm158_vm0, %v5198_v32  ;;  %v468_v27 = vld [vmem:[%s8634_s5 + $0x290] sm:$0xff]  ;;  %v498_v32 = vld [vmem:[%s8634_s5 + $0x380] sm:$0xff] }
  0x3b   :  { %642 = vmatpush.msra.mxu0 %v416_v1  ;;  %665 = vmatpush.msra.mxu1 %v448_v2  ;;  %v500_v28 = vld [vmem:[%s8634_s5 + $0x390] sm:$0xff]  ;;  %v398_v37 = vld [vmem:[%s8634_s5 + $0x60] sm:$0xff] }
  0x3c   :  { %688 = vmatpush.msra.mxu2 %v480_v3  ;;  %711 = vmatpush.msra.mxu3 %v512_v4  ;;  %v400_v33 = vld [vmem:[%s8634_s5 + $0x70] sm:$0xff]  ;;  %v430_v38 = vld [vmem:[%s8634_s5 + $0x160] sm:$0xff] }
  0x3d   :  { %643 = vmatpush.msra.mxu0 %v414_v5  ;;  %666 = vmatpush.msra.mxu1 %v446_v6  ;;  %v432_v34 = vld [vmem:[%s8634_s5 + $0x170] sm:$0xff]  ;;  %v462_v39 = vld [vmem:[%s8634_s5 + $0x260] sm:$0xff] }
  0x3e   :  { %689 = vmatpush.msra.mxu2 %v478_v7  ;;  %712 = vmatpush.msra.mxu3 %v510_v8  ;;  %v464_v35 = vld [vmem:[%s8634_s5 + $0x270] sm:$0xff]  ;;  %v494_v40 = vld [vmem:[%s8634_s5 + $0x360] sm:$0xff] }
  0x3f   :  { %644 = vmatpush.msra.mxu0 %v412_v9  ;;  %667 = vmatpush.msra.mxu1 %v444_v10  ;;  %v496_v36 = vld [vmem:[%s8634_s5 + $0x370] sm:$0xff]  ;;  %v394_v45 = vld [vmem:[%s8634_s5 + $0x40] sm:$0xff] }
  0x40   :  { %690 = vmatpush.msra.mxu2 %v476_v11  ;;  %713 = vmatpush.msra.mxu3 %v508_v12  ;;  %v396_v41 = vld [vmem:[%s8634_s5 + $0x50] sm:$0xff]  ;;  %v426_v46 = vld [vmem:[%s8634_s5 + $0x140] sm:$0xff] }
  0x41   :  { %645 = vmatpush.msra.mxu0 %v410_v13  ;;  %668 = vmatpush.msra.mxu1 %v442_v14  ;;  %v428_v42 = vld [vmem:[%s8634_s5 + $0x150] sm:$0xff]  ;;  %v458_v47 = vld [vmem:[%s8634_s5 + $0x240] sm:$0xff] }
  0x42   :  { %691 = vmatpush.msra.mxu2 %v474_v15  ;;  %714 = vmatpush.msra.mxu3 %v506_v16  ;;  %v460_v43 = vld [vmem:[%s8634_s5 + $0x250] sm:$0xff]  ;;  %v490_v48 = vld [vmem:[%s8634_s5 + $0x340] sm:$0xff] }
  0x43   :  { %646 = vmatpush.msra.mxu0 %v408_v17  ;;  %669 = vmatpush.msra.mxu1 %v440_v18  ;;  %v492_v44 = vld [vmem:[%s8634_s5 + $0x350] sm:$0xff]  ;;  %v390_v53 = vld [vmem:[%s8634_s5 + $0x20] sm:$0xff] }
  0x44   :  { %692 = vmatpush.msra.mxu2 %v472_v19  ;;  %715 = vmatpush.msra.mxu3 %v504_v20  ;;  %v392_v49 = vld [vmem:[%s8634_s5 + $0x30] sm:$0xff]  ;;  %v422_v54 = vld [vmem:[%s8634_s5 + $0x120] sm:$0xff] }
  0x45   :  { %647 = vmatpush.msra.mxu0 %v406_v21  ;;  %670 = vmatpush.msra.mxu1 %v438_v22  ;;  %v424_v50 = vld [vmem:[%s8634_s5 + $0x130] sm:$0xff]  ;;  %v454_v55 = vld [vmem:[%s8634_s5 + $0x220] sm:$0xff] }
  0x46   :  { %693 = vmatpush.msra.mxu2 %v470_v23  ;;  %716 = vmatpush.msra.mxu3 %v502_v24  ;;  %v456_v51 = vld [vmem:[%s8634_s5 + $0x230] sm:$0xff]  ;;  %v486_v56 = vld [vmem:[%s8634_s5 + $0x320] sm:$0xff] }
  0x47   :  { %648 = vmatpush.msra.mxu0 %v404_v25  ;;  %671 = vmatpush.msra.mxu1 %v436_v26  ;;  %v488_v52 = vld [vmem:[%s8634_s5 + $0x330] sm:$0xff]  ;;  %v386_v61 = vld [vmem:[%s8634_s5] sm:$0xff] }
  0x48   :  { %694 = vmatpush.msra.mxu2 %v468_v27  ;;  %717 = vmatpush.msra.mxu3 %v500_v28  ;;  %v388_v57 = vld [vmem:[%s8634_s5 + $0x10] sm:$0xff]  ;;  %v418_v62 = vld [vmem:[%s8634_s5 + $0x100] sm:$0xff] }
  0x49   :  { %649 = vmatpush.msra.mxu0 %v402_v29  ;;  %672 = vmatpush.msra.mxu1 %v434_v30  ;;  %v420_v58 = vld [vmem:[%s8634_s5 + $0x110] sm:$0xff]  ;;  %v450_v1 = vld [vmem:[%s8634_s5 + $0x200] sm:$0xff] }
  0x4a   :  { %695 = vmatpush.msra.mxu2 %v466_v31  ;;  %718 = vmatpush.msra.mxu3 %v498_v32  ;;  %v452_v59 = vld [vmem:[%s8634_s5 + $0x210] sm:$0xff]  ;;  %v482_v2 = vld [vmem:[%s8634_s5 + $0x300] sm:$0xff] }
  0x4b   :  { %650 = vmatpush.msra.mxu0 %v400_v33  ;;  %673 = vmatpush.msra.mxu1 %v432_v34  ;;  %v484_v60 = vld [vmem:[%s8634_s5 + $0x310] sm:$0xff]  ;;  %v542_v3 = vld [vmem:[%s8634_s5 + $0x4e0] sm:$0xff] }
  0x4c   :  { %696 = vmatpush.msra.mxu2 %v464_v35  ;;  %719 = vmatpush.msra.mxu3 %v496_v36  ;;  %v544_v63 = vld [vmem:[%s8634_s5 + $0x4f0] sm:$0xff]  ;;  %v574_v4 = vld [vmem:[%s8634_s5 + $0x5e0] sm:$0xff] }
  0x4d   :  { %651 = vmatpush.msra.mxu0 %v398_v37  ;;  %674 = vmatpush.msra.mxu1 %v430_v38  ;;  %v576_v0 = vld [vmem:[%s8634_s5 + $0x5f0] sm:$0xff]  ;;  %v606_v9 = vld [vmem:[%s8634_s5 + $0x6e0] sm:$0xff] }
  0x4e   :  { %697 = vmatpush.msra.mxu2 %v462_v39  ;;  %720 = vmatpush.msra.mxu3 %v494_v40  ;;  %v608_v5 = vld [vmem:[%s8634_s5 + $0x6f0] sm:$0xff]  ;;  %v638_v10 = vld [vmem:[%s8634_s5 + $0x7e0] sm:$0xff] }
  0x4f   :  { %652 = vmatpush.msra.mxu0 %v396_v41  ;;  %675 = vmatpush.msra.mxu1 %v428_v42  ;;  %v640_v6 = vld [vmem:[%s8634_s5 + $0x7f0] sm:$0xff]  ;;  %v538_v11 = vld [vmem:[%s8634_s5 + $0x4c0] sm:$0xff] }
  0x50   :  { %698 = vmatpush.msra.mxu2 %v460_v43  ;;  %721 = vmatpush.msra.mxu3 %v492_v44  ;;  %v540_v7 = vld [vmem:[%s8634_s5 + $0x4d0] sm:$0xff]  ;;  %v570_v12 = vld [vmem:[%s8634_s5 + $0x5c0] sm:$0xff] }
  0x51   :  { %653 = vmatpush.msra.mxu0 %v394_v45  ;;  %676 = vmatpush.msra.mxu1 %v426_v46  ;;  %v572_v8 = vld [vmem:[%s8634_s5 + $0x5d0] sm:$0xff]  ;;  %v602_v17 = vld [vmem:[%s8634_s5 + $0x6c0] sm:$0xff] }
  0x52   :  { %699 = vmatpush.msra.mxu2 %v458_v47  ;;  %722 = vmatpush.msra.mxu3 %v490_v48  ;;  %v604_v13 = vld [vmem:[%s8634_s5 + $0x6d0] sm:$0xff]  ;;  %v634_v18 = vld [vmem:[%s8634_s5 + $0x7c0] sm:$0xff] }
  0x53   :  { %654 = vmatpush.msra.mxu0 %v392_v49  ;;  %677 = vmatpush.msra.mxu1 %v424_v50  ;;  %v636_v14 = vld [vmem:[%s8634_s5 + $0x7d0] sm:$0xff]  ;;  %v534_v19 = vld [vmem:[%s8634_s5 + $0x4a0] sm:$0xff] }
  0x54   :  { %700 = vmatpush.msra.mxu2 %v456_v51  ;;  %723 = vmatpush.msra.mxu3 %v488_v52  ;;  %v536_v15 = vld [vmem:[%s8634_s5 + $0x4b0] sm:$0xff]  ;;  %v566_v20 = vld [vmem:[%s8634_s5 + $0x5a0] sm:$0xff] }
  0x55   :  { %655 = vmatpush.msra.mxu0 %v390_v53  ;;  %678 = vmatpush.msra.mxu1 %v422_v54  ;;  %v568_v16 = vld [vmem:[%s8634_s5 + $0x5b0] sm:$0xff]  ;;  %v598_v25 = vld [vmem:[%s8634_s5 + $0x6a0] sm:$0xff] }
  0x56   :  { %701 = vmatpush.msra.mxu2 %v454_v55  ;;  %724 = vmatpush.msra.mxu3 %v486_v56  ;;  %v600_v21 = vld [vmem:[%s8634_s5 + $0x6b0] sm:$0xff]  ;;  %v630_v26 = vld [vmem:[%s8634_s5 + $0x7a0] sm:$0xff] }
  0x57   :  { %656 = vmatpush.msra.mxu0 %v388_v57  ;;  %679 = vmatpush.msra.mxu1 %v420_v58  ;;  %v632_v22 = vld [vmem:[%s8634_s5 + $0x7b0] sm:$0xff]  ;;  %v530_v27 = vld [vmem:[%s8634_s5 + $0x480] sm:$0xff] }
  0x58   :  { %702 = vmatpush.msra.mxu2 %v452_v59  ;;  %725 = vmatpush.msra.mxu3 %v484_v60  ;;  %v532_v23 = vld [vmem:[%s8634_s5 + $0x490] sm:$0xff]  ;;  %v562_v28 = vld [vmem:[%s8634_s5 + $0x580] sm:$0xff]  ;;  %v323_v60 = vld [vmem:[%s8671_s24 + $0x8] sm:$0xff] }
  0x59   :  { %657 = vmatpush.msra.mxu0 %v386_v61  ;;  %680 = vmatpush.msra.mxu1 %v418_v62  ;;  %v564_v24 = vld [vmem:[%s8634_s5 + $0x590] sm:$0xff]  ;;  %v594_v33 = vld [vmem:[%s8634_s5 + $0x680] sm:$0xff]  ;;  %332 = vst [vmem:[#allocation1 + $0x10] ss:$2 sm:$0xff] %v323_v60 }
  0x5a   :  { %703 = vmatpush.msra.mxu2 %v450_v1  ;;  %726 = vmatpush.msra.mxu3 %v482_v2  ;;  %v596_v29 = vld [vmem:[%s8634_s5 + $0x690] sm:$0xff]  ;;  %v626_v34 = vld [vmem:[%s8634_s5 + $0x780] sm:$0xff] }
  0x5b   :  { %734 = vmatpush.msrb.mxu0 %v544_v63  ;;  %757 = vmatpush.msrb.mxu1 %v576_v0  ;;  %v628_v30 = vld [vmem:[%s8634_s5 + $0x790] sm:$0xff]  ;;  %v526_v35 = vld [vmem:[%s8634_s5 + $0x460] sm:$0xff] }
  0x5c   :  { %780 = vmatpush.msrb.mxu2 %v608_v5  ;;  %803 = vmatpush.msrb.mxu3 %v640_v6  ;;  %v528_v31 = vld [vmem:[%s8634_s5 + $0x470] sm:$0xff]  ;;  %v558_v36 = vld [vmem:[%s8634_s5 + $0x560] sm:$0xff] }
  0x5d   :  { %735 = vmatpush.msrb.mxu0 %v542_v3  ;;  %758 = vmatpush.msrb.mxu1 %v574_v4  ;;  %v560_v32 = vld [vmem:[%s8634_s5 + $0x570] sm:$0xff]  ;;  %v590_v41 = vld [vmem:[%s8634_s5 + $0x660] sm:$0xff]  ;;  %v325_v4 = vld [vmem:[%s8671_s24 + $0x18] sm:$0xff] }
  0x5e   :  { %781 = vmatpush.msrb.mxu2 %v606_v9  ;;  %804 = vmatpush.msrb.mxu3 %v638_v10  ;;  %v592_v37 = vld [vmem:[%s8634_s5 + $0x670] sm:$0xff]  ;;  %v622_v42 = vld [vmem:[%s8634_s5 + $0x760] sm:$0xff]  ;;  %336 = vst [vmem:[#allocation1 + $0x30] ss:$2 sm:$0xff] %v325_v4 }
  0x5f   :  { %736 = vmatpush.msrb.mxu0 %v540_v7  ;;  %759 = vmatpush.msrb.mxu1 %v572_v8  ;;  %v624_v38 = vld [vmem:[%s8634_s5 + $0x770] sm:$0xff]  ;;  %v522_v43 = vld [vmem:[%s8634_s5 + $0x440] sm:$0xff] }
  0x60   :  { %782 = vmatpush.msrb.mxu2 %v604_v13  ;;  %805 = vmatpush.msrb.mxu3 %v636_v14  ;;  %v524_v39 = vld [vmem:[%s8634_s5 + $0x450] sm:$0xff]  ;;  %v554_v44 = vld [vmem:[%s8634_s5 + $0x540] sm:$0xff] }
  0x61   :  { %737 = vmatpush.msrb.mxu0 %v538_v11  ;;  %760 = vmatpush.msrb.mxu1 %v570_v12  ;;  %v556_v40 = vld [vmem:[%s8634_s5 + $0x550] sm:$0xff]  ;;  %v322_v47 = vld [vmem:[%s8671_s24] sm:$0xff] }
  0x62   :  { %783 = vmatpush.msrb.mxu2 %v602_v17  ;;  %806 = vmatpush.msrb.mxu3 %v634_v18  ;;  %v520_v45 = vld [vmem:[%s8634_s5 + $0x430] sm:$0xff]  ;;  %330 = vst [vmem:[#allocation1] ss:$2 sm:$0xff] %v322_v47  ;;  %v518_v48 = vld [vmem:[%s8634_s5 + $0x420] sm:$0xff]  ;;  %v417_v18 = vld [vmem:[%s8634_s5 + $0xf8] sm:$0xff] }
  0x63   :  { %738 = vmatpush.msrb.mxu0 %v536_v15  ;;  %761 = vmatpush.msrb.mxu1 %v568_v16  ;;  %v552_v46 = vld [vmem:[%s8634_s5 + $0x530] sm:$0xff]  ;;  %v550_v49 = vld [vmem:[%s8634_s5 + $0x520] sm:$0xff]  ;;  %v439_v47 = vld [vmem:[%s8634_s5 + $0x1a8] sm:$0xff] }
  0x64   :  { %784 = vmatpush.msrb.mxu2 %v600_v21  ;;  %807 = vmatpush.msrb.mxu3 %v632_v22  ;;  %v588_v50 = vld [vmem:[%s8634_s5 + $0x650] sm:$0xff]  ;;  %v586_v54 = vld [vmem:[%s8634_s5 + $0x640] sm:$0xff]  ;;  %v415_v22 = vld [vmem:[%s8634_s5 + $0xe8] sm:$0xff] }
  0x65   :  { %739 = vmatpush.msrb.mxu0 %v534_v19  ;;  %762 = vmatpush.msrb.mxu1 %v566_v20  ;;  %v620_v51 = vld [vmem:[%s8634_s5 + $0x750] sm:$0xff]  ;;  %v618_v55 = vld [vmem:[%s8634_s5 + $0x740] sm:$0xff]  ;;  %v449_v19 = vld [vmem:[%s8634_s5 + $0x1f8] sm:$0xff] }
  0x66   :  { %785 = vmatpush.msrb.mxu2 %v598_v25  ;;  %808 = vmatpush.msrb.mxu3 %v630_v26  ;;  %v516_v52 = vld [vmem:[%s8634_s5 + $0x410] sm:$0xff]  ;;  %v514_v56 = vld [vmem:[%s8634_s5 + $0x400] sm:$0xff] }
  0x67   :  { %740 = vmatpush.msrb.mxu0 %v532_v23  ;;  %763 = vmatpush.msrb.mxu1 %v564_v24  ;;  %v548_v53 = vld [vmem:[%s8634_s5 + $0x510] sm:$0xff]  ;;  %v546_v57 = vld [vmem:[%s8634_s5 + $0x500] sm:$0xff]  ;;  %v447_v23 = vld [vmem:[%s8634_s5 + $0x1e8] sm:$0xff] }
  0x68   :  { %786 = vmatpush.msrb.mxu2 %v596_v29  ;;  %809 = vmatpush.msrb.mxu3 %v628_v30  ;;  %v584_v58 = vld [vmem:[%s8634_s5 + $0x630] sm:$0xff]  ;;  %v582_v61 = vld [vmem:[%s8634_s5 + $0x620] sm:$0xff]  ;;  %v445_v29 = vld [vmem:[%s8634_s5 + $0x1d8] sm:$0xff] }
  0x69   :  { %741 = vmatpush.msrb.mxu0 %v530_v27  ;;  %764 = vmatpush.msrb.mxu1 %v562_v28  ;;  %v616_v59 = vld [vmem:[%s8634_s5 + $0x730] sm:$0xff]  ;;  %v614_v62 = vld [vmem:[%s8634_s5 + $0x720] sm:$0xff]  ;;  %v338_v13 = vld.sshfl [vmem:[#allocation1 + $0x8] sm:$0xff pattern:$0x75316420] }
  0x6a   :  { %787 = vmatpush.msrb.mxu2 %v594_v33  ;;  %810 = vmatpush.msrb.mxu3 %v626_v34  ;;  %v580_v63 = vld [vmem:[%s8634_s5 + $0x610] sm:$0xff]  ;;  %v578_v1 = vld [vmem:[%s8634_s5 + $0x600] sm:$0xff]  ;;  %v413_v28 = vld [vmem:[%s8634_s5 + $0xd8] sm:$0xff] }
  0x6b   :  { %742 = vmatpush.msrb.mxu0 %v528_v31  ;;  %765 = vmatpush.msrb.mxu1 %v560_v32  ;;  %v612_v0 = vld [vmem:[%s8634_s5 + $0x710] sm:$0xff]  ;;  %v610_v2 = vld [vmem:[%s8634_s5 + $0x700] sm:$0xff]  ;;  %v340_v31 = vld.sshfl [vmem:[#allocation1 + $0x18] sm:$0xff pattern:$0x75316420] }
  0x6c   :  { %788 = vmatpush.msrb.mxu2 %v592_v37  ;;  %811 = vmatpush.msrb.mxu3 %v624_v38  ;;  %v324_v3 = vld [vmem:[%s8671_s24 + $0x10] sm:$0xff]  ;;  %v5711_v5 = vld [vmem:[%s8633_s4] sm:$0xff]  ;;  %v411_v34 = vld [vmem:[%s8634_s5 + $0xc8] sm:$0xff] }
  0x6d   :  { %743 = vmatpush.msrb.mxu0 %v526_v35  ;;  %766 = vmatpush.msrb.mxu1 %v558_v36  ;;  %334 = vst [vmem:[#allocation1 + $0x20] ss:$2 sm:$0xff] %v324_v3  ;;  %v142_v6 = vperm.slane %v5711_v5, 0  ;;  %v143_v7 = vperm.slane %v5711_v5, 1  ;;  %v144_v16 = vperm.slane %v5711_v5, 2  ;;  %v145_v17 = vperm.slane %v5711_v5, 3 }
  0x6e   :  { %789 = vmatpush.msrb.mxu2 %v590_v41  ;;  %812 = vmatpush.msrb.mxu3 %v622_v42  ;;  %v337_v12 = vld.sshfl [vmem:[#allocation1] sm:$0xff pattern:$0x75316420]  ;;  %v339_v30 = vld.sshfl [vmem:[#allocation1 + $0x10] sm:$0xff pattern:$0x75316420] }
  0x6f   :  { %744 = vmatpush.msrb.mxu0 %v524_v39  ;;  %767 = vmatpush.msrb.mxu1 %v556_v40  ;;  %v443_v35 = vld [vmem:[%s8634_s5 + $0x1c8] sm:$0xff]  ;;  %v481_v38 = vld [vmem:[%s8634_s5 + $0x2f8] sm:$0xff]  ;;  %v149_v3 = vperm.slane %v5711_v5, 7 }
  0x70   :  { %790 = vmatpush.msrb.mxu2 %v588_v50  ;;  %813 = vmatpush.msrb.mxu3 %v620_v51  ;;  %v513_v39 = vld [vmem:[%s8634_s5 + $0x3f8] sm:$0xff]  ;;  %v479_v42 = vld [vmem:[%s8634_s5 + $0x2e8] sm:$0xff] }
  0x71   :  { %745 = vmatpush.msrb.mxu0 %v522_v43  ;;  %768 = vmatpush.msrb.mxu1 %v554_v44  ;;  %v409_v40 = vld [vmem:[%s8634_s5 + $0xb8] sm:$0xff]  ;;  %v511_v43 = vld [vmem:[%s8634_s5 + $0x3e8] sm:$0xff]  ;;  %v146_v44 = vperm.slane %v5711_v5, 4 }
  0x72   :  { %791 = vmatpush.msrb.mxu2 %v586_v54  ;;  %814 = vmatpush.msrb.mxu3 %v618_v55  ;;  %v441_v41 = vld [vmem:[%s8634_s5 + $0x1b8] sm:$0xff] }
  0x73   :  { %746 = vmatpush.msrb.mxu0 %v520_v45  ;;  %769 = vmatpush.msrb.mxu1 %v552_v46  ;;  %v147_v45 = vperm.slane %v5711_v5, 5  ;;  %v407_v46 = vld [vmem:[%s8634_s5 + $0xa8] sm:$0xff] }
  0x74   :  { %792 = vmatpush.msrb.mxu2 %v584_v58  ;;  %815 = vmatpush.msrb.mxu3 %v616_v59  ;;  %v341_v58 = vld.sshfl [vmem:[#allocation1 + $0x20] sm:$0xff pattern:$0x75316420]  ;;  %v342_v59 = vld.sshfl [vmem:[#allocation1 + $0x28] sm:$0xff pattern:$0x75316420] }
  0x75   :  { %747 = vmatpush.msrb.mxu0 %v518_v48  ;;  %770 = vmatpush.msrb.mxu1 %v550_v49  ;;  %v477_v48 = vld [vmem:[%s8634_s5 + $0x2d8] sm:$0xff] }
  0x76   :  { %793 = vmatpush.msrb.mxu2 %v582_v61  ;;  %816 = vmatpush.msrb.mxu3 %v614_v62  ;;  %v509_v49 = vld [vmem:[%s8634_s5 + $0x3d8] sm:$0xff]  ;;  %v403_v62 = vld [vmem:[%s8634_s5 + $0x88] sm:$0xff] }
  0x77   :  { %748 = vmatpush.msrb.mxu0 %v516_v52  ;;  %771 = vmatpush.msrb.mxu1 %v548_v53  ;;  %v405_v52 = vld [vmem:[%s8634_s5 + $0x98] sm:$0xff] }
  0x78   :  { %794 = vmatpush.msrb.mxu2 %v580_v63  ;;  %817 = vmatpush.msrb.mxu3 %v612_v0  ;;  %v437_v53 = vld [vmem:[%s8634_s5 + $0x198] sm:$0xff]  ;;  %v435_v63 = vld [vmem:[%s8634_s5 + $0x188] sm:$0xff] }
  0x79   :  { %749 = vmatpush.msrb.mxu0 %v514_v56  ;;  %772 = vmatpush.msrb.mxu1 %v546_v57  ;;  %v475_v56 = vld [vmem:[%s8634_s5 + $0x2c8] sm:$0xff]  ;;  %v473_v0 = vld [vmem:[%s8634_s5 + $0x2b8] sm:$0xff] }
  0x7a   :  { %795 = vmatpush.msrb.mxu2 %v578_v1  ;;  %818 = vmatpush.msrb.mxu3 %v610_v2  ;;  %v507_v57 = vld [vmem:[%s8634_s5 + $0x3c8] sm:$0xff]  ;;  %v505_v1 = vld [vmem:[%s8634_s5 + $0x3b8] sm:$0xff]  ;;  %v148_v2 = vperm.slane %v5711_v5, 6 }
  0x7b   :  { %v433_v5 = vld [vmem:[%s8634_s5 + $0x178] sm:$0xff] }
  0xa4   :  { %v179_v8 = vpop.f32.mrf.mxu0  ;;  %v199_v9 = vpop.f32.mrf.mxu1 }
  0xa5   :  { %v180_v10 = vadd.f32 %v179_v8, %v142_v6  ;;  %v200_v11 = vadd.f32 %v199_v9, %v143_v7  ;;  %v401_v7 = vld [vmem:[%s8634_s5 + $0x78] sm:$0xff] }
  0xa7   :  { %v5715_v14 = vrot.slane %v180_v10, 4  ;;  %v5717_v15 = vrot.slane %v200_v11, 4  ;;  %v471_v10 = vld [vmem:[%s8634_s5 + $0x2a8] sm:$0xff] }
  0xa8   :  { %v503_v11 = vld [vmem:[%s8634_s5 + $0x3a8] sm:$0xff] }
  0xa9   :  { %v5729_v20 = vsel %vm8660_vm1, %v337_v12, %v5715_v14  ;;  %v5733_v21 = vsel %vm8660_vm1, %v338_v13, %v5717_v15  ;;  %v399_v12 = vld [vmem:[%s8634_s5 + $0x68] sm:$0xff] }
  0xaa   :  { %658 = vmatmul.f32.vlgmr.msra.gmra.mxu0 %v5729_v20  ;;  %681 = vmatmul.f32.vlgmr.msra.gmra.mxu1 %v5733_v21 }
  0xab   :  { %v219_v24 = vpop.f32.mrf.mxu2  ;;  %v239_v25 = vpop.f32.mrf.mxu3  ;;  %826 = vmatpush.msra.mxu0 %v417_v18  ;;  %849 = vmatpush.msra.mxu1 %v449_v19  ;;  %v469_v18 = vld [vmem:[%s8634_s5 + $0x298] sm:$0xff] }
  0xac   :  { %v220_v26 = vadd.f32 %v219_v24, %v144_v16  ;;  %v240_v27 = vadd.f32 %v239_v25, %v145_v17  ;;  %v431_v17 = vld [vmem:[%s8634_s5 + $0x168] sm:$0xff]  ;;  %v501_v19 = vld [vmem:[%s8634_s5 + $0x398] sm:$0xff] }
  0xad   :  { %827 = vmatpush.msra.mxu0 %v415_v22  ;;  %850 = vmatpush.msra.mxu1 %v447_v23  ;;  %v343_v22 = vld.sshfl [vmem:[#allocation1 + $0x30] sm:$0xff pattern:$0x75316420]  ;;  %v344_v23 = vld.sshfl [vmem:[#allocation1 + $0x38] sm:$0xff pattern:$0x75316420] }
  0xae   :  { %v5749_v32 = vrot.slane %v220_v26, 4  ;;  %v5751_v33 = vrot.slane %v240_v27, 4  ;;  %v397_v26 = vld [vmem:[%s8634_s5 + $0x58] sm:$0xff] }
  0xaf   :  { %828 = vmatpush.msra.mxu0 %v413_v28  ;;  %851 = vmatpush.msra.mxu1 %v445_v29  ;;  %v429_v27 = vld [vmem:[%s8634_s5 + $0x158] sm:$0xff]  ;;  %v467_v28 = vld [vmem:[%s8634_s5 + $0x288] sm:$0xff] }
  0xb0   :  { %v5761_v36 = vsel %vm8660_vm1, %v339_v30, %v5749_v32  ;;  %v5765_v37 = vsel %vm8660_vm1, %v340_v31, %v5751_v33  ;;  %v499_v29 = vld [vmem:[%s8634_s5 + $0x388] sm:$0xff] }
  0xb1   :  { %704 = vmatmul.f32.vlgmr.msra.gmra.mxu2 %v5761_v36  ;;  %727 = vmatmul.f32.vlgmr.msra.gmra.mxu3 %v5765_v37 }
  0xb2   :  { %829 = vmatpush.msra.mxu0 %v411_v34  ;;  %852 = vmatpush.msra.mxu1 %v443_v35  ;;  %v395_v34 = vld [vmem:[%s8634_s5 + $0x48] sm:$0xff] }
  0xb3   :  { %872 = vmatpush.msra.mxu2 %v481_v38  ;;  %895 = vmatpush.msra.mxu3 %v513_v39  ;;  %v427_v35 = vld [vmem:[%s8634_s5 + $0x148] sm:$0xff]  ;;  %v465_v38 = vld [vmem:[%s8634_s5 + $0x278] sm:$0xff] }
  0xb4   :  { %661 = vmatmul.f32.gmra.mxu0 %v5715_v14  ;;  %684 = vmatmul.f32.gmra.mxu1 %v5717_v15  ;;  %v497_v39 = vld [vmem:[%s8634_s5 + $0x378] sm:$0xff] }
  0xb5   :  { %830 = vmatpush.msra.mxu0 %v409_v40  ;;  %853 = vmatpush.msra.mxu1 %v441_v41  ;;  %v393_v40 = vld [vmem:[%s8634_s5 + $0x38] sm:$0xff] }
  0xb6   :  { %873 = vmatpush.msra.mxu2 %v479_v42  ;;  %896 = vmatpush.msra.mxu3 %v511_v43  ;;  %v259_v50 = vpop.f32.mrf.mxu0  ;;  %v279_v51 = vpop.f32.mrf.mxu1  ;;  %v425_v41 = vld [vmem:[%s8634_s5 + $0x138] sm:$0xff]  ;;  %v463_v42 = vld [vmem:[%s8634_s5 + $0x268] sm:$0xff] }
  0xb7   :  { %v260_v54 = vadd.f32 %v259_v50, %v146_v44  ;;  %v280_v55 = vadd.f32 %v279_v51, %v147_v45  ;;  %831 = vmatpush.msra.mxu0 %v407_v46  ;;  %854 = vmatpush.msra.mxu1 %v439_v47  ;;  %v495_v43 = vld [vmem:[%s8634_s5 + $0x368] sm:$0xff]  ;;  %v461_v46 = vld [vmem:[%s8634_s5 + $0x258] sm:$0xff] }
  0xb8   :  { %874 = vmatpush.msra.mxu2 %v477_v48  ;;  %897 = vmatpush.msra.mxu3 %v509_v49  ;;  %v391_v44 = vld [vmem:[%s8634_s5 + $0x28] sm:$0xff]  ;;  %v493_v47 = vld [vmem:[%s8634_s5 + $0x358] sm:$0xff] }
  0xb9   :  { %v5815_v60 = vrot.slane %v260_v54, 4  ;;  %v5817_v61 = vrot.slane %v280_v55, 4  ;;  %832 = vmatpush.msra.mxu0 %v405_v52  ;;  %855 = vmatpush.msra.mxu1 %v437_v53  ;;  %v423_v45 = vld [vmem:[%s8634_s5 + $0x128] sm:$0xff]  ;;  %v389_v48 = vld [vmem:[%s8634_s5 + $0x18] sm:$0xff] }
  0xba   :  { %875 = vmatpush.msra.mxu2 %v475_v56  ;;  %898 = vmatpush.msra.mxu3 %v507_v57  ;;  %v421_v49 = vld [vmem:[%s8634_s5 + $0x118] sm:$0xff]  ;;  %v459_v50 = vld [vmem:[%s8634_s5 + $0x248] sm:$0xff] }
  0xbb   :  { %707 = vmatmul.f32.gmra.mxu2 %v5749_v32  ;;  %730 = vmatmul.f32.gmra.mxu3 %v5751_v33  ;;  %v5837_v4 = vsel %vm8660_vm1, %v341_v58, %v5815_v60  ;;  %v5841_v6 = vsel %vm8660_vm1, %v342_v59, %v5817_v61  ;;  %v491_v51 = vld [vmem:[%s8634_s5 + $0x348] sm:$0xff]  ;;  %v457_v54 = vld [vmem:[%s8634_s5 + $0x238] sm:$0xff] }
  0xbc   :  { %833 = vmatpush.msra.mxu0 %v403_v62  ;;  %856 = vmatpush.msra.mxu1 %v435_v63  ;;  %v387_v52 = vld [vmem:[%s8634_s5 + $0x8] sm:$0xff]  ;;  %v489_v55 = vld [vmem:[%s8634_s5 + $0x338] sm:$0xff] }
  0xbd   :  { %876 = vmatpush.msra.mxu2 %v473_v0  ;;  %899 = vmatpush.msra.mxu3 %v505_v1  ;;  %v299_v8 = vpop.f32.mrf.mxu2  ;;  %v319_v9 = vpop.f32.mrf.mxu3  ;;  %v419_v53 = vld [vmem:[%s8634_s5 + $0x108] sm:$0xff]  ;;  %v545_v56 = vld [vmem:[%s8634_s5 + $0x4f8] sm:$0xff] }
  0xbe   :  { %v300_v13 = vadd.f32 %v299_v8, %v148_v2  ;;  %v320_v16 = vadd.f32 %v319_v9, %v149_v3  ;;  %750 = vmatmul.f32.vlgmr.msrb.gmra.mxu0 %v5837_v4  ;;  %773 = vmatmul.f32.vlgmr.msrb.gmra.mxu1 %v5841_v6  ;;  %v577_v57 = vld [vmem:[%s8634_s5 + $0x5f8] sm:$0xff]  ;;  %v455_v58 = vld [vmem:[%s8634_s5 + $0x228] sm:$0xff] }
  0xbf   :  { %834 = vmatpush.msra.mxu0 %v401_v7  ;;  %857 = vmatpush.msra.mxu1 %v433_v5  ;;  %v487_v59 = vld [vmem:[%s8634_s5 + $0x328] sm:$0xff]  ;;  %v453_v0 = vld [vmem:[%s8634_s5 + $0x218] sm:$0xff] }
  0xc0   :  { %v5869_v24 = vrot.slane %v300_v13, 4  ;;  %v5871_v25 = vrot.slane %v320_v16, 4  ;;  %877 = vmatpush.msra.mxu2 %v471_v10  ;;  %900 = vmatpush.msra.mxu3 %v503_v11  ;;  %v543_v62 = vld [vmem:[%s8634_s5 + $0x4e8] sm:$0xff]  ;;  %v485_v1 = vld [vmem:[%s8634_s5 + $0x318] sm:$0xff] }
  0xc1   :  { %835 = vmatpush.msra.mxu0 %v399_v12  ;;  %858 = vmatpush.msra.mxu1 %v431_v17  ;;  %v575_v63 = vld [vmem:[%s8634_s5 + $0x5e8] sm:$0xff]  ;;  %v541_v2 = vld [vmem:[%s8634_s5 + $0x4d8] sm:$0xff] }
  0xc2   :  { %878 = vmatpush.msra.mxu2 %v469_v18  ;;  %901 = vmatpush.msra.mxu3 %v501_v19  ;;  %v5887_v30 = vsel %vm8660_vm1, %v343_v22, %v5869_v24  ;;  %v5891_v31 = vsel %vm8660_vm1, %v344_v23, %v5871_v25  ;;  %v483_v3 = vld [vmem:[%s8634_s5 + $0x308] sm:$0xff]  ;;  %v609_v8 = vld [vmem:[%s8634_s5 + $0x6f8] sm:$0xff] }
  0xc3   :  { %836 = vmatpush.msra.mxu0 %v397_v26  ;;  %859 = vmatpush.msra.mxu1 %v429_v27  ;;  %v539_v7 = vld [vmem:[%s8634_s5 + $0x4c8] sm:$0xff]  ;;  %v641_v9 = vld [vmem:[%s8634_s5 + $0x7f8] sm:$0xff] }
  0xc4   :  { %879 = vmatpush.msra.mxu2 %v467_v28  ;;  %902 = vmatpush.msra.mxu3 %v499_v29  ;;  %v571_v5 = vld [vmem:[%s8634_s5 + $0x5c8] sm:$0xff]  ;;  %v537_v10 = vld [vmem:[%s8634_s5 + $0x4b8] sm:$0xff] }
  0xc5   :  { %796 = vmatmul.f32.vlgmr.msrb.gmra.mxu2 %v5887_v30  ;;  %819 = vmatmul.f32.vlgmr.msrb.gmra.mxu3 %v5891_v31  ;;  %v569_v11 = vld [vmem:[%s8634_s5 + $0x5b8] sm:$0xff]  ;;  %v607_v12 = vld [vmem:[%s8634_s5 + $0x6e8] sm:$0xff] }
  0xc6   :  { %837 = vmatpush.msra.mxu0 %v395_v34  ;;  %860 = vmatpush.msra.mxu1 %v427_v35  ;;  %v639_v13 = vld [vmem:[%s8634_s5 + $0x7e8] sm:$0xff]  ;;  %v605_v18 = vld [vmem:[%s8634_s5 + $0x6d8] sm:$0xff] }
  0xc7   :  { %880 = vmatpush.msra.mxu2 %v465_v38  ;;  %903 = vmatpush.msra.mxu3 %v497_v39  ;;  %v535_v16 = vld [vmem:[%s8634_s5 + $0x4a8] sm:$0xff]  ;;  %v565_v19 = vld [vmem:[%s8634_s5 + $0x598] sm:$0xff] }
  0xc8   :  { %753 = vmatmul.f32.gmra.mxu0 %v5815_v60  ;;  %776 = vmatmul.f32.gmra.mxu1 %v5817_v61  ;;  %v567_v17 = vld [vmem:[%s8634_s5 + $0x5a8] sm:$0xff]  ;;  %v601_v26 = vld [vmem:[%s8634_s5 + $0x6b8] sm:$0xff] }
  0xc9   :  { %838 = vmatpush.msra.mxu0 %v393_v40  ;;  %861 = vmatpush.msra.mxu1 %v425_v41  ;;  %v603_v22 = vld [vmem:[%s8634_s5 + $0x6c8] sm:$0xff]  ;;  %v633_v27 = vld [vmem:[%s8634_s5 + $0x7b8] sm:$0xff] }
  0xca   :  { %881 = vmatpush.msra.mxu2 %v463_v42  ;;  %904 = vmatpush.msra.mxu3 %v495_v43  ;;  %v563_v23 = vld [vmem:[%s8634_s5 + $0x588] sm:$0xff]  ;;  %v529_v28 = vld [vmem:[%s8634_s5 + $0x478] sm:$0xff] }
  0xcb   :  { %839 = vmatpush.msra.mxu0 %v391_v44  ;;  %862 = vmatpush.msra.mxu1 %v423_v45  ;;  %v561_v29 = vld [vmem:[%s8634_s5 + $0x578] sm:$0xff]  ;;  %v599_v34 = vld [vmem:[%s8634_s5 + $0x6a8] sm:$0xff] }
  0xcc   :  { %882 = vmatpush.msra.mxu2 %v461_v46  ;;  %905 = vmatpush.msra.mxu3 %v493_v47  ;;  %v631_v35 = vld [vmem:[%s8634_s5 + $0x7a8] sm:$0xff]  ;;  %v597_v40 = vld [vmem:[%s8634_s5 + $0x698] sm:$0xff] }
  0xcd   :  { %840 = vmatpush.msra.mxu0 %v389_v48  ;;  %863 = vmatpush.msra.mxu1 %v421_v49  ;;  %v527_v38 = vld [vmem:[%s8634_s5 + $0x468] sm:$0xff]  ;;  %v557_v41 = vld [vmem:[%s8634_s5 + $0x558] sm:$0xff] }
  0xce   :  { %883 = vmatpush.msra.mxu2 %v459_v50  ;;  %906 = vmatpush.msra.mxu3 %v491_v51  ;;  %v559_v39 = vld [vmem:[%s8634_s5 + $0x568] sm:$0xff]  ;;  %v593_v46 = vld [vmem:[%s8634_s5 + $0x678] sm:$0xff] }
  0xcf   :  { %799 = vmatmul.f32.gmra.mxu2 %v5869_v24  ;;  %822 = vmatmul.f32.gmra.mxu3 %v5871_v25  ;;  %v595_v42 = vld [vmem:[%s8634_s5 + $0x688] sm:$0xff]  ;;  %v625_v47 = vld [vmem:[%s8634_s5 + $0x778] sm:$0xff] }
  0xd0   :  { %841 = vmatpush.msra.mxu0 %v387_v52  ;;  %864 = vmatpush.msra.mxu1 %v419_v53  ;;  %v627_v43 = vld [vmem:[%s8634_s5 + $0x788] sm:$0xff]  ;;  %v521_v48 = vld [vmem:[%s8634_s5 + $0x438] sm:$0xff] }
  0xd1   :  { %884 = vmatpush.msra.mxu2 %v457_v54  ;;  %907 = vmatpush.msra.mxu3 %v489_v55  ;;  %v523_v44 = vld [vmem:[%s8634_s5 + $0x448] sm:$0xff]  ;;  %v553_v49 = vld [vmem:[%s8634_s5 + $0x538] sm:$0xff] }
  0xd2   :  { %918 = vmatpush.msrb.mxu0 %v545_v56  ;;  %941 = vmatpush.msrb.mxu1 %v577_v57  ;;  %v555_v45 = vld [vmem:[%s8634_s5 + $0x548] sm:$0xff]  ;;  %v589_v54 = vld [vmem:[%s8634_s5 + $0x658] sm:$0xff] }
  0xd3   :  { %842 = vmatmul.f32.vlgmr.msra.gmra.mxu0 %v5729_v20  ;;  %865 = vmatmul.f32.vlgmr.msra.gmra.mxu1 %v5733_v21  ;;  %v573_v20 = vld [vmem:[%s8634_s5 + $0x5d8] sm:$0xff]  ;;  %v451_v21 = vld [vmem:[%s8634_s5 + $0x208] sm:$0xff] }
  0xd4   :  { %885 = vmatpush.msra.mxu2 %v455_v58  ;;  %908 = vmatpush.msra.mxu3 %v487_v59  ;;  %v591_v50 = vld [vmem:[%s8634_s5 + $0x668] sm:$0xff]  ;;  %v621_v55 = vld [vmem:[%s8634_s5 + $0x758] sm:$0xff] }
  0xd5   :  { %919 = vmatpush.msrb.mxu0 %v543_v62  ;;  %942 = vmatpush.msrb.mxu1 %v575_v63  ;;  %v623_v51 = vld [vmem:[%s8634_s5 + $0x768] sm:$0xff]  ;;  %v517_v56 = vld [vmem:[%s8634_s5 + $0x418] sm:$0xff] }
  0xd6   :  { %886 = vmatpush.msra.mxu2 %v453_v0  ;;  %909 = vmatpush.msra.mxu3 %v485_v1  ;;  %v519_v52 = vld [vmem:[%s8634_s5 + $0x428] sm:$0xff]  ;;  %v549_v57 = vld [vmem:[%s8634_s5 + $0x518] sm:$0xff] }
  0xd7   :  { %920 = vmatpush.msrb.mxu0 %v541_v2  ;;  %943 = vmatpush.msrb.mxu1 %v573_v20  ;;  %v551_v53 = vld [vmem:[%s8634_s5 + $0x528] sm:$0xff]  ;;  %v585_v0 = vld [vmem:[%s8634_s5 + $0x638] sm:$0xff] }
  0xd8   :  { %887 = vmatpush.msra.mxu2 %v451_v21  ;;  %910 = vmatpush.msra.mxu3 %v483_v3  ;;  %v587_v58 = vld [vmem:[%s8634_s5 + $0x648] sm:$0xff]  ;;  %v617_v1 = vld [vmem:[%s8634_s5 + $0x738] sm:$0xff] }
  0xd9   :  { %921 = vmatpush.msrb.mxu0 %v539_v7  ;;  %944 = vmatpush.msrb.mxu1 %v571_v5  ;;  %v619_v59 = vld [vmem:[%s8634_s5 + $0x748] sm:$0xff]  ;;  %v581_v21 = vld [vmem:[%s8634_s5 + $0x618] sm:$0xff] }
  0xda   :  { %964 = vmatpush.msrb.mxu2 %v609_v8  ;;  %987 = vmatpush.msrb.mxu3 %v641_v9  ;;  %v515_v62 = vld [vmem:[%s8634_s5 + $0x408] sm:$0xff]  ;;  %v613_v3 = vld [vmem:[%s8634_s5 + $0x718] sm:$0xff]  ;;  %v1140_v8 = vld [vmem:[%s8638_s9 + $0x20] sm:$0xff] }
  0xdb   :  { %888 = vmatmul.f32.vlgmr.msra.gmra.mxu2 %v5761_v36  ;;  %911 = vmatmul.f32.vlgmr.msra.gmra.mxu3 %v5765_v37  ;;  %v637_v36 = vld [vmem:[%s8634_s5 + $0x7d8] sm:$0xff]  ;;  %v547_v63 = vld [vmem:[%s8634_s5 + $0x508] sm:$0xff] }
  0xdc   :  { %922 = vmatpush.msrb.mxu0 %v537_v10  ;;  %945 = vmatpush.msrb.mxu1 %v569_v11  ;;  %v533_v37 = vld [vmem:[%s8634_s5 + $0x498] sm:$0xff]  ;;  %v583_v2 = vld [vmem:[%s8634_s5 + $0x628] sm:$0xff]  ;;  %v1136_v10 = vld [vmem:[%s8638_s9] sm:$0xff] }
  0xdd   :  { %965 = vmatpush.msrb.mxu2 %v607_v12  ;;  %988 = vmatpush.msrb.mxu3 %v639_v13  ;;  %v615_v20 = vld [vmem:[%s8634_s5 + $0x728] sm:$0xff]  ;;  %v1143_v5 = vld [vmem:[%s8638_s9 + $0x38] sm:$0xff] }
  0xde   :  { %845 = vmatmul.f32.gmra.mxu0 %v5715_v14  ;;  %868 = vmatmul.f32.gmra.mxu1 %v5717_v15  ;;  %v635_v14 = vld [vmem:[%s8634_s5 + $0x7c8] sm:$0xff] }
  0xdf   :  { %923 = vmatpush.msrb.mxu0 %v535_v16  ;;  %946 = vmatpush.msrb.mxu1 %v567_v17  ;;  %v531_v15 = vld [vmem:[%s8634_s5 + $0x488] sm:$0xff] }
  0xe0   :  { %966 = vmatpush.msrb.mxu2 %v605_v18  ;;  %989 = vmatpush.msrb.mxu3 %v637_v36  ;;  %v579_v7 = vld [vmem:[%s8634_s5 + $0x608] sm:$0xff] }
  0xe1   :  { %924 = vmatpush.msrb.mxu0 %v533_v37  ;;  %947 = vmatpush.msrb.mxu1 %v565_v19  ;;  %v1141_v9 = vld [vmem:[%s8638_s9 + $0x28] sm:$0xff] }
  0xe2   :  { %967 = vmatpush.msrb.mxu2 %v603_v22  ;;  %990 = vmatpush.msrb.mxu3 %v635_v14  ;;  %v1135_v11 = vld [vmem:[%s8637_s8 + $0x8] sm:$0x3] }
  0xe3   :  { %925 = vmatpush.msrb.mxu0 %v531_v15  ;;  %948 = vmatpush.msrb.mxu1 %v563_v23 }
  0xe4   :  { %968 = vmatpush.msrb.mxu2 %v601_v26  ;;  %991 = vmatpush.msrb.mxu3 %v633_v27 }
  0xe5   :  { %891 = vmatmul.f32.gmra.mxu2 %v5749_v32  ;;  %914 = vmatmul.f32.gmra.mxu3 %v5751_v33  ;;  %v629_v32 = vld [vmem:[%s8634_s5 + $0x798] sm:$0xff] }
  0xe6   :  { %926 = vmatpush.msrb.mxu0 %v529_v28  ;;  %949 = vmatpush.msrb.mxu1 %v561_v29  ;;  %v525_v33 = vld [vmem:[%s8634_s5 + $0x458] sm:$0xff] }
  0xe7   :  { %969 = vmatpush.msrb.mxu2 %v599_v34  ;;  %992 = vmatpush.msrb.mxu3 %v631_v35 }
  0xe8   :  { %927 = vmatpush.msrb.mxu0 %v527_v38  ;;  %950 = vmatpush.msrb.mxu1 %v559_v39 }
  0xe9   :  { %970 = vmatpush.msrb.mxu2 %v597_v40  ;;  %993 = vmatpush.msrb.mxu3 %v629_v32 }
  0xea   :  { %928 = vmatpush.msrb.mxu0 %v525_v33  ;;  %951 = vmatpush.msrb.mxu1 %v557_v41 }
  0xeb   :  { %971 = vmatpush.msrb.mxu2 %v595_v42  ;;  %994 = vmatpush.msrb.mxu3 %v627_v43 }
  0xec   :  { %929 = vmatpush.msrb.mxu0 %v523_v44  ;;  %952 = vmatpush.msrb.mxu1 %v555_v45 }
  0xed   :  { %972 = vmatpush.msrb.mxu2 %v593_v46  ;;  %995 = vmatpush.msrb.mxu3 %v625_v47  ;;  %v6219_v46 = vld [vmem:[%s8636_s7] sm:$0xff]  ;;  %v6226_v47 = vld [vmem:[%s8636_s7 + $0x8] sm:$0x3] }
  0xee   :  { %930 = vmatpush.msrb.mxu0 %v521_v48  ;;  %953 = vmatpush.msrb.mxu1 %v553_v49  ;;  %v1212_v48 = vld [vmem:[%s8639_s10 + $0x78] sm:$0xff] }
  0xef   :  { %973 = vmatpush.msrb.mxu2 %v591_v50  ;;  %996 = vmatpush.msrb.mxu3 %v623_v51  ;;  %v1211_v50 = vld [vmem:[%s8639_s10 + $0x70] sm:$0xff]  ;;  %v1210_v51 = vld [vmem:[%s8639_s10 + $0x68] sm:$0xff] }
  0xf0   :  { %931 = vmatpush.msrb.mxu0 %v519_v52  ;;  %954 = vmatpush.msrb.mxu1 %v551_v53  ;;  %v1209_v52 = vld [vmem:[%s8639_s10 + $0x60] sm:$0xff]  ;;  %v1208_v53 = vld [vmem:[%s8639_s10 + $0x58] sm:$0xff] }
  0xf1   :  { %974 = vmatpush.msrb.mxu2 %v589_v54  ;;  %997 = vmatpush.msrb.mxu3 %v621_v55  ;;  %v1207_v55 = vld [vmem:[%s8639_s10 + $0x50] sm:$0xff] }
  0xf2   :  { %932 = vmatpush.msrb.mxu0 %v517_v56  ;;  %955 = vmatpush.msrb.mxu1 %v549_v57  ;;  %v1206_v57 = vld [vmem:[%s8639_s10 + $0x48] sm:$0xff] }
  0xf3   :  { %975 = vmatpush.msrb.mxu2 %v587_v58  ;;  %998 = vmatpush.msrb.mxu3 %v619_v59 }
  0xf4   :  { %933 = vmatpush.msrb.mxu0 %v515_v62  ;;  %956 = vmatpush.msrb.mxu1 %v547_v63  ;;  %v1205_v62 = vld [vmem:[%s8639_s10 + $0x40] sm:$0xff]  ;;  %v1204_v63 = vld [vmem:[%s8639_s10 + $0x38] sm:$0xff] }
  0xf5   :  { %976 = vmatpush.msrb.mxu2 %v585_v0  ;;  %999 = vmatpush.msrb.mxu3 %v617_v1  ;;  %v1203_v0 = vld [vmem:[%s8639_s10 + $0x30] sm:$0xff] }
  0xf6   :  { %934 = vmatmul.f32.vlgmr.msrb.gmra.mxu0 %v5837_v4  ;;  %957 = vmatmul.f32.vlgmr.msrb.gmra.mxu1 %v5841_v6  ;;  %v611_v4 = vld [vmem:[%s8634_s5 + $0x708] sm:$0xff]  ;;  %v1142_v6 = vld [vmem:[%s8638_s9 + $0x30] sm:$0xff]  ;;  %s1508_s5 = sand.u32 7, %s1503_s26  ;;  %s4990_s26 = smov 2  }
  0xf7   :  { %977 = vmatpush.msrb.mxu2 %v583_v2  ;;  %1000 = vmatpush.msrb.mxu3 %v615_v20  ;;  %v1202_v20 = vld [vmem:[%s8639_s10 + $0x28] sm:$0xff]  ;;  %s1511_s25 = sadd.s32 %s4589_s0, %s1508_s5  ;;  %s4993_s5 = smov 126  }
  0xf8   :  { %s1512_s4 = scalar_lea.vmem [#allocation2], %s1511_s25  ;;  %s4995_s0 = smov 125  }
  0xf9   :  { %978 = vmatpush.msrb.mxu2 %v581_v21  ;;  %1001 = vmatpush.msrb.mxu3 %v613_v3  ;;  %s4524_s25 = sld [smem:[#allocation3 + $0x82]] }
  0xfb   :  { %979 = vmatpush.msrb.mxu2 %v579_v7  ;;  %1002 = vmatpush.msrb.mxu3 %v611_v4  ;;  %v1201_v7 = vld [vmem:[%s8639_s10 + $0x20] sm:$0xff]  ;;  %v1200_v4 = vld [vmem:[%s8639_s10 + $0x18] sm:$0xff] }
  0xfc   :  { %980 = vmatmul.f32.vlgmr.msrb.gmra.mxu2 %v5887_v30  ;;  %1003 = vmatmul.f32.vlgmr.msrb.gmra.mxu3 %v5891_v31  ;;  %v1138_v30 = vld [vmem:[%s8638_s9 + $0x10] sm:$0xff]  ;;  %v1139_v31 = vld [vmem:[%s8638_s9 + $0x18] sm:$0xff] }
  0xfd   :  { %1163 = vmatpush.msra.mxu2 %v1142_v6  ;;  %1186 = vmatpush.msra.mxu3 %v1143_v5 }
  0xfe   :  { %937 = vmatmul.f32.gmra.mxu0 %v5815_v60  ;;  %960 = vmatmul.f32.gmra.mxu1 %v5817_v61  ;;  %v1137_v60 = vld [vmem:[%s8638_s9 + $0x8] sm:$0xff]  ;;  %v1134_v61 = vld [vmem:[%s8637_s8] sm:$0xff]  ;;  %s4384_s8 = sld [smem:[#allocation3 + $0x80]] }
  0xff   :  { %1164 = vmatpush.msra.mxu2 %v1140_v8  ;;  %1187 = vmatpush.msra.mxu3 %v1141_v9  ;;  %v1199_v8 = vld [vmem:[%s8639_s10 + $0x10] sm:$0xff]  ;;  %s4457_s9 = sld [smem:[#allocation3 + $0x1]] }
 0x101   :  { %1165 = vmatpush.msra.mxu2 %v1138_v30  ;;  %1188 = vmatpush.msra.mxu3 %v1139_v31 }
 0x103   :  { %1166 = vmatpush.msra.mxu2 %v1136_v10  ;;  %1189 = vmatpush.msra.mxu3 %v1137_v60  ;;  %v1198_v10 = vld [vmem:[%s8639_s10 + $0x8] sm:$0xff] }
 0x104   :  { %983 = vmatmul.f32.gmra.mxu2 %v5869_v24  ;;  %1006 = vmatmul.f32.gmra.mxu3 %v5871_v25  ;;  %s1514_s29 = sshra.s32 %s4384_s8, 3  ;;  %s1517_s20 = sand.u32 7, %s4384_s8 }
 0x105   :  { %s2596_s23 = sshra.s32 %s4457_s9, 3  ;;  %s4590_s7 = sshll.u32 %s1514_s29, 5 }
 0x106   :  { %s2599_s21 = sand.u32 7, %s4457_s9  ;;  %s4591_s1 = sshll.u32 %s2596_s23, 5 }
 0x107   :  { %s4992_s8 = smov 124   ;;  %s4994_s23 = smov 127  }
 0x10c   :  { %4372 = vmatmul.msk.f32.vlgmr.msra.gmra.mxu2 %vm1144_vm2, %v1134_v61  ;;  %4374 = vmatmul.msk.f32.vlgmr.msra.gmra.mxu3 %vm1144_vm2, %v1134_v61  ;;  %v1197_v61 = vld [vmem:[%s8639_s10] sm:$0xff] }
 0x114   :  { %4373 = vmatmul.msk.f32.gmra.mxu2 %vm1144_vm2, %v1135_v11  ;;  %4375 = vmatmul.msk.f32.gmra.mxu3 %vm1144_vm2, %v1135_v11  ;;  %vm1567_vm2 = vcmask 146432  }
 0x127   :  { %v659_v12 = vpop.f32.mrf.mxu0  ;;  %v682_v13 = vpop.f32.mrf.mxu1 }
 0x128   :  { %v683_v19 = vadd.f32 %v682_v13, %v659_v12 }
 0x131   :  { %v662_v17 = vpop.f32.mrf.mxu0  ;;  %v685_v18 = vpop.f32.mrf.mxu1 }
 0x132   :  { %v686_v22 = vadd.f32 %v685_v18, %v662_v17 }
 0x134   :  { %v705_v16 = vpop.f32.mrf.mxu2  ;;  %v728_v24 = vpop.f32.mrf.mxu3 }
 0x135   :  { %v706_v14 = vadd.f32 %v705_v16, %v683_v19 }
 0x137   :  { %v729_v27 = vadd.f32 %v728_v24, %v706_v14 }
 0x13b   :  { %v751_v36 = vpop.f32.mrf.mxu0  ;;  %v774_v23 = vpop.f32.mrf.mxu1 }
 0x13c   :  { %v752_v35 = vadd.f32 %v751_v36, %v729_v27  ;;  %v1220_v27 = vld [vmem:[%s8639_s10 + $0xb8] sm:$0xff] }
 0x13e   :  { %v708_v25 = vpop.f32.mrf.mxu2  ;;  %v731_v37 = vpop.f32.mrf.mxu3  ;;  %v775_v40 = vadd.f32 %v774_v23, %v752_v35  ;;  %v1218_v35 = vld [vmem:[%s8639_s10 + $0xa8] sm:$0xff] }
 0x13f   :  { %v709_v15 = vadd.f32 %v708_v25, %v686_v22 }
 0x141   :  { %v732_v28 = vadd.f32 %v731_v37, %v709_v15 }
 0x145   :  { %v754_v29 = vpop.f32.mrf.mxu0  ;;  %v777_v39 = vpop.f32.mrf.mxu1 }
 0x146   :  { %v755_v38 = vadd.f32 %v754_v29, %v732_v28 }
 0x148   :  { %v797_v26 = vpop.f32.mrf.mxu2  ;;  %v820_v34 = vpop.f32.mrf.mxu3  ;;  %v778_v32 = vadd.f32 %v777_v39, %v755_v38  ;;  %v1217_v38 = vld [vmem:[%s8639_s10 + $0xa0] sm:$0xff]  ;;  %v1216_v39 = vld [vmem:[%s8639_s10 + $0x98] sm:$0xff] }
 0x149   :  { %v798_v41 = vadd.f32 %v797_v26, %v775_v40  ;;  %v1221_v26 = vld [vmem:[%s8639_s10 + $0xc0] sm:$0xff] }
 0x14b   :  { %v821_v45 = vadd.f32 %v820_v34, %v798_v41  ;;  %v1219_v34 = vld [vmem:[%s8639_s10 + $0xb0] sm:$0xff]  ;;  %v1214_v41 = vld [vmem:[%s8639_s10 + $0x88] sm:$0xff] }
 0x150   :  { %v843_v49 = vpop.f32.mrf.mxu0  ;;  %v866_v54 = vpop.f32.mrf.mxu1 }
 0x151   :  { %v867_v6 = vadd.f32 %v866_v54, %v843_v49 }
 0x152   :  { %v800_v33 = vpop.f32.mrf.mxu2  ;;  %v823_v43 = vpop.f32.mrf.mxu3 }
 0x153   :  { %v801_v42 = vadd.f32 %v800_v33, %v778_v32  ;;  %v1215_v33 = vld [vmem:[%s8639_s10 + $0x90] sm:$0xff] }
 0x155   :  { %v824_v44 = vadd.f32 %v823_v43, %v801_v42  ;;  %v1213_v42 = vld [vmem:[%s8639_s10 + $0x80] sm:$0xff]  ;;  %s2602_s10 = sadd.s32 %s4591_s1, %s2599_s21 }
 0x156   :  { %s2603_s24 = scalar_lea.vmem [#allocation2], %s2602_s10 }
 0x157   :  { %4366 = vmatpush.msk.msra.mxu0 %vm1025_vm3, %v824_v44  ;;  %v6317_v44 = vld [vmem:[%s8635_s6] sm:$0x3]  ;;  %s1520_s6 = sadd.s32 %s4590_s7, %s1517_s20 }
 0x159   :  { %1047 = vmatpush.msra.mxu0 %v821_v45  ;;  %v1014_v45 = vperm.slane %v6317_v44, 0 }
 0x15a   :  { %4367 = vmatmul.msk.f32.vlgmr.msra.gmra.mxu0 %vm8657_vm4, %v6219_v46 }
 0x15b   :  { %1228 = vmatpush.msrb.mxu0 %v1212_v48  ;;  %v846_v56 = vpop.f32.mrf.mxu0  ;;  %v869_v1 = vpop.f32.mrf.mxu1 }
 0x15c   :  { %v870_v5 = vadd.f32 %v869_v1, %v846_v56 }
 0x15d   :  { %1229 = vmatpush.msrb.mxu0 %v1211_v50 }
 0x15e   :  { %v889_v58 = vpop.f32.mrf.mxu2  ;;  %v912_v59 = vpop.f32.mrf.mxu3 }
 0x15f   :  { %1230 = vmatpush.msrb.mxu0 %v1210_v51  ;;  %v890_v30 = vadd.f32 %v889_v58, %v867_v6 }
 0x161   :  { %1231 = vmatpush.msrb.mxu0 %v1209_v52  ;;  %v913_v13 = vadd.f32 %v912_v59, %v890_v30 }
 0x162   :  { %4368 = vmatmul.msk.f32.gmra.mxu0 %vm8657_vm4, %v6226_v47 }
 0x163   :  { %1232 = vmatpush.msrb.mxu0 %v1208_v53 }
 0x165   :  { %1233 = vmatpush.msrb.mxu0 %v1207_v55 }
 0x167   :  { %1234 = vmatpush.msrb.mxu0 %v1206_v57 }
 0x168   :  { %v892_v21 = vpop.f32.mrf.mxu2  ;;  %v915_v3 = vpop.f32.mrf.mxu3 }
 0x169   :  { %1235 = vmatpush.msrb.mxu0 %v1205_v62  ;;  %v893_v31 = vadd.f32 %v892_v21, %v870_v5  ;;  %v4988_v21 = vmov 1  }
 0x16a   :  { %4607 = vset.pattern.permute.xlu0 %v4988_v21 }
 0x16b   :  { %1236 = vmatpush.msrb.mxu0 %v1204_v63  ;;  %v916_v16 = vadd.f32 %v915_v3, %v893_v31 }
 0x16d   :  { %1237 = vmatpush.msrb.mxu0 %v1203_v0 }
 0x16f   :  { %1238 = vmatpush.msrb.mxu0 %v1202_v20 }
 0x171   :  { %1239 = vmatpush.msrb.mxu0 %v1201_v7 }
 0x173   :  { %v935_v2 = vpop.f32.mrf.mxu0  ;;  %1240 = vmatpush.msrb.mxu0 %v1200_v4  ;;  %v958_v9 = vpop.f32.mrf.mxu1 }
 0x174   :  { %v936_v17 = vadd.f32 %v935_v2, %v913_v13 }
 0x175   :  { %1241 = vmatpush.msrb.mxu0 %v1199_v8 }
 0x176   :  { %v959_v25 = vadd.f32 %v958_v9, %v936_v17 }
 0x177   :  { %1242 = vmatpush.msrb.mxu0 %v1198_v10 }
 0x179   :  { %1243 = vmatpush.msrb.mxu0 %v1197_v61 }
 0x17b   :  { %v938_v60 = vpop.f32.mrf.mxu0  ;;  %v961_v18 = vpop.f32.mrf.mxu1 }
 0x17c   :  { %v939_v24 = vadd.f32 %v938_v60, %v916_v16 }
 0x17e   :  { %v962_v36 = vadd.f32 %v961_v18, %v939_v24 }
 0x17f   :  { %v981_v11 = vpop.f32.mrf.mxu2  ;;  %v1004_v12 = vpop.f32.mrf.mxu3 }
 0x180   :  { %v982_v22 = vadd.f32 %v981_v11, %v959_v25 }
 0x182   :  { %v1005_v23 = vadd.f32 %v1004_v12, %v982_v22 }
 0x187   :  { %v984_v37 = vpop.f32.mrf.mxu2  ;;  %v1007_v19 = vpop.f32.mrf.mxu3 }
 0x188   :  { %v985_v14 = vadd.f32 %v984_v37, %v962_v36  ;;  %v1325_v37 = vld [vmem:[%s8641_s12] sm:$0xff] }
 0x189   :  { %vm1327_vm7 = vcmp.gt.f32.partialorder %v1325_v37, 0.0 }
 0x18a   :  { %v1008_v15 = vadd.f32 %v1007_v19, %v985_v14 }
 0x18c   :  { %4369 = vmatpush.msk.msra.mxu1 %vm1025_vm3, %v1008_v15 }
 0x18e   :  { %1070 = vmatpush.msra.mxu1 %v1005_v23 }
 0x18f   :  { %4370 = vmatmul.msk.f32.vlgmr.msra.gmra.mxu1 %vm8657_vm4, %v6219_v46  ;;  %v1168_v28 = vpop.f32.mrf.mxu2  ;;  %v1191_v29 = vpop.f32.mrf.mxu3 }
 0x190   :  { %1258 = vmatpush.msrb.mxu1 %v1221_v26  ;;  %1244 = vmatmul.f32.vlgmr.msrb.gmra.mxu0 %v1168_v28 }
 0x192   :  { %1259 = vmatpush.msrb.mxu1 %v1220_v27  ;;  %v1326_v27 = vld [vmem:[%s8641_s12 + $0x8] sm:$0x3]  ;;  %s1521_s12 = scalar_lea.vmem [#allocation2], %s1520_s6 }
 0x193   :  { %vm1328_vm9 = vcmp.gt.f32.partialorder %v1326_v27, 0.0 }
 0x194   :  { %1260 = vmatpush.msrb.mxu1 %v1219_v34 }
 0x196   :  { %1261 = vmatpush.msrb.mxu1 %v1218_v35 }
 0x197   :  { %4371 = vmatmul.msk.f32.gmra.mxu1 %vm8657_vm4, %v6226_v47  ;;  %v1171_v40 = vpop.f32.mrf.mxu2  ;;  %v1194_v32 = vpop.f32.mrf.mxu3 }
 0x198   :  { %1262 = vmatpush.msrb.mxu1 %v1217_v38  ;;  %4378 = vmatpush.msk.msrb.mxu2 %vm1025_vm3, %v1171_v40 }
 0x199   :  { %4381 = vmatpush.msk.msrb.mxu3 %vm1025_vm3, %v1194_v32  ;;  %1247 = vmatmul.f32.gmra.mxu0 %v1171_v40 }
 0x19a   :  { %1263 = vmatpush.msrb.mxu1 %v1216_v39  ;;  %1386 = vmatpush.msrb.mxu2 %v1168_v28 }
 0x19b   :  { %1409 = vmatpush.msrb.mxu3 %v1191_v29 }
 0x19c   :  { %1264 = vmatpush.msrb.mxu1 %v1215_v33 }
 0x19e   :  { %1265 = vmatpush.msrb.mxu1 %v1214_v41 }
 0x1a0   :  { %1266 = vmatpush.msrb.mxu1 %v1213_v42 }
 0x1a1   :  { %4376 = vmatmul.msk.f32.vlgmr.msrb.gmra.mxu1 %vm8651_vm5, %v1191_v29 }
 0x1a9   :  { %4377 = vmatmul.msk.f32.gmra.mxu1 %vm8651_vm5, %v1194_v32 }
 0x1d7   :  { %v1049_v43 = vpop.f32.mrf.mxu0 }
 0x1d8   :  { %v1050_v46 = vadd.f32 %v1049_v43, %v1014_v45 }
 0x1df   :  { %v1052_v47 = vpop.f32.mrf.mxu0 }
 0x1e0   :  { %v1053_v48 = vadd.f32 %v1052_v47, %v1014_v45 }
 0x1e2   :  { %v1078_v49 = vsel %vm1025_vm3, %v1053_v48, -inf }
 0x1e3   :  { %v1079_v50 = vmax.f32 %v1050_v46, %v1078_v49 }
 0x1e5   :  { %v1080_v51 = vrot.slane %v1079_v50, 4 }
 0x1e7   :  { %v1081_v52 = vmax.f32 %v1079_v50, %v1080_v51 }
 0x1e9   :  { %v1082_v53 = vrot.slane %v1081_v52, 2 }
 0x1eb   :  { %v1083_v54 = vmax.f32 %v1081_v52, %v1082_v53  ;;  %v1354_v53 = vld [vmem:[%s8640_s11] sm:$0x3]  ;;  %s4989_s11 = smov 72  }
 0x1ed   :  { %v1084_v55 = vrot.slane %v1083_v54, 1 }
 0x1ef   :  { %v1085_v56 = vmax.f32 %v1083_v54, %v1084_v55 }
 0x1f1   :  { %v1097_v57 = vsub.f32 %v1050_v46, %v1085_v56  ;;  %v1099_v58 = vsub.f32 %v1053_v48, %v1085_v56  ;;  %v1357_v56 = vperm.slane %v1354_v53, 1 }
 0x1f3   :  { %v1101_v59 = vmul.f32 1.442695, %v1097_v57  ;;  %v1105_v62 = vmul.f32 1.442695, %v1099_v58 }
 0x1f5   :  { %4657 = vpow2.f32 %v1101_v59 }
 0x1f6   :  { %4659 = vpow2.f32 %v1105_v62 }
 0x1fb   :  { %v4658_v63 = vpop.eup %4657 }
 0x1fc   :  { %v4660_v0 = vpop.eup %4659 }
 0x1fd   :  { %v1109_v1 = vsel %vm1025_vm3, %v4660_v0, 0.0 }
 0x1fe   :  { %v1110_v2 = vadd.f32 %v4658_v63, %v1109_v1 }
 0x200   :  { %v1111_v20 = vrot.slane %v1110_v2, 4 }
 0x202   :  { %v1112_v3 = vadd.f32 %v1111_v20, %v1110_v2 }
 0x204   :  { %v1113_v7 = vrot.slane %v1112_v3, 2 }
 0x206   :  { %v1114_v4 = vadd.f32 %v1113_v7, %v1112_v3 }
 0x208   :  { %v1115_v6 = vrot.slane %v1114_v4, 1 }
 0x20a   :  { %v1116_v5 = vadd.f32 %v1115_v6, %v1114_v4 }
 0x20c   :  { %4661 = vlog2.f32 %v1116_v5  ;;  %v6322_v8 = vpop.f32.mrf.mxu1 }
 0x20d   :  { %v1245_v61 = vpop.f32.mrf.mxu0 }
 0x212   :  { %v4662_v9 = vpop.eup %4661 }
 0x213   :  { %v1127_v30 = vmul.f32 0.6931472, %v4662_v9 }
 0x214   :  { %v6324_v31 = vpop.f32.mrf.mxu1 }
 0x215   :  { %v1130_v10 = vsub.f32 %v1097_v57, %v1127_v30  ;;  %v1132_v60 = vsub.f32 %v1099_v58, %v1127_v30  ;;  %v1356_v57 = vperm.slane %v1354_v53, 0 }
 0x216   :  { %v1248_v13 = vpop.f32.mrf.mxu0 }
 0x217   :  { %1493 = vst [vmem:[#allocation2] sm:$0xff] %v1130_v10 }
 0x218   :  { %1498 = vst [vmem:[#allocation2 + $0x20] sm:$0x3] %v1132_v60 }
 0x21e   :  { %v1268_v11 = vpop.f32.mrf.mxu1 }
 0x21f   :  { %v1269_v12 = vadd.f32 %v1268_v11, %v1245_v61 }
 0x221   :  { %1274 = vxpose.xlu1.b32.start [1/2] (short) (narrow) %v1269_v12, 8  ;;  %1308 = vperm.xlu0 %4607, %v1269_v12  }
 0x226   :  { %v1271_v16 = vpop.f32.mrf.mxu1 }
 0x227   :  { %v1272_v17 = vadd.f32 %v1271_v16, %v1248_v13 }
 0x229   :  { %1275 = vxpose.xlu1.b32.end [2/2] (short) (narrow) %v1272_v17, 8  ;;  %1313 = vperm.xlu0 %4607, %v1272_v17  }
 0x293   :  { %v1309_v24 = vpop.permute.xlu0 %1308 }
 0x29b   :  { %v1314_v36 = vpop.permute.xlu0 %1313 }
 0x2c5   :  { %v1290_v18 = vpop.trf.xlu1 }
 0x2c6   :  { %v1316_v25 = vperm.slane %v1290_v18, 0 }
 0x2c8   :  { %v1317_v19 = vadd.f32 %v1316_v25, %v1309_v24  ;;  %v1318_v22 = vadd.f32 %v1316_v25, %v1314_v36 }
 0x2ca   :  { %vm1319_vm6 = vcmp.gt.f32.partialorder %v1317_v19, 0.0  ;;  %v1321_v14 = vmul.f32 0.2, %v1317_v19  ;;  %v1322_v23 = vmul.f32 0.2, %v1318_v22  ;;  %vm1320_vm8 = vcmp.gt.f32.partialorder %v1318_v22, 0.0 }
 0x2cc   :  { %v1323_v15 = vsel %vm1319_vm6, %v1317_v19, %v1321_v14  ;;  %v1324_v29 = vsel %vm1320_vm8, %v1318_v22, %v1322_v23  ;;  %vm8658_vm6 = vcmask 1014784   ;;  %vm8654_vm8 = vcmask 1031168  }
 0x2cd   :  { %v1329_v26 = vsel %vm1327_vm7, %v1323_v15, -1e+30  ;;  %v1330_v34 = vsel %vm1328_vm9, %v1324_v29, -1e+30  ;;  %vm8655_vm7 = vcmask 1039360   ;;  %vm8656_vm9 = vcmask 1042432  }
 0x2ce   :  { %v1331_v28 = vsel %vm8657_vm4, %v1329_v26, -inf  ;;  %v1335_v35 = vsel %vm1334_vm10, %v1330_v34, -inf }
 0x2cf   :  { %1332 = vmax.xlane.f32.xlu2 %v1331_v28 }
 0x2d7   :  { %1336 = vmax.xlane.f32.xlu2 %v1335_v35 }
 0x342   :  { %v1333_v38 = vpop.xlane.xlu2 %1332 }
 0x343   :  { %v1338_v39 = vsub.f32 %v1329_v26, %v1333_v38 }
 0x345   :  { %v1340_v40 = vmul.f32 1.442695, %v1338_v39 }
 0x347   :  { %4663 = vpow2.f32 %v1340_v40 }
 0x34a   :  { %v1337_v32 = vpop.xlane.xlu2 %1336 }
 0x34b   :  { %v1339_v33 = vsub.f32 %v1330_v34, %v1337_v32 }
 0x34d   :  { %v4664_v41 = vpop.eup %4663  ;;  %v1342_v42 = vmul.f32 1.442695, %v1339_v33 }
 0x34e   :  { %v1344_v43 = vsel %vm8657_vm4, %v4664_v41, 0.0 }
 0x34f   :  { %4665 = vpow2.f32 %v1342_v42  ;;  %1345 = vadd.xlane.f32.xlu0 %v1344_v43 }
 0x355   :  { %v4666_v45 = vpop.eup %4665 }
 0x356   :  { %v1347_v46 = vsel %vm1334_vm10, %v4666_v45, 0.0  ;;  %vm8653_vm10 = vcmask 1022976  }
 0x357   :  { %1348 = vadd.xlane.f32.xlu1 %v1347_v46 }
 0x3c2   :  { %v1346_v47 = vpop.xlane.xlu0 %1345 }
 0x3c3   :  { %4667 = vrcp.f32 %v1346_v47 }
 0x3c9   :  { %v4668_v48 = vpop.eup %4667 }
 0x3ca   :  { %v1352_v49 = vmul.f32 %v4668_v48, %v4664_v41  ;;  %v1349_v50 = vpop.xlane.xlu1 %1348 }
 0x3cb   :  { %4669 = vrcp.f32 %v1349_v50 }
 0x3cc   :  { %4379 = vmatmul.msk.f32.vlgmr.msrb.gmra.mxu2 %vm8657_vm4, %v1352_v49  ;;  %4382 = vmatmul.msk.f32.vlgmr.msrb.gmra.mxu3 %vm8657_vm4, %v1352_v49  ;;  %v1015_v49 = vperm.slane %v6317_v44, 1 }
 0x3ce   :  { %v1076_v50 = vadd.f32 %v6324_v31, %v1015_v49 }
 0x3d0   :  { %v1089_v53 = vsel %vm1088_vm11, %v1076_v50, -inf }
 0x3d1   :  { %v4670_v51 = vpop.eup %4669 }
 0x3d2   :  { %v1353_v52 = vmul.f32 %v4670_v51, %v4666_v45  ;;  %v1073_v51 = vadd.f32 %v6322_v8, %v1015_v49 }
 0x3d4   :  { %4380 = vmatmul.msk.f32.gmra.mxu2 %vm8657_vm4, %v1353_v52  ;;  %4383 = vmatmul.msk.f32.gmra.mxu3 %vm8657_vm4, %v1353_v52 }
 0x44f   :  { %v1388_v54 = vpop.f32.mrf.mxu2  ;;  %v1411_v55 = vpop.f32.mrf.mxu3 }
 0x450   :  { %v1412_v58 = vadd.f32 %v1411_v55, %v1357_v56  ;;  %v1389_v1 = vadd.f32 %v1388_v54, %v1356_v57  ;;  %v1087_v55 = vsel %vm8651_vm5, %v1073_v51, -inf }
 0x452   :  { %v1425_v2 = vsel %vm8651_vm5, %v1412_v58, -inf }
 0x457   :  { %v1391_v59 = vpop.f32.mrf.mxu2  ;;  %v1414_v62 = vpop.f32.mrf.mxu3 }
 0x458   :  { %v1392_v63 = vadd.f32 %v1391_v59, %v1356_v57  ;;  %v1415_v0 = vadd.f32 %v1414_v62, %v1357_v56 }
 0x45a   :  { %v1417_v20 = vsel %vm1025_vm3, %v1392_v63, -inf  ;;  %v1426_v21 = vsel %vm1088_vm11, %v1415_v0, -inf }
 0x45b   :  { %v1418_v3 = vmax.f32 %v1389_v1, %v1417_v20  ;;  %v1427_v7 = vmax.f32 %v1425_v2, %v1426_v21 }
 0x45d   :  { %v1419_v4 = vrot.slane %v1418_v3, 4  ;;  %v1428_v6 = vrot.slane %v1427_v7, 4 }
 0x45f   :  { %v1420_v5 = vmax.f32 %v1418_v3, %v1419_v4  ;;  %v1429_v9 = vmax.f32 %v1427_v7, %v1428_v6 }
 0x461   :  { %v1421_v30 = vrot.slane %v1420_v5, 2  ;;  %v1430_v10 = vrot.slane %v1429_v9, 2 }
 0x463   :  { %v1422_v60 = vmax.f32 %v1420_v5, %v1421_v30  ;;  %v1431_v61 = vmax.f32 %v1429_v9, %v1430_v10 }
 0x465   :  { %v1423_v11 = vrot.slane %v1422_v60, 1  ;;  %v1432_v12 = vrot.slane %v1431_v61, 1 }
 0x467   :  { %v1424_v13 = vmax.f32 %v1422_v60, %v1423_v11  ;;  %v1433_v16 = vmax.f32 %v1431_v61, %v1432_v12 }
 0x469   :  { %v1436_v17 = vsub.f32 %v1392_v63, %v1424_v13  ;;  %v1437_v24 = vsub.f32 %v1415_v0, %v1433_v16  ;;  %v1434_v18 = vsub.f32 %v1389_v1, %v1424_v13  ;;  %v1435_v25 = vsub.f32 %v1412_v58, %v1433_v16 }
 0x46a   :  { %v1090_v58 = vmax.f32 %v1087_v55, %v1089_v53  ;;  %v1687_v55 = vld [vmem:[%s8643_s14 + $0x20] sm:$0xff] }
 0x46b   :  { %v1442_v36 = vmul.f32 1.442695, %v1436_v17  ;;  %v1444_v37 = vmul.f32 1.442695, %v1437_v24  ;;  %v1438_v19 = vmul.f32 1.442695, %v1434_v18 }
 0x46c   :  { %v1440_v22 = vmul.f32 1.442695, %v1435_v25  ;;  %v1091_v62 = vrot.slane %v1090_v58, 4 }
 0x46d   :  { %4671 = vpow2.f32 %v1442_v36 }
 0x46e   :  { %4673 = vpow2.f32 %v1444_v37  ;;  %v1092_v44 = vmax.f32 %v1090_v58, %v1091_v62 }
 0x46f   :  { %4675 = vpow2.f32 %v1438_v19 }
 0x470   :  { %4677 = vpow2.f32 %v1440_v22  ;;  %v1093_v31 = vrot.slane %v1092_v44, 2 }
 0x472   :  { %v1094_v1 = vmax.f32 %v1092_v44, %v1093_v31 }
 0x473   :  { %v4672_v14 = vpop.eup %4671 }
 0x474   :  { %v4674_v15 = vpop.eup %4673  ;;  %v1446_v23 = vsel %vm1025_vm3, %v4672_v14, 0.0  ;;  %v1095_v8 = vrot.slane %v1094_v1, 1 }
 0x475   :  { %v4676_v26 = vpop.eup %4675  ;;  %v1455_v27 = vsel %vm1088_vm11, %v4674_v15, 0.0 }
 0x476   :  { %v4678_v28 = vpop.eup %4677  ;;  %v1447_v29 = vadd.f32 %v4676_v26, %v1446_v23  ;;  %v1096_v20 = vmax.f32 %v1094_v1, %v1095_v8 }
 0x477   :  { %v1454_v34 = vsel %vm8651_vm5, %v4678_v28, 0.0 }
 0x478   :  { %v1448_v35 = vrot.slane %v1447_v29, 4  ;;  %v1456_v38 = vadd.f32 %v1455_v27, %v1454_v34  ;;  %v1098_v21 = vsub.f32 %v1073_v51, %v1096_v20  ;;  %v1100_v3 = vsub.f32 %v1076_v50, %v1096_v20 }
 0x479   :  { %v4991_v51 = vmov 0  }
 0x47a   :  { %v1449_v39 = vadd.f32 %v1448_v35, %v1447_v29  ;;  %v1457_v40 = vrot.slane %v1456_v38, 4  ;;  %v1103_v7 = vmul.f32 1.442695, %v1098_v21  ;;  %v1107_v4 = vmul.f32 1.442695, %v1100_v3  ;;  %4625 = vset.pattern.permute.xlu1 %v4991_v51  ;;  %4623 = vset.pattern.permute.xlu2 %v4991_v51 }
 0x47b   :  { %4624 = vset.pattern.permute.xlu0 %v4991_v51 }
 0x47c   :  { %v1450_v32 = vrot.slane %v1449_v39, 2  ;;  %v1458_v33 = vadd.f32 %v1457_v40, %v1456_v38 }
 0x47e   :  { %v1451_v41 = vadd.f32 %v1450_v32, %v1449_v39  ;;  %v1459_v42 = vrot.slane %v1458_v33, 2 }
 0x480   :  { %v1452_v43 = vrot.slane %v1451_v41, 1  ;;  %v1460_v45 = vadd.f32 %v1459_v42, %v1458_v33 }
 0x482   :  { %v1453_v46 = vadd.f32 %v1452_v43, %v1451_v41  ;;  %v1461_v47 = vrot.slane %v1460_v45, 1 }
 0x484   :  { %4679 = vlog2.f32 %v1453_v46  ;;  %v1462_v48 = vadd.f32 %v1461_v47, %v1460_v45 }
 0x486   :  { %4681 = vlog2.f32 %v1462_v48 }
 0x487   :  { %4683 = vpow2.f32 %v1103_v7 }
 0x488   :  { %4685 = vpow2.f32 %v1107_v4 }
 0x48a   :  { %v4680_v52 = vpop.eup %4679 }
 0x48b   :  { %v1464_v54 = vmul.f32 0.6931472, %v4680_v52 }
 0x48c   :  { %v4682_v57 = vpop.eup %4681 }
 0x48d   :  { %v1467_v56 = vsub.f32 %v1434_v18, %v1464_v54  ;;  %v1466_v59 = vmul.f32 0.6931472, %v4682_v57  ;;  %v1469_v0 = vsub.f32 %v1436_v17, %v1464_v54  ;;  %v4684_v6 = vpop.eup %4683 }
 0x48e   :  { %v4686_v5 = vpop.eup %4685  ;;  %v1117_v9 = vsel %vm8651_vm5, %v4684_v6, 0.0 }
 0x48f   :  { %1475 = vrot.lane.b32.xlu2 %v1467_v56, %s4989_s11  ;;  %v1468_v63 = vsub.f32 %v1435_v25, %v1466_v59  ;;  %v1470_v2 = vsub.f32 %v1437_v24, %v1466_v59  ;;  %v1118_v30 = vsel %vm1088_vm11, %v4686_v5, 0.0  ;;  %v1685_v56 = vld [vmem:[%s8643_s14 + $0x10] sm:$0xff]  ;;  %vm1660_vm11 = vcmask 1044480  }
 0x490   :  { %v1119_v10 = vadd.f32 %v1118_v30, %v1117_v9 }
 0x492   :  { %v1120_v60 = vrot.slane %v1119_v10, 4 }
 0x494   :  { %v1121_v61 = vadd.f32 %v1120_v60, %v1119_v10 }
 0x496   :  { %v1122_v11 = vrot.slane %v1121_v61, 2 }
 0x497   :  { %1477 = vrot.lane.b32.xlu2 %v1468_v63, %s4989_s11 }
 0x498   :  { %v1123_v12 = vadd.f32 %v1122_v11, %v1121_v61 }
 0x49a   :  { %v1124_v13 = vrot.slane %v1123_v12, 1 }
 0x49c   :  { %v1125_v16 = vadd.f32 %v1124_v13, %v1123_v12 }
 0x49e   :  { %4687 = vlog2.f32 %v1125_v16 }
 0x49f   :  { %1479 = vrot.lane.b32.xlu2 %v1469_v0, %s4989_s11 }
 0x4a4   :  { %v4688_v17 = vpop.eup %4687 }
 0x4a5   :  { %v1129_v24 = vmul.f32 0.6931472, %v4688_v17  ;;  %v1690_v17 = vld [vmem:[%s8643_s14 + $0x38] sm:$0xff] }
 0x4a7   :  { %1481 = vrot.lane.b32.xlu2 %v1470_v2, %s4989_s11  ;;  %v1131_v18 = vsub.f32 %v1098_v21, %v1129_v24  ;;  %v1133_v22 = vsub.f32 %v1100_v3, %v1129_v24  ;;  %s2612_s11 = scalar_lea.vmem [#allocation2], %s2611_s3  ;;  %v1689_v24 = vld [vmem:[%s8643_s14 + $0x30] sm:$0xff]  ;;  %s3462_s3 = sshra.s32 %s4523_s2, 3 }
 0x4e9   :  { %v1476_v25 = vpop.permute.xlu2 %1475 }
 0x4ea   :  { %v1491_v36 = vsel %vm8651_vm5, %v1131_v18, %v1476_v25  ;;  %v1688_v18 = vld [vmem:[%s8643_s14 + $0x28] sm:$0xff] }
 0x4eb   :  { %1494 = vst [vmem:[#allocation2 + $0x8] sm:$0xff] %v1491_v36 }
 0x4f1   :  { %v1478_v37 = vpop.permute.xlu2 %1477 }
 0x4f2   :  { %v1483_v19 = vsel %vm8651_vm5, %v1476_v25, %v1478_v37  ;;  %1497 = vst.msk [vmem:[#allocation2 + $0x18] sm:$0xff] %vm8659_vm12, %v1478_v37  ;;  %v1684_v25 = vld [vmem:[%s8643_s14 + $0x8] sm:$0xff] }
 0x4f3   :  { %1495 = vst [vmem:[#allocation2 + $0x10] sm:$0xff] %v1483_v19  ;;  %v1686_v19 = vld [vmem:[%s8643_s14 + $0x18] sm:$0xff] }
 0x4f9   :  { %v1480_v14 = vpop.permute.xlu2 %1479 }
 0x4fa   :  { %v1492_v15 = vsel %vm8651_vm5, %v1133_v22, %v1480_v14 }
 0x4fb   :  { %1499 = vst [vmem:[#allocation2 + $0x28] sm:$0x3] %v1492_v15 }
 0x501   :  { %v1482_v23 = vpop.permute.xlu2 %1481 }
 0x502   :  { %v1484_v26 = vsel %vm8651_vm5, %v1480_v14, %v1482_v23  ;;  %1502 = vst.msk [vmem:[#allocation2 + $0x38] sm:$0x3] %vm1501_vm13, %v1482_v23  ;;  %v1683_v14 = vld [vmem:[%s8643_s14] sm:$0xff]  ;;  %vm8662_vm13 = vcmask 1045504   ;;  %vm8661_vm5 = vcmask 1046528   ;;  %s3465_s14 = sand.u32 7, %s4523_s2 }
 0x503   :  { %1500 = vst [vmem:[#allocation2 + $0x30] sm:$0x3] %v1484_v26 }
 0x50a   :  { %v1513_v27 = vld [vmem:[%s1512_s4] ss:$8 sm:$0xf]  ;;  %s3471_s4 = sshra.s32 %s4524_s25, 3 }
 0x50b   :  { %v1522_v28 = vld [vmem:[%s1521_s12] ss:$8 sm:$0xf]  ;;  %v1525_v29 = vperm.slane %v1513_v27, 1  ;;  %v1524_v35 = vperm.slane %v1513_v27, 0  ;;  %v1526_v43 = vperm.slane %v1513_v27, 2 }
 0x50c   :  { %v1534_v34 = vperm.slane %v1522_v28, 1  ;;  %v1533_v38 = vperm.slane %v1522_v28, 0  ;;  %v6361_v32 = vld [vmem:[%s2603_s24] ss:$8 sm:$0xf]  ;;  %v1535_v45 = vperm.slane %v1522_v28, 2 }
 0x50d   :  { %v6363_v33 = vld [vmem:[%s2612_s11] ss:$8 sm:$0xf]  ;;  %v2617_v41 = vperm.slane %v6361_v32, 2  ;;  %v1527_v46 = vperm.slane %v1513_v27, 3  ;;  %v1536_v47 = vperm.slane %v1522_v28, 3 }
 0x50e   :  { %v1543_v39 = vsel %vm8652_vm14, %v1525_v29, %v1534_v34  ;;  %v1542_v40 = vsel %vm8652_vm14, %v1524_v35, %v1533_v38  ;;  %v2626_v42 = vperm.slane %v6363_v33, 2  ;;  %v1544_v49 = vsel %vm8652_vm14, %v1526_v43, %v1535_v45  ;;  %s4593_s12 = sshll.u32 %s3462_s3, 5  ;;  %s3474_s24 = sand.u32 7, %s4524_s25 }
 0x50f   :  { %1552 = vrot.lane.b32.xlu2 %v1543_v39, %s4990_s26  ;;  %1550 = vrot.lane.b32.xlu0 %v1542_v40, %s4990_s26  ;;  %v1545_v50 = vsel %vm8652_vm14, %v1527_v46, %v1536_v47  ;;  %v2615_v44 = vperm.slane %v6361_v32, 0  ;;  %v2624_v31 = vperm.slane %v6363_v33, 0  ;;  %v2618_v21 = vperm.slane %v6361_v32, 3  ;;  %s4594_s11 = sshll.u32 %s3471_s4, 5  ;;  %s3468_s9 = sadd.s32 %s4593_s12, %s3465_s14 }
 0x510   :  { %v6370_v48 = vsel %vm8652_vm14, %v2617_v41, %v2626_v42  ;;  %v2627_v3 = vperm.slane %v6363_v33, 3  ;;  %v2616_v36 = vperm.slane %v6361_v32, 1  ;;  %v2625_v37 = vperm.slane %v6363_v33, 1  ;;  %s3477_s27 = sadd.s32 %s4594_s11, %s3474_s24  ;;  %s3469_s28 = scalar_lea.vmem [#allocation2], %s3468_s9 }
 0x511   :  { %v2632_v2 = vsel %vm8652_vm14, %v2615_v44, %v2624_v31  ;;  %s3478_s29 = scalar_lea.vmem [#allocation2], %s3477_s27 }
 0x512   :  { %v2635_v5 = vsel %vm8652_vm14, %v2618_v21, %v2627_v3  ;;  %v2633_v22 = vsel %vm8652_vm14, %v2616_v36, %v2625_v37  ;;  %v1676_v3 = vld [vmem:[%s8642_s13 + $0x8] sm:$0xff] }
 0x517   :  { %1554 = vrot.lane.b32.xlu2 %v1544_v49, %s4990_s26  ;;  %1556 = vrot.lane.b32.xlu0 %v1545_v50, %s4990_s26 }
 0x569   :  { %v1553_v52 = vpop.permute.xlu2 %1552 }
 0x571   :  { %v1555_v53 = vpop.permute.xlu2 %1554 }
 0x572   :  { %v6377_v54 = vsel %vm1558_vm15, %v1553_v52, %v1555_v53 }
 0x573   :  { %1635 = vrot.lane.b32.xlu1 %v6377_v54, %s4992_s8  ;;  %v1573_v6 = vrot.slane %v6377_v54, 6  ;;  %v1593_v10 = vrot.slane %v6377_v54, 4  ;;  %v1613_v60 = vrot.slane %v6377_v54, 2 }
 0x57b   :  { %1713 = vperm.xlu1 %4625, %v1687_v55  }
 0x581   :  { %v1551_v57 = vpop.permute.xlu0 %1550 }
 0x582   :  { %v6388_v58 = vsel %vm1558_vm15, %v1551_v57, %v1553_v52  ;;  %v6391_v59 = vsel %vm1558_vm15, 0.0, %v1551_v57 }
 0x583   :  { %1703 = vperm.xlu1 %4625, %v1685_v56   ;;  %1631 = vrot.lane.b32.xlu2 %v6391_v59, %s4992_s8  ;;  %v1591_v62 = vrot.slane %v6391_v59, 4  ;;  %v1592_v63 = vrot.slane %v6388_v58, 4  ;;  %v1571_v0 = vrot.slane %v6391_v59, 6  ;;  %v1572_v1 = vrot.slane %v6388_v58, 6 }
 0x584   :  { %1633 = vrot.lane.b32.xlu0 %v6388_v58, %s4992_s8  ;;  %v1611_v7 = vrot.slane %v6391_v59, 2  ;;  %v1612_v4 = vrot.slane %v6388_v58, 2 }
 0x585   :  { %v4613_v8 = vpack.i.bf16 %v1592_v63, %v1591_v62  ;;  %v4608_v20 = vpack.i.bf16 %v1572_v1, %v1571_v0 }
 0x586   :  { %v4618_v9 = vpack.i.bf16 %v1612_v4, %v1611_v7 }
 0x589   :  { %v1557_v30 = vpop.permute.xlu0 %1556 }
 0x58a   :  { %v1561_v61 = vsel %vm1558_vm15, %v1555_v53, %v1557_v30 }
 0x58b   :  { %2640 = vrot.lane.b32.xlu1 %v2632_v2, %s4990_s26  ;;  %4614 = vrot.lane.b32.xlu2 %v4613_v8, %s4993_s5  ;;  %v6422_v11 = vsel %vm1567_vm2, %v1561_v61, 0.0 }
 0x58c   :  { %4609 = vrot.lane.b32.xlu0 %v4608_v20, %s4994_s23  ;;  %v1574_v12 = vrot.slane %v6422_v11, 6  ;;  %v1594_v13 = vrot.slane %v6422_v11, 4  ;;  %v1614_v16 = vrot.slane %v6422_v11, 2 }
 0x593   :  { %2646 = vrot.lane.b32.xlu1 %v2635_v5, %s4990_s26  ;;  %1579 = vrot.lane.b32.xlu2 %v1573_v6, %s4994_s23 }
 0x594   :  { %4619 = vrot.lane.b32.xlu0 %v4618_v9, %s4995_s0 }
 0x59b   :  { %1599 = vrot.lane.b32.xlu2 %v1593_v10, %s4993_s5 }
 0x59c   :  { %1619 = vrot.lane.b32.xlu0 %v1613_v60, %s4995_s0 }
 0x5a3   :  { %1581 = vrot.lane.b32.xlu2 %v1574_v12, %s4994_s23 }
 0x5a4   :  { %1601 = vrot.lane.b32.xlu0 %v1594_v13, %s4993_s5 }
 0x5ab   :  { %1621 = vrot.lane.b32.xlu2 %v1614_v16, %s4995_s0 }
 0x5ac   :  { %1637 = vrot.lane.b32.xlu0 %v6422_v11, %s4992_s8 }
 0x5b3   :  { %1728 = vperm.xlu2 %4623, %v1690_v17  }
 0x5b4   :  { %1723 = vperm.xlu0 %4624, %v1689_v24  }
 0x5bb   :  { %1718 = vperm.xlu2 %4623, %v1688_v18  }
 0x5bc   :  { %1698 = vperm.xlu0 %4624, %v1684_v25  }
 0x5c3   :  { %1708 = vperm.xlu2 %4623, %v1686_v19  }
 0x5c4   :  { %2642 = vrot.lane.b32.xlu0 %v2633_v22, %s4990_s26  ;;  %v1678_v22 = vld [vmem:[%s8642_s13 + $0x18] sm:$0xff] }
 0x5cb   :  { %1693 = vperm.xlu2 %4623, %v1683_v14  }
 0x5d3   :  { %2644 = vrot.lane.b32.xlu2 %v6370_v48, %s4990_s26 }
 0x5dd   :  { %v1632_v15 = vpop.permute.xlu2 %1631 }
 0x5e5   :  { %v4615_v23 = vpop.permute.xlu2 %4614  ;;  %v6456_v28 = vpop.permute.xlu1 %1635 }
 0x5e6   :  { %v4617_v33 = vunpack.i.h.bf16 %v4615_v23  ;;  %v4616_v41 = vunpack.i.l.bf16 %v4615_v23  ;;  %v1679_v23 = vld [vmem:[%s8642_s13 + $0x20] sm:$0xff] }
 0x5e8   :  { %v1604_v47 = vsel %vm8654_vm8, %v4616_v41, %v4617_v33 }
 0x5ed   :  { %v1580_v26 = vpop.permute.xlu2 %1579  ;;  %v6512_v13 = vpop.permute.xlu1 %1713 }
 0x5f5   :  { %v1600_v27 = vpop.permute.xlu2 %1599 }
 0x5f6   :  { %v1634_v29 = vpop.permute.xlu0 %1633  ;;  %v1605_v62 = vsel %vm8654_vm8, %v4617_v33, %v1600_v27 }
 0x5f7   :  { %v1640_v34 = vsel %vm8658_vm6, %v1632_v15, %v1634_v29  ;;  %v1641_v35 = vsel %vm8658_vm6, %v1634_v29, %v6456_v28  ;;  %v6535_v15 = vpop.permute.xlu1 %1703  ;;  %v1680_v29 = vld [vmem:[%s8642_s13 + $0x28] sm:$0xff] }
 0x5f8   :  { %4389 = vmatpush.msk.msra.mxu2 %vm1025_vm3, %v1640_v34  ;;  %4398 = vmatpush.msk.msra.mxu3 %vm1025_vm3, %v1641_v35 }
 0x5fd   :  { %v1582_v38 = vpop.permute.xlu2 %1581 }
 0x5fe   :  { %v4610_v39 = vpop.permute.xlu0 %4609  ;;  %v1586_v20 = vsel %vm8655_vm7, %v1580_v26, %v1582_v38  ;;  %v1650_v7 = vsel %vm1025_vm3, %v6422_v11, %v1582_v38 }
 0x5ff   :  { %v4612_v40 = vunpack.i.h.bf16 %v4610_v39  ;;  %v4611_v32 = vunpack.i.l.bf16 %v4610_v39  ;;  %v1649_v4 = vsel %vm1025_vm3, %v6377_v54, %v1586_v20  ;;  %v1655_v6 = vsel %vm8656_vm9, %v1650_v7, %v1582_v38  ;;  %v1677_v54 = vld [vmem:[%s8642_s13 + $0x10] sm:$0xff] }
 0x600   :  { %v1654_v9 = vsel %vm8656_vm9, %v1649_v4, %v1586_v20 }
 0x601   :  { %v1584_v42 = vsel %vm8655_vm7, %v4611_v32, %v4612_v40  ;;  %v1585_v45 = vsel %vm8655_vm7, %v4612_v40, %v1580_v26 }
 0x602   :  { %v1647_v43 = vsel %vm1025_vm3, %v6391_v59, %v1584_v42  ;;  %v1648_v49 = vsel %vm1025_vm3, %v6388_v58, %v1585_v45  ;;  %v1675_v58 = vld [vmem:[%s8642_s13] sm:$0xff] }
 0x603   :  { %v1652_v46 = vsel %vm8656_vm9, %v1647_v43, %v1584_v42  ;;  %v1653_v55 = vsel %vm8656_vm9, %v1648_v49, %v1585_v45 }
 0x604   :  { %v1656_v51 = vsel %vm8660_vm1, %v1652_v46, %v1604_v47  ;;  %v1657_v44 = vsel %vm8660_vm1, %v1653_v55, %v1605_v62 }
 0x605   :  { %v1622_v48 = vpop.permute.xlu2 %1621  ;;  %v1661_v57 = vsel %vm1660_vm11, %v1656_v51, %v1604_v47  ;;  %v1662_v8 = vsel %vm1660_vm11, %v1657_v44, %v1605_v62  ;;  %v1681_v47 = vld [vmem:[%s8642_s13 + $0x30] sm:$0xff] }
 0x606   :  { %v4620_v50 = vpop.permute.xlu0 %4619  ;;  %v3479_v44 = vld [vmem:[%s3478_s29] ss:$8 sm:$0xf] }
 0x607   :  { %v4622_v52 = vunpack.i.h.bf16 %v4620_v50  ;;  %v4621_v53 = vunpack.i.l.bf16 %v4620_v50  ;;  %v3493_v7 = vperm.slane %v3479_v44, 3 }
 0x609   :  { %v1624_v56 = vsel %vm8653_vm10, %v4621_v53, %v4622_v52  ;;  %v1682_v53 = vld [vmem:[%s8642_s13 + $0x38] sm:$0xff] }
 0x60a   :  { %v1666_v59 = vsel %vm8662_vm13, %v1661_v57, %v1624_v56 }
 0x60b   :  { %v1671_v63 = vsel %vm8661_vm5, %v1666_v59, %v1624_v56 }
 0x60c   :  { %1782 = vmatpush.msra.mxu2 %v1671_v63 }
 0x60d   :  { %4390 = vmatmul.msk.f32.vlgmr.msra.gmra.mxu2 %vm8657_vm4, %v1675_v58  ;;  %v6483_v31 = vpop.permute.xlu2 %1728 }
 0x60e   :  { %v1620_v0 = vpop.permute.xlu0 %1619 }
 0x60f   :  { %v1625_v1 = vsel %vm8653_vm10, %v4622_v52, %v1620_v0  ;;  %v1626_v16 = vsel %vm8653_vm10, %v1620_v0, %v1622_v48 }
 0x610   :  { %v1667_v2 = vsel %vm8662_vm13, %v1662_v8, %v1625_v1 }
 0x611   :  { %v1672_v21 = vsel %vm8661_vm5, %v1667_v2, %v1625_v1  ;;  %v3490_v1 = vperm.slane %v3479_v44, 0  ;;  %v3491_v2 = vperm.slane %v3479_v44, 1 }
 0x612   :  { %1823 = vmatpush.msra.mxu3 %v1672_v21 }
 0x613   :  { %4399 = vmatmul.msk.f32.vlgmr.msra.gmra.mxu3 %vm8657_vm4, %v1675_v58 }
 0x615   :  { %4391 = vmatmul.msk.f32.gmra.mxu2 %vm8657_vm4, %v1676_v3  ;;  %v6503_v60 = vpop.permute.xlu2 %1718 }
 0x616   :  { %v1602_v5 = vpop.permute.xlu0 %1601 }
 0x617   :  { %v1606_v30 = vsel %vm8654_vm8, %v1600_v27, %v1602_v5  ;;  %v1659_v10 = vsel %vm8660_vm1, %v1655_v6, %v1602_v5  ;;  %v3492_v6 = vperm.slane %v3479_v44, 2 }
 0x618   :  { %v1658_v61 = vsel %vm8660_vm1, %v1654_v9, %v1606_v30  ;;  %v1664_v11 = vsel %vm1660_vm11, %v1659_v10, %v1602_v5 }
 0x619   :  { %v1663_v12 = vsel %vm1660_vm11, %v1658_v61, %v1606_v30  ;;  %v1669_v17 = vsel %vm8662_vm13, %v1664_v11, %v1622_v48 }
 0x61a   :  { %v1668_v18 = vsel %vm8662_vm13, %v1663_v12, %v1626_v16  ;;  %v1674_v36 = vsel %vm8661_vm5, %v1669_v17, %v1622_v48 }
 0x61b   :  { %4400 = vmatmul.msk.f32.gmra.mxu3 %vm8657_vm4, %v1676_v3  ;;  %v1673_v37 = vsel %vm8661_vm5, %v1668_v18, %v1626_v16 }
 0x61d   :  { %4392 = vmatmul.msk.f32.gmra.mxu2 %vm8657_vm4, %v1677_v54  ;;  %v6524_v19 = vpop.permute.xlu2 %1708 }
 0x61e   :  { %v1638_v24 = vpop.permute.xlu0 %1637 }
 0x61f   :  { %v1642_v25 = vsel %vm8658_vm6, %v6456_v28, %v1638_v24  ;;  %4416 = vmatpush.msk.msra.mxu0 %vm1025_vm3, %v1638_v24  ;;  %v2641_v28 = vpop.permute.xlu1 %2640 }
 0x620   :  { %4407 = vmatpush.msk.msra.mxu1 %vm1025_vm3, %v1642_v25  ;;  %v6555_v34 = vsel %vm1558_vm15, 0.0, %v2641_v28 }
 0x621   :  { %1905 = vmatpush.msra.mxu0 %v1674_v36  ;;  %v2678_v32 = vrot.slane %v6555_v34, 4  ;;  %v2659_v42 = vrot.slane %v6555_v34, 6  ;;  %v2697_v49 = vrot.slane %v6555_v34, 2 }
 0x622   :  { %1864 = vmatpush.msra.mxu1 %v1673_v37  ;;  %4417 = vmatmul.msk.f32.vlgmr.msra.gmra.mxu0 %vm8657_vm4, %v1675_v58 }
 0x623   :  { %4401 = vmatmul.msk.f32.gmra.mxu3 %vm8657_vm4, %v1677_v54  ;;  %4408 = vmatmul.msk.f32.vlgmr.msra.gmra.mxu1 %vm8657_vm4, %v1675_v58  ;;  %v3470_v58 = vld [vmem:[%s3469_s28] ss:$8 sm:$0xf] }
 0x624   :  { %v3481_v0 = vperm.slane %v3470_v58, 0  ;;  %v3482_v8 = vperm.slane %v3470_v58, 1  ;;  %v3483_v4 = vperm.slane %v3470_v58, 2 }
 0x625   :  { %4393 = vmatmul.msk.f32.gmra.mxu2 %vm8657_vm4, %v1678_v22  ;;  %v6543_v26 = vpop.permute.xlu2 %1693 }
 0x626   :  { %v6533_v14 = vpop.permute.xlu0 %1723  ;;  %v3498_v20 = vsel %vm8652_vm14, %v3481_v0, %v3490_v1  ;;  %v3499_v21 = vsel %vm8652_vm14, %v3482_v8, %v3491_v2  ;;  %v3500_v9 = vsel %vm8652_vm14, %v3483_v4, %v3492_v6 }
 0x627   :  { %v2647_v55 = vpop.permute.xlu1 %2646 }
 0x62a   :  { %4418 = vmatmul.msk.f32.gmra.mxu0 %vm8657_vm4, %v1676_v3 }
 0x62b   :  { %4402 = vmatmul.msk.f32.gmra.mxu3 %vm8657_vm4, %v1678_v22  ;;  %4409 = vmatmul.msk.f32.gmra.mxu1 %vm8657_vm4, %v1676_v3  ;;  %v3484_v3 = vperm.slane %v3470_v58, 3 }
 0x62d   :  { %4394 = vmatmul.msk.f32.gmra.mxu2 %vm8657_vm4, %v1679_v23  ;;  %v2645_v35 = vpop.permute.xlu2 %2644  ;;  %v3501_v5 = vsel %vm8652_vm14, %v3484_v3, %v3493_v7 }
 0x62e   :  { %v6546_v27 = vpop.permute.xlu0 %1698  ;;  %v2650_v56 = vsel %vm1558_vm15, %v2645_v35, %v2647_v55 }
 0x62f   :  { %v6604_v57 = vsel %vm1567_vm2, %v2650_v56, 0.0 }
 0x630   :  { %v2681_v59 = vrot.slane %v6604_v57, 4  ;;  %v2700_v62 = vrot.slane %v6604_v57, 2  ;;  %v2662_v63 = vrot.slane %v6604_v57, 6 }
 0x632   :  { %4419 = vmatmul.msk.f32.gmra.mxu0 %vm8657_vm4, %v1677_v54 }
 0x633   :  { %4403 = vmatmul.msk.f32.gmra.mxu3 %vm8657_vm4, %v1679_v23  ;;  %4410 = vmatmul.msk.f32.gmra.mxu1 %vm8657_vm4, %v1677_v54 }
 0x635   :  { %4395 = vmatmul.msk.f32.gmra.mxu2 %vm8657_vm4, %v1680_v29 }
 0x636   :  { %v2643_v38 = vpop.permute.xlu0 %2642 }
 0x637   :  { %v6559_v39 = vsel %vm1558_vm15, %v2641_v28, %v2643_v38  ;;  %v6562_v40 = vsel %vm1558_vm15, %v2643_v38, %v2645_v35 }
 0x638   :  { %v2661_v33 = vrot.slane %v6562_v40, 6  ;;  %v2679_v41 = vrot.slane %v6559_v39, 4  ;;  %v2660_v43 = vrot.slane %v6559_v39, 6  ;;  %v2698_v48 = vrot.slane %v6559_v39, 2 }
 0x639   :  { %v2699_v51 = vrot.slane %v6562_v40, 2  ;;  %v2680_v52 = vrot.slane %v6562_v40, 4 }
 0x63a   :  { %4420 = vmatmul.msk.f32.gmra.mxu0 %vm8657_vm4, %v1678_v22  ;;  %2667 = vrot.lane.b32.xlu2 %v2661_v33, %s4994_s23  ;;  %v4631_v45 = vpack.i.bf16 %v2679_v41, %v2678_v32  ;;  %v4626_v46 = vpack.i.bf16 %v2660_v43, %v2659_v42  ;;  %v4636_v50 = vpack.i.bf16 %v2698_v48, %v2697_v49 }
 0x63b   :  { %4404 = vmatmul.msk.f32.gmra.mxu3 %vm8657_vm4, %v1680_v29  ;;  %4411 = vmatmul.msk.f32.gmra.mxu1 %vm8657_vm4, %v1678_v22 }
 0x63c   :  { %4632 = vrot.lane.b32.xlu1 %v4631_v45, %s4993_s5  ;;  %4627 = vrot.lane.b32.xlu0 %v4626_v46, %s4994_s23 }
 0x63d   :  { %4396 = vmatmul.msk.f32.gmra.mxu2 %vm8657_vm4, %v1681_v47 }
 0x642   :  { %4421 = vmatmul.msk.f32.gmra.mxu0 %vm8657_vm4, %v1679_v23  ;;  %4637 = vrot.lane.b32.xlu2 %v4636_v50, %s4995_s0 }
 0x643   :  { %4405 = vmatmul.msk.f32.gmra.mxu3 %vm8657_vm4, %v1681_v47  ;;  %4412 = vmatmul.msk.f32.gmra.mxu1 %vm8657_vm4, %v1679_v23 }
 0x644   :  { %2705 = vrot.lane.b32.xlu1 %v2699_v51, %s4995_s0  ;;  %2686 = vrot.lane.b32.xlu0 %v2680_v52, %s4993_s5 }
 0x645   :  { %4397 = vmatmul.msk.f32.gmra.mxu2 %vm8657_vm4, %v1682_v53 }
 0x64a   :  { %4422 = vmatmul.msk.f32.gmra.mxu0 %vm8657_vm4, %v1680_v29  ;;  %2718 = vrot.lane.b32.xlu2 %v6559_v39, %s4992_s8 }
 0x64b   :  { %4406 = vmatmul.msk.f32.gmra.mxu3 %vm8657_vm4, %v1682_v53  ;;  %4413 = vmatmul.msk.f32.gmra.mxu1 %vm8657_vm4, %v1680_v29 }
 0x64c   :  { %2720 = vrot.lane.b32.xlu1 %v6562_v40, %s4992_s8  ;;  %2716 = vrot.lane.b32.xlu0 %v6555_v34, %s4992_s8 }
 0x652   :  { %4423 = vmatmul.msk.f32.gmra.mxu0 %vm8657_vm4, %v1681_v47  ;;  %2688 = vrot.lane.b32.xlu2 %v2681_v59, %s4993_s5 }
 0x653   :  { %4414 = vmatmul.msk.f32.gmra.mxu1 %vm8657_vm4, %v1681_v47 }
 0x654   :  { %2707 = vrot.lane.b32.xlu1 %v2700_v62, %s4995_s0  ;;  %2669 = vrot.lane.b32.xlu0 %v2662_v63, %s4994_s23 }
 0x65a   :  { %4424 = vmatmul.msk.f32.gmra.mxu0 %vm8657_vm4, %v1682_v53  ;;  %3506 = vrot.lane.b32.xlu2 %v3498_v20, %s4990_s26 }
 0x65b   :  { %4415 = vmatmul.msk.f32.gmra.mxu1 %vm8657_vm4, %v1682_v53 }
 0x65c   :  { %3508 = vrot.lane.b32.xlu1 %v3499_v21, %s4990_s26  ;;  %2722 = vrot.lane.b32.xlu0 %v6604_v57, %s4992_s8 }
 0x662   :  { %3512 = vrot.lane.b32.xlu2 %v3501_v5, %s4990_s26 }
 0x664   :  { %3510 = vrot.lane.b32.xlu0 %v3500_v9, %s4990_s26 }
 0x690   :  { %v1784_v30 = vpop.f32.mrf.mxu2 }
 0x691   :  { %v1785_v21 = vadd.f32 %v1784_v30, %v6543_v26 }
 0x693   :  { %vm1931_vm14 = vcmp.gt.f32.partialorder %v1785_v21, 0.0 }
 0x694   :  { %v6628_v61 = vpop.permute.xlu2 %2667 }
 0x696   :  { %v6626_v10 = vpop.f32.mrf.mxu3 }
 0x698   :  { %v1787_v11 = vpop.f32.mrf.mxu2 }
 0x69c   :  { %v4638_v24 = vpop.permute.xlu2 %4637 }
 0x69d   :  { %v4640_v46 = vunpack.i.h.bf16 %v4638_v24  ;;  %v4639_v44 = vunpack.i.l.bf16 %v4638_v24 }
 0x69e   :  { %v1828_v54 = vpop.f32.mrf.mxu3 }
 0x69f   :  { %v6630_v12 = vpop.f32.mrf.mxu0  ;;  %v2709_v7 = vsel %vm8653_vm10, %v4639_v44, %v4640_v46 }
 0x6a0   :  { %v1790_v16 = vpop.f32.mrf.mxu2  ;;  %v6632_v17 = vpop.f32.mrf.mxu1 }
 0x6a4   :  { %v2719_v22 = vpop.permute.xlu2 %2718 }
 0x6a6   :  { %v1831_v18 = vpop.f32.mrf.mxu3 }
 0x6a7   :  { %v6634_v25 = vpop.f32.mrf.mxu0 }
 0x6a8   :  { %v1793_v36 = vpop.f32.mrf.mxu2  ;;  %v6636_v37 = vpop.f32.mrf.mxu1 }
 0x6ac   :  { %v6649_v47 = vpop.permute.xlu2 %2688 }
 0x6ae   :  { %v4633_v23 = vpop.permute.xlu1 %4632  ;;  %v4628_v28 = vpop.permute.xlu0 %4627 }
 0x6af   :  { %v4630_v29 = vunpack.i.h.bf16 %v4628_v28  ;;  %v4629_v35 = vunpack.i.l.bf16 %v4628_v28  ;;  %v6638_v38 = vpop.f32.mrf.mxu3  ;;  %v6640_v32 = vpop.f32.mrf.mxu0  ;;  %v4635_v48 = vunpack.i.h.bf16 %v4633_v23  ;;  %v4634_v49 = vunpack.i.l.bf16 %v4633_v23 }
 0x6b0   :  { %v1796_v33 = vpop.f32.mrf.mxu2  ;;  %v6642_v41 = vpop.f32.mrf.mxu1 }
 0x6b1   :  { %v2672_v42 = vsel %vm8655_vm7, %v4630_v29, %v6628_v61  ;;  %v2671_v43 = vsel %vm8655_vm7, %v4629_v35, %v4630_v29  ;;  %v2690_v8 = vsel %vm8654_vm8, %v4634_v49, %v4635_v48  ;;  %v6711_v49 = vadd.f32 %v6626_v10, %v6543_v26 }
 0x6b2   :  { %v2732_v45 = vsel %vm1025_vm3, %v6559_v39, %v2672_v42  ;;  %v2731_v50 = vsel %vm1025_vm3, %v6555_v34, %v2671_v43 }
 0x6b3   :  { %v2736_v39 = vsel %vm8656_vm9, %v2732_v45, %v2672_v42  ;;  %v2735_v0 = vsel %vm8656_vm9, %v2731_v50, %v2671_v43  ;;  %v1963_v43 = vmul.f32 0.01, %v1785_v21  ;;  %v6698_v45 = vadd.f32 %v1787_v11, %v6546_v27 }
 0x6b4   :  { %v2739_v20 = vsel %vm8660_vm1, %v2735_v0, %v2690_v8  ;;  %v6714_v50 = vadd.f32 %v1793_v36, %v6524_v19 }
 0x6b5   :  { %v2743_v4 = vsel %vm1660_vm11, %v2739_v20, %v2690_v8  ;;  %v6716_v11 = vsel %vm1931_vm14, %v1785_v21, %v1963_v43  ;;  %vm1935_vm14 = vcmp.gt.f32.partialorder %v6698_v45, 0.0 }
 0x6b6   :  { %v2706_v51 = vpop.permute.xlu1 %2705  ;;  %v2687_v52 = vpop.permute.xlu0 %2686  ;;  %v2747_v9 = vsel %vm8662_vm13, %v2743_v4, %v2709_v7 }
 0x6b7   :  { %v2710_v53 = vsel %vm8653_vm10, %v4640_v46, %v2706_v51  ;;  %v2691_v55 = vsel %vm8654_vm8, %v4635_v48, %v2687_v52  ;;  %v6657_v56 = vsel %vm8654_vm8, %v2687_v52, %v6649_v47  ;;  %v6660_v59 = vpop.f32.mrf.mxu3  ;;  %v6662_v58 = vpop.f32.mrf.mxu0  ;;  %v6693_v29 = vsel %vm8661_vm5, %v2747_v9, %v2709_v7 }
 0x6b8   :  { %v2740_v62 = vsel %vm8660_vm1, %v2736_v39, %v2691_v55  ;;  %v1799_v63 = vpop.f32.mrf.mxu2  ;;  %v6665_v34 = vpop.f32.mrf.mxu1  ;;  %8673 = vst [vmem:[#allocation7_spill] sm:$0xff] %v6693_v29  ;;  %v6701_v46 = vadd.f32 %v1828_v54, %v6546_v27  ;;  %v6707_v48 = vadd.f32 %v1831_v18, %v6535_v15  ;;  %v6719_v54 = vadd.f32 %v1796_v33, %v6512_v13 }
 0x6b9   :  { %v2744_v1 = vsel %vm1660_vm11, %v2740_v62, %v2691_v55  ;;  %v3507_v52 = vpop.permute.xlu2 %3506  ;;  %v6725_v18 = vmul.f32 0.01, %v6698_v45  ;;  %v1975_v7 = vmul.f32 0.01, %v6714_v50  ;;  %v1838_v9 = vadd.f32 %v6660_v59, %v6512_v13 }
 0x6ba   :  { %v2748_v2 = vsel %vm8662_vm13, %v2744_v1, %v2710_v53  ;;  %v6728_v10 = vmul.f32 0.01, %v6701_v46  ;;  %v1800_v1 = vadd.f32 %v1799_v63, %v6503_v60  ;;  %v6759_v4 = vsel %vm1558_vm15, 0.0, %v3507_v52 }
 0x6bb   :  { %v6674_v3 = vsel %vm8661_vm5, %v2748_v2, %v2710_v53  ;;  %vm1947_vm8 = vcmp.gt.f32.partialorder %v6719_v54, 0.0  ;;  %vm1940_vm4 = vcmp.gt.f32.partialorder %v6707_v48, 0.0  ;;  %v1979_v29 = vmul.f32 0.01, %v6719_v54 }
 0x6bc   :  { %v1983_v43 = vmul.f32 0.01, %v1800_v1 }
 0x6be   :  { %v6678_v6 = vpop.permute.xlu1 %2720  ;;  %v2717_v5 = vpop.permute.xlu0 %2716 }
 0x6bf   :  { %v6683_v24 = vsel %vm8658_vm6, %v2719_v22, %v6678_v6  ;;  %v6686_v23 = vsel %vm8658_vm6, %v2717_v5, %v2719_v22  ;;  %v6688_v30 = vpop.f32.mrf.mxu3  ;;  %v6690_v28 = vpop.f32.mrf.mxu0  ;;  %v6704_v22 = vadd.f32 %v1790_v16, %v6535_v15 }
 0x6c0   :  { %8672 = vst [vmem:[#allocation6_spill] sm:$0xff] %v6686_v23  ;;  %v1802_v35 = vpop.f32.mrf.mxu2  ;;  %v6695_v42 = vpop.f32.mrf.mxu1 }
 0x6c1   :  { %v6722_v55 = vmul.f32 0.01, %v6704_v22  ;;  %v1803_v36 = vadd.f32 %v1802_v35, %v6533_v14 }
 0x6c3   :  { %vm1955_vm12 = vcmp.gt.f32.partialorder %v1803_v36, 0.0 }
 0x6c6   :  { %v2708_v53 = vpop.permute.xlu1 %2707  ;;  %v2670_v16 = vpop.permute.xlu0 %2669 }
 0x6c7   :  { %v2711_v39 = vsel %vm8653_vm10, %v2706_v51, %v2708_v53  ;;  %v2673_v62 = vsel %vm8655_vm7, %v6628_v61, %v2670_v16  ;;  %v2734_v33 = vsel %vm1025_vm3, %v6604_v57, %v2670_v16  ;;  %v1843_v44 = vpop.f32.mrf.mxu3  ;;  %v6736_v0 = vpop.f32.mrf.mxu0  ;;  %v6746_v61 = vmul.f32 0.01, %v6707_v48 }
 0x6c8   :  { %v2733_v8 = vsel %vm1025_vm3, %v6562_v40, %v2673_v62  ;;  %v2738_v2 = vsel %vm8656_vm9, %v2734_v33, %v2670_v16  ;;  %v1805_v20 = vpop.f32.mrf.mxu2  ;;  %v6742_v21 = vpop.f32.mrf.mxu1  ;;  %vm1936_vm10 = vcmp.gt.f32.partialorder %v6701_v46, 0.0  ;;  %v6756_v40 = vadd.f32 %v6638_v38, %v6524_v19 }
 0x6c9   :  { %v2737_v57 = vsel %vm8656_vm9, %v2733_v8, %v2673_v62  ;;  %v2742_v51 = vsel %vm8660_vm1, %v2738_v2, %v6649_v47  ;;  %v1806_v63 = vadd.f32 %v1805_v20, %v6483_v31  ;;  %vm1943_vm7 = vcmp.gt.f32.partialorder %v6714_v50, 0.0 }
 0x6ca   :  { %v2741_v5 = vsel %vm8660_vm1, %v2737_v57, %v6657_v56  ;;  %vm1939_vm9 = vcmp.gt.f32.partialorder %v6704_v22, 0.0  ;;  %v1987_v38 = vmul.f32 0.01, %v1803_v36  ;;  %v2746_v16 = vsel %vm1660_vm11, %v2742_v51, %v6649_v47 }
 0x6cb   :  { %v1991_v35 = vmul.f32 0.01, %v1806_v63  ;;  %vm1959_vm6 = vcmp.gt.f32.partialorder %v1806_v63, 0.0  ;;  %v2745_v62 = vsel %vm1660_vm11, %v2741_v5, %v6657_v56  ;;  %v1844_v33 = vadd.f32 %v1843_v44, %v6533_v14 }
 0x6cc   :  { %v2750_v2 = vsel %vm8662_vm13, %v2746_v16, %v2708_v53  ;;  %v2749_v20 = vsel %vm8662_vm13, %v2745_v62, %v2711_v39  ;;  %vm1951_vm1 = vcmp.gt.f32.partialorder %v1800_v1, 0.0  ;;  %v3544_v5 = vrot.slane %v6759_v4, 4 }
 0x6cd   :  { %v2023_v8 = vsel %vm1959_vm6, %v1806_v63, %v1991_v35  ;;  %v6780_v23 = vsel %vm8661_vm5, %v2750_v2, %v2708_v53  ;;  %v6783_v47 = vsel %vm8661_vm5, %v2749_v20, %v2711_v39  ;;  %v2019_v63 = vsel %vm1955_vm12, %v1803_v36, %v1987_v38 }
 0x6ce   :  { %v3509_v57 = vpop.permute.xlu1 %3508  ;;  %v6776_v59 = vpop.permute.xlu0 %2722  ;;  %2051 = vmatpush.msrb.mxu2 %v2023_v8  ;;  %8674 = vst [vmem:[#allocation8_spill] sm:$0xff] %v6780_v23  ;;  %v3525_v35 = vrot.slane %v6759_v4, 6  ;;  %v1841_v16 = vadd.f32 %v6688_v30, %v6503_v60  ;;  %v2015_v8 = vsel %vm1951_vm1, %v1800_v1, %v1983_v43  ;;  %v1988_v2 = vmul.f32 0.01, %v1844_v33 }
 0x6cf   :  { %8675 = vst [vmem:[#allocation9_spill] sm:$0xff] %v6783_v47  ;;  %v6786_v56 = vsel %vm1558_vm15, %v3507_v52, %v3509_v57  ;;  %v1846_v44 = vpop.f32.mrf.mxu3  ;;  %v1925_v51 = vpop.f32.mrf.mxu0  ;;  %v1980_v20 = vmul.f32 0.01, %v1838_v9  ;;  %v1976_v36 = vmul.f32 0.01, %v6756_v40  ;;  %vm1956_vm6 = vcmp.gt.f32.partialorder %v1844_v33, 0.0 }
 0x6d0   :  { %v1847_v53 = vadd.f32 %v1846_v44, %v6483_v31  ;;  %v1884_v62 = vpop.f32.mrf.mxu1  ;;  %2052 = vmatpush.msrb.mxu2 %v2019_v63  ;;  %v3545_v39 = vrot.slane %v6786_v56, 4  ;;  %v3526_v52 = vrot.slane %v6786_v56, 6  ;;  %v1999_v30 = vsel %vm1935_vm14, %v6698_v45, %v6725_v18 }
 0x6d1   :  { %vm1948_vm5 = vcmp.gt.f32.partialorder %v1838_v9, 0.0  ;;  %vm1944_vm13 = vcmp.gt.f32.partialorder %v6756_v40, 0.0  ;;  %v2011_v1 = vsel %vm1947_vm8, %v6719_v54, %v1979_v29  ;;  %v1984_v44 = vmul.f32 0.01, %v1841_v16 }
 0x6d2   :  { %v1992_v38 = vmul.f32 0.01, %v1847_v53  ;;  %2053 = vmatpush.msrb.mxu2 %v2015_v8  ;;  %v4646_v47 = vpack.i.bf16 %v3545_v39, %v3544_v5  ;;  %v4641_v23 = vpack.i.bf16 %v3526_v52, %v3525_v35  ;;  %vm1960_vm12 = vcmp.gt.f32.partialorder %v1847_v53, 0.0 }
 0x6d3   :  { %v6812_v63 = vsel %vm1936_vm10, %v6701_v46, %v6728_v10  ;;  %v2007_v45 = vsel %vm1943_vm7, %v6714_v50, %v1975_v7  ;;  %vm1952_vm1 = vcmp.gt.f32.partialorder %v1841_v16, 0.0  ;;  %v2004_v29 = vsel %vm1940_vm4, %v6707_v48, %v6746_v61 }
 0x6d4   :  { %4647 = vrot.lane.b32.xlu2 %v4646_v47, %s4993_s5  ;;  %4642 = vrot.lane.b32.xlu1 %v4641_v23, %s4994_s23  ;;  %v2024_v43 = vsel %vm1960_vm12, %v1847_v53, %v1992_v38  ;;  %v2003_v23 = vsel %vm1939_vm9, %v6704_v22, %v6722_v55  ;;  %v6827_v46 = vadd.f32 %v6640_v32, %v6535_v15  ;;  %vm1932_vm4 = vcmp.gt.f32.partialorder %v6711_v49, 0.0 }
 0x6d5   :  { %2054 = vmatpush.msrb.mxu2 %v2011_v1  ;;  %2080 = vmatpush.msrb.mxu3 %v2024_v43  ;;  %v2020_v18 = vsel %vm1956_vm6, %v1844_v33, %v1988_v2  ;;  %v2012_v50 = vsel %vm1948_vm5, %v1838_v9, %v1980_v20  ;;  %v2008_v22 = vsel %vm1944_vm13, %v6756_v40, %v1976_v36  ;;  %v3564_v8 = vrot.slane %v6786_v56, 2 }
 0x6d6   :  { %v6829_v54 = vpop.permute.xlu0 %3510  ;;  %v6838_v55 = vadd.f32 %v6690_v28, %v6512_v13  ;;  %v1926_v48 = vadd.f32 %v1925_v51, %v6533_v14  ;;  %v1885_v61 = vadd.f32 %v1884_v62, %v6533_v14  ;;  %v2016_v9 = vsel %vm1952_vm1, %v1841_v16, %v1984_v44 }
 0x6d7   :  { %v6843_v32 = vsel %vm1558_vm15, %v3509_v57, %v6829_v54  ;;  %2055 = vmatpush.msrb.mxu2 %v2007_v45  ;;  %2081 = vmatpush.msrb.mxu3 %v2020_v18  ;;  %v1928_v10 = vpop.f32.mrf.mxu0  ;;  %v1923_v33 = vadd.f32 %v6736_v0, %v6503_v60  ;;  %v1882_v57 = vadd.f32 %v6742_v21, %v6503_v60  ;;  %v1964_v51 = vmul.f32 0.01, %v6711_v49  ;;  %v6864_v21 = vld [vmem:[%s8644_s15] sm:$0xff] }
 0x6d8   :  { %v1929_v7 = vadd.f32 %v1928_v10, %v6483_v31  ;;  %v1887_v40 = vpop.f32.mrf.mxu1  ;;  %v3527_v28 = vrot.slane %v6843_v32, 6  ;;  %v3565_v35 = vrot.slane %v6843_v32, 2  ;;  %v3546_v16 = vrot.slane %v6843_v32, 4 }
 0x6d9   :  { %v1888_v47 = vadd.f32 %v1887_v40, %v6483_v31  ;;  %2056 = vmatpush.msrb.mxu2 %v2003_v23  ;;  %2082 = vmatpush.msrb.mxu3 %v2016_v9  ;;  %v1879_v0 = vadd.f32 %v6695_v42, %v6512_v13  ;;  %v1990_v62 = vmul.f32 0.01, %v1926_v48  ;;  %vm1958_vm8 = vcmp.gt.f32.partialorder %v1926_v48, 0.0 }
 0x6da   :  { %v1994_v5 = vmul.f32 0.01, %v1929_v7  ;;  %3533 = vrot.lane.b32.xlu0 %v3527_v28, %s4994_s23  ;;  %vm1962_vm5 = vcmp.gt.f32.partialorder %v1929_v7, 0.0  ;;  %v1989_v52 = vmul.f32 0.01, %v1885_v61  ;;  %vm1957_vm9 = vcmp.gt.f32.partialorder %v1885_v61, 0.0 }
 0x6db   :  { %v1993_v53 = vmul.f32 0.01, %v1888_v47  ;;  %2057 = vmatpush.msrb.mxu2 %v1999_v30  ;;  %2083 = vmatpush.msrb.mxu3 %v2012_v50  ;;  %vm1961_vm7 = vcmp.gt.f32.partialorder %v1888_v47, 0.0  ;;  %v1986_v2 = vmul.f32 0.01, %v1923_v33  ;;  %v3563_v20 = vrot.slane %v6759_v4, 2 }
 0x6dc   :  { %3571 = vrot.lane.b32.xlu2 %v3565_v35, %s4995_s0  ;;  %3552 = vrot.lane.b32.xlu1 %v3546_v16, %s4993_s5  ;;  %v2026_v39 = vsel %vm1962_vm5, %v1929_v7, %v1994_v5  ;;  %v1917_v36 = vadd.f32 %v6662_v58, %v6524_v19  ;;  %v1876_v38 = vadd.f32 %v6665_v34, %v6524_v19  ;;  %vm1954_vm10 = vcmp.gt.f32.partialorder %v1923_v33, 0.0 }
 0x6dd   :  { %2058 = vmatpush.msrb.mxu2 %v6716_v11  ;;  %2084 = vmatpush.msrb.mxu3 %v2008_v22  ;;  %v2025_v42 = vsel %vm1961_vm7, %v1888_v47, %v1993_v53  ;;  %v1985_v30 = vmul.f32 0.01, %v1882_v57  ;;  %v1873_v11 = vadd.f32 %v6642_v41, %v6535_v15  ;;  %v2022_v1 = vsel %vm1958_vm8, %v1926_v48, %v1990_v62  ;;  %v2221_v47 = vld [vmem:[%s8645_s16 + $0x1f0] sm:$0xff] }
 0x6de   :  { %4425 = vmatmul.msk.f32.vlgmr.msrb.gmra.mxu2 %vm158_vm0, %v6864_v21  ;;  %2138 = vmatpush.msrb.mxu0 %v2026_v39  ;;  %vm1953_vm13 = vcmp.gt.f32.partialorder %v1882_v57, 0.0  ;;  %v1982_v43 = vmul.f32 0.01, %v6838_v55  ;;  %v2021_v58 = vsel %vm1957_vm9, %v1885_v61, %v1989_v52  ;;  %v4651_v34 = vpack.i.bf16 %v3564_v8, %v3563_v20  ;;  %v2029_v53 = vld [vmem:[%s8644_s15 + $0x10] sm:$0xff]  ;;  %v2219_v39 = vld [vmem:[%s8645_s16 + $0x1e0] sm:$0xff] }
 0x6df   :  { %2085 = vmatpush.msrb.mxu3 %v2004_v29  ;;  %2109 = vmatpush.msrb.mxu1 %v2025_v42  ;;  %vm1950_vm14 = vcmp.gt.f32.partialorder %v6838_v55, 0.0  ;;  %v1981_v44 = vmul.f32 0.01, %v1879_v0  ;;  %v1911_v45 = vadd.f32 %v6634_v25, %v6546_v27  ;;  %v2018_v41 = vsel %vm1954_vm10, %v1923_v33, %v1986_v2  ;;  %v2253_v52 = vld [vmem:[%s8645_s16 + $0x2f0] sm:$0xff]  ;;  %v2030_v2 = vld [vmem:[%s8644_s15 + $0x18] sm:$0xff]  ;;  %v2251_v20 = vld [vmem:[%s8645_s16 + $0x2e0] sm:$0xff] }
 0x6e0   :  { %2139 = vmatpush.msrb.mxu0 %v2022_v1  ;;  %v1996_v23 = vsel %vm1932_vm4, %v6711_v49, %v1964_v51  ;;  %vm1949_vm12 = vcmp.gt.f32.partialorder %v1879_v0, 0.0  ;;  %v1870_v29 = vadd.f32 %v6636_v37, %v6546_v27  ;;  %v2017_v18 = vsel %vm1953_vm13, %v1882_v57, %v1985_v30  ;;  %v6901_v49 = vld [vmem:[%s8644_s15 + $0x8] sm:$0xff]  ;;  %v2217_v8 = vld [vmem:[%s8645_s16 + $0x1d0] sm:$0xff]  ;;  %v2211_v30 = vld [vmem:[%s8645_s16 + $0x1a0] sm:$0xff] }
 0x6e1   :  { %2086 = vmatpush.msrb.mxu3 %v6812_v63  ;;  %2110 = vmatpush.msrb.mxu1 %v2021_v58  ;;  %v1978_v50 = vmul.f32 0.01, %v1917_v36  ;;  %v1977_v22 = vmul.f32 0.01, %v1876_v38  ;;  %v1908_v25 = vadd.f32 %v6630_v12, %v6543_v26  ;;  %v2014_v63 = vsel %vm1950_vm14, %v6838_v55, %v1982_v43  ;;  %v3513_v55 = vpop.permute.xlu2 %3512  ;;  %v2209_v1 = vld [vmem:[%s8645_s16 + $0x190] sm:$0xff]  ;;  %v2207_v58 = vld [vmem:[%s8645_s16 + $0x180] sm:$0xff] }
 0x6e2   :  { %2140 = vmatpush.msrb.mxu0 %v2018_v41  ;;  %4652 = vrot.lane.b32.xlu0 %v4651_v34, %s4995_s0  ;;  %vm1946_vm6 = vcmp.gt.f32.partialorder %v1917_v36, 0.0  ;;  %vm1945_vm1 = vcmp.gt.f32.partialorder %v1876_v38, 0.0  ;;  %v1867_v37 = vadd.f32 %v6632_v17, %v6543_v26  ;;  %v2013_v12 = vsel %vm1949_vm12, %v1879_v0, %v1981_v44  ;;  %v2245_v43 = vld [vmem:[%s8645_s16 + $0x2b0] sm:$0xff]  ;;  %v2243_v34 = vld [vmem:[%s8645_s16 + $0x2a0] sm:$0xff] }
 0x6e3   :  { %2111 = vmatpush.msrb.mxu1 %v2017_v18  ;;  %2087 = vmatpush.msrb.mxu3 %v1996_v23  ;;  %v1974_v48 = vmul.f32 0.01, %v6827_v46  ;;  %v1973_v10 = vmul.f32 0.01, %v1873_v11  ;;  %vm1942_vm4 = vcmp.gt.f32.partialorder %v6827_v46, 0.0  ;;  %vm1941_vm5 = vcmp.gt.f32.partialorder %v1873_v11, 0.0 }
 0x6e4   :  { %4429 = vmatmul.msk.f32.vlgmr.msrb.gmra.mxu3 %vm158_vm0, %v6864_v21  ;;  %2141 = vmatpush.msrb.mxu0 %v2014_v63  ;;  %v1970_v61 = vmul.f32 0.01, %v1911_v45  ;;  %v3516_v17 = vsel %vm1558_vm15, %v6829_v54, %v3513_v55  ;;  %v2010_v7 = vsel %vm1946_vm6, %v1917_v36, %v1978_v50  ;;  %v2009_v40 = vsel %vm1945_vm1, %v1876_v38, %v1977_v22  ;;  %v2213_v36 = vld [vmem:[%s8645_s16 + $0x1b0] sm:$0xff]  ;;  %v2203_v41 = vld [vmem:[%s8645_s16 + $0x160] sm:$0xff] }
 0x6e5   :  { %2112 = vmatpush.msrb.mxu1 %v2013_v12  ;;  %3586 = vrot.lane.b32.xlu2 %v6843_v32, %s4992_s8  ;;  %v1969_v9 = vmul.f32 0.01, %v1870_v29  ;;  %vm1938_vm7 = vcmp.gt.f32.partialorder %v1911_v45, 0.0  ;;  %vm1937_vm8 = vcmp.gt.f32.partialorder %v1870_v29, 0.0  ;;  %v2006_v28 = vsel %vm1942_vm4, %v6827_v46, %v1974_v48  ;;  %v2249_v38 = vld [vmem:[%s8645_s16 + $0x2d0] sm:$0xff]  ;;  %v2239_v23 = vld [vmem:[%s8645_s16 + $0x280] sm:$0xff] }
 0x6e6   :  { %3582 = vrot.lane.b32.xlu1 %v6759_v4, %s4992_s8  ;;  %4426 = vmatmul.msk.f32.gmra.mxu2 %vm158_vm0, %v6901_v49  ;;  %v2005_v33 = vsel %vm1941_vm5, %v1873_v11, %v1973_v10  ;;  %v1966_v57 = vmul.f32 0.01, %v1908_v25  ;;  %v1965_v54 = vmul.f32 0.01, %v1867_v37  ;;  %v6925_v51 = vsel %vm1567_vm2, %v3516_v17, 0.0  ;;  %v2247_v11 = vld [vmem:[%s8645_s16 + $0x2c0] sm:$0xff] }
 0x6e7   :  { %2142 = vmatpush.msrb.mxu0 %v2010_v7  ;;  %2113 = vmatpush.msrb.mxu1 %v2009_v40  ;;  %vm1934_vm9 = vcmp.gt.f32.partialorder %v1908_v25, 0.0  ;;  %vm1933_vm10 = vcmp.gt.f32.partialorder %v1867_v37, 0.0  ;;  %v2002_v5 = vsel %vm1938_vm7, %v1911_v45, %v1970_v61  ;;  %v2001_v35 = vsel %vm1937_vm8, %v1870_v29, %v1969_v9  ;;  %v2205_v44 = vld [vmem:[%s8645_s16 + $0x170] sm:$0xff]  ;;  %v2199_v50 = vld [vmem:[%s8645_s16 + $0x140] sm:$0xff] }
 0x6e8   :  { %2300 = vmatpush.msra.mxu3 %v2221_v47  ;;  %v1998_v46 = vsel %vm1934_vm9, %v1908_v25, %v1966_v57  ;;  %v1997_v16 = vsel %vm1933_vm10, %v1867_v37, %v1965_v54  ;;  %v3566_v0 = vrot.slane %v6925_v51, 2  ;;  %v3528_v62 = vrot.slane %v6925_v51, 6  ;;  %v2241_v45 = vld [vmem:[%s8645_s16 + $0x290] sm:$0xff]  ;;  %v2235_v22 = vld [vmem:[%s8645_s16 + $0x260] sm:$0xff]  ;;  %v2220_v54 = vld [vmem:[%s8645_s16 + $0x1e8] sm:$0xff] }
 0x6e9   :  { %2143 = vmatpush.msrb.mxu0 %v2006_v28  ;;  %2114 = vmatpush.msrb.mxu1 %v2005_v33  ;;  %v3547_v42 = vrot.slane %v6925_v51, 4  ;;  %v2201_v29 = vld [vmem:[%s8645_s16 + $0x150] sm:$0xff]  ;;  %v2187_v63 = vld [vmem:[%s8645_s16 + $0xe0] sm:$0xff]  ;;  %v2222_v28 = vld [vmem:[%s8645_s16 + $0x1f8] sm:$0xff]  ;;  %vm8676_vm2 = vcmask 130048   ;;  %vm8677_vm13 = vcmask 1014784  }
 0x6ea   :  { %3584 = vrot.lane.b32.xlu0 %v6786_v56, %s4992_s8  ;;  %2301 = vmatpush.msra.mxu3 %v2219_v39  ;;  %v2237_v18 = vld [vmem:[%s8645_s16 + $0x270] sm:$0xff]  ;;  %v2195_v48 = vld [vmem:[%s8645_s16 + $0x120] sm:$0xff]  ;;  %vm8680_vm14 = vmmov %vm8676_vm2  ;;  %vm8689_vm8 = vcmask 80896  }
 0x6eb   :  { %2144 = vmatpush.msrb.mxu0 %v2002_v5  ;;  %2115 = vmatpush.msrb.mxu1 %v2001_v35  ;;  %v2189_v25 = vld [vmem:[%s8645_s16 + $0xf0] sm:$0xff]  ;;  %v2231_v10 = vld [vmem:[%s8645_s16 + $0x240] sm:$0xff]  ;;  %v2254_v5 = vld [vmem:[%s8645_s16 + $0x2f8] sm:$0xff] }
 0x6ec   :  { %4430 = vmatmul.msk.f32.gmra.mxu3 %vm158_vm0, %v6901_v49  ;;  %2271 = vmatpush.msra.mxu2 %v2189_v25  ;;  %v2233_v37 = vld [vmem:[%s8645_s16 + $0x250] sm:$0xff]  ;;  %v2183_v17 = vld [vmem:[%s8645_s16 + $0xc0] sm:$0xff]  ;;  %v2190_v25 = vld [vmem:[%s8645_s16 + $0xf8] sm:$0xff] }
 0x6ed   :  { %2145 = vmatpush.msrb.mxu0 %v1998_v46  ;;  %2116 = vmatpush.msrb.mxu1 %v1997_v16  ;;  %v2185_v12 = vld [vmem:[%s8645_s16 + $0xd0] sm:$0xff]  ;;  %v2191_v7 = vld [vmem:[%s8645_s16 + $0x100] sm:$0xff]  ;;  %v2218_v46 = vld [vmem:[%s8645_s16 + $0x1d8] sm:$0xff] }
 0x6ee   :  { %4437 = vmatmul.msk.f32.vlgmr.msrb.gmra.mxu0 %vm158_vm0, %v6864_v21  ;;  %3573 = vrot.lane.b32.xlu2 %v3566_v0, %s4995_s0  ;;  %v2193_v55 = vld [vmem:[%s8645_s16 + $0x110] sm:$0xff]  ;;  %v2227_v40 = vld [vmem:[%s8645_s16 + $0x220] sm:$0xff]  ;;  %v2252_v16 = vld [vmem:[%s8645_s16 + $0x2e8] sm:$0xff] }
 0x6ef   :  { %3535 = vrot.lane.b32.xlu1 %v3528_v62, %s4994_s23  ;;  %4427 = vmatmul.msk.f32.gmra.mxu2 %vm158_vm0, %v2029_v53  ;;  %v2229_v61 = vld [vmem:[%s8645_s16 + $0x230] sm:$0xff]  ;;  %v2179_v57 = vld [vmem:[%s8645_s16 + $0xa0] sm:$0xff]  ;;  %v2214_v62 = vld [vmem:[%s8645_s16 + $0x1b8] sm:$0xff] }
 0x6f0   :  { %4433 = vmatmul.msk.f32.vlgmr.msrb.gmra.mxu1 %vm158_vm0, %v6864_v21  ;;  %2302 = vmatpush.msra.mxu3 %v2217_v8  ;;  %v2215_v21 = vld [vmem:[%s8645_s16 + $0x1c0] sm:$0xff]  ;;  %v2181_v9 = vld [vmem:[%s8645_s16 + $0xb0] sm:$0xff]  ;;  %v2212_v8 = vld [vmem:[%s8645_s16 + $0x1a8] sm:$0xff] }
 0x6f1   :  { %2329 = vmatpush.msra.mxu1 %v2253_v52  ;;  %2272 = vmatpush.msra.mxu2 %v2187_v63  ;;  %v2225_v33 = vld [vmem:[%s8645_s16 + $0x210] sm:$0xff]  ;;  %v2223_v47 = vld [vmem:[%s8645_s16 + $0x200] sm:$0xff]  ;;  %v2250_v52 = vld [vmem:[%s8645_s16 + $0x2d8] sm:$0xff] }
 0x6f2   :  { %3554 = vrot.lane.b32.xlu0 %v3547_v42, %s4993_s5  ;;  %2303 = vmatpush.msra.mxu3 %v2215_v21  ;;  %v2177_v35 = vld [vmem:[%s8645_s16 + $0x90] sm:$0xff]  ;;  %v2175_v0 = vld [vmem:[%s8645_s16 + $0x80] sm:$0xff]  ;;  %v2210_v21 = vld [vmem:[%s8645_s16 + $0x198] sm:$0xff] }
 0x6f3   :  { %2330 = vmatpush.msra.mxu1 %v2251_v20  ;;  %2273 = vmatpush.msra.mxu2 %v2185_v12  ;;  %v2173_v39 = vld [vmem:[%s8645_s16 + $0x70] sm:$0xff]  ;;  %v2171_v42 = vld [vmem:[%s8645_s16 + $0x60] sm:$0xff]  ;;  %v2246_v20 = vld [vmem:[%s8645_s16 + $0x2b8] sm:$0xff] }
 0x6f4   :  { %4431 = vmatmul.msk.f32.gmra.mxu3 %vm158_vm0, %v2029_v53  ;;  %v2198_v63 = vld [vmem:[%s8645_s16 + $0x138] sm:$0xff]  ;;  %v2196_v12 = vld [vmem:[%s8645_s16 + $0x128] sm:$0xff]  ;;  %vm8681_vm12 = vmmov %vm8676_vm2 }
 0x6f5   :  { %2304 = vmatpush.msra.mxu3 %v2213_v36  ;;  %2331 = vmatpush.msra.mxu1 %v2249_v38  ;;  %v2169_v36 = vld [vmem:[%s8645_s16 + $0x50] sm:$0xff]  ;;  %v2208_v38 = vld [vmem:[%s8645_s16 + $0x188] sm:$0xff]  ;;  %vm8683_vm6 = vmmov %vm8676_vm2 }
 0x6f6   :  { %4438 = vmatmul.msk.f32.gmra.mxu0 %vm158_vm0, %v6901_v49  ;;  %2274 = vmatpush.msra.mxu2 %v2183_v17  ;;  %v2194_v17 = vld [vmem:[%s8645_s16 + $0x118] sm:$0xff]  ;;  %vm8685_vm1 = vmmov %vm8676_vm2 }
 0x6f7   :  { %3588 = vrot.lane.b32.xlu1 %v6925_v51, %s4992_s8  ;;  %4428 = vmatmul.msk.f32.gmra.mxu2 %vm158_vm0, %v2030_v2  ;;  %vm8686_vm4 = vmmov %vm8685_vm1 }
 0x6f8   :  { %4434 = vmatmul.msk.f32.gmra.mxu1 %vm158_vm0, %v6901_v49  ;;  %2305 = vmatpush.msra.mxu3 %v2211_v30  ;;  %v2197_v49 = vld [vmem:[%s8645_s16 + $0x130] sm:$0xff]  ;;  %v2244_v30 = vld [vmem:[%s8645_s16 + $0x2a8] sm:$0xff]  ;;  %vm8687_vm5 = vmmov %vm8685_vm1 }
 0x6f9   :  { %2332 = vmatpush.msra.mxu1 %v2247_v11  ;;  %2275 = vmatpush.msra.mxu2 %v2181_v9  ;;  %v2167_v11 = vld [vmem:[%s8645_s16 + $0x40] sm:$0xff]  ;;  %v2228_v9 = vld [vmem:[%s8645_s16 + $0x228] sm:$0xff]  ;;  %vm8688_vm7 = vmmov %vm8685_vm1 }
 0x6fa   :  { %2306 = vmatpush.msra.mxu3 %v2209_v1  ;;  %v2206_v1 = vld [vmem:[%s8645_s16 + $0x178] sm:$0xff]  ;;  %vm8690_vm9 = vmmov %vm8689_vm8 }
 0x6fb   :  { %2333 = vmatpush.msra.mxu1 %v2245_v43  ;;  %2276 = vmatpush.msra.mxu2 %v2179_v57  ;;  %v2165_v43 = vld [vmem:[%s8645_s16 + $0x30] sm:$0xff]  ;;  %v2182_v57 = vld [vmem:[%s8645_s16 + $0xb8] sm:$0xff]  ;;  %vm8691_vm10 = vmmov %vm8689_vm8 }
 0x6fc   :  { %4432 = vmatmul.msk.f32.gmra.mxu3 %vm158_vm0, %v2030_v2 }
 0x6fd   :  { %2307 = vmatpush.msra.mxu3 %v2207_v58  ;;  %2334 = vmatpush.msra.mxu1 %v2243_v34  ;;  %v2242_v58 = vld [vmem:[%s8645_s16 + $0x298] sm:$0xff]  ;;  %v2204_v34 = vld [vmem:[%s8645_s16 + $0x168] sm:$0xff] }
 0x6fe   :  { %4439 = vmatmul.msk.f32.gmra.mxu0 %vm158_vm0, %v2029_v53  ;;  %2277 = vmatpush.msra.mxu2 %v2177_v35  ;;  %v2224_v35 = vld [vmem:[%s8645_s16 + $0x208] sm:$0xff] }
 0x6ff   :  { %2308 = vmatpush.msra.mxu3 %v2205_v44  ;;  %2335 = vmatpush.msra.mxu1 %v2241_v45  ;;  %v2163_v44 = vld [vmem:[%s8645_s16 + $0x20] sm:$0xff]  ;;  %v2240_v45 = vld [vmem:[%s8645_s16 + $0x288] sm:$0xff] }
 0x700   :  { %4435 = vmatmul.msk.f32.gmra.mxu1 %vm158_vm0, %v2029_v53  ;;  %v2216_v53 = vld [vmem:[%s8645_s16 + $0x1c8] sm:$0xff]  ;;  %2278 = vmatpush.msra.mxu2 %v2175_v0  ;;  %v2174_v0 = vld [vmem:[%s8645_s16 + $0x78] sm:$0xff] }
 0x701   :  { %2309 = vmatpush.msra.mxu3 %v2203_v41  ;;  %2336 = vmatpush.msra.mxu1 %v2239_v23  ;;  %v2202_v41 = vld [vmem:[%s8645_s16 + $0x158] sm:$0xff] }
 0x702   :  { %2279 = vmatpush.msra.mxu2 %v2173_v39  ;;  %v2238_v23 = vld [vmem:[%s8645_s16 + $0x278] sm:$0xff]  ;;  %v2168_v39 = vld [vmem:[%s8645_s16 + $0x48] sm:$0xff] }
 0x703   :  { %2310 = vmatpush.msra.mxu3 %v2201_v29  ;;  %2337 = vmatpush.msra.mxu1 %v2237_v18  ;;  %v2161_v29 = vld [vmem:[%s8645_s16 + $0x10] sm:$0xff]  ;;  %v2236_v18 = vld [vmem:[%s8645_s16 + $0x268] sm:$0xff] }
 0x704   :  { %2280 = vmatpush.msra.mxu2 %v2171_v42  ;;  %v2162_v42 = vld [vmem:[%s8645_s16 + $0x18] sm:$0xff] }
 0x705   :  { %2311 = vmatpush.msra.mxu3 %v2199_v50  ;;  %2338 = vmatpush.msra.mxu1 %v2235_v22  ;;  %v2159_v50 = vld [vmem:[%s8645_s16] sm:$0xff]  ;;  %v2200_v22 = vld [vmem:[%s8645_s16 + $0x148] sm:$0xff] }
 0x706   :  { %4440 = vmatmul.msk.f32.gmra.mxu0 %vm158_vm0, %v2030_v2  ;;  %2281 = vmatpush.msra.mxu2 %v2169_v36 }
 0x707   :  { %2312 = vmatpush.msra.mxu3 %v2197_v49  ;;  %2339 = vmatpush.msra.mxu1 %v2233_v37  ;;  %v2234_v49 = vld [vmem:[%s8645_s16 + $0x258] sm:$0xff]  ;;  %v2188_v37 = vld [vmem:[%s8645_s16 + $0xe8] sm:$0xff] }
 0x708   :  { %4436 = vmatmul.msk.f32.gmra.mxu1 %vm158_vm0, %v2030_v2  ;;  %v2248_v2 = vld [vmem:[%s8645_s16 + $0x2c8] sm:$0xff]  ;;  %2282 = vmatpush.msra.mxu2 %v2167_v11  ;;  %v2726_v11 = vsel %vm8677_vm13, %v6678_v6, %v6776_v59 }
 0x709   :  { %2313 = vmatpush.msra.mxu3 %v2195_v48  ;;  %2340 = vmatpush.msra.mxu1 %v2231_v10  ;;  %v2232_v48 = vld [vmem:[%s8645_s16 + $0x248] sm:$0xff]  ;;  %v2186_v10 = vld [vmem:[%s8645_s16 + $0xd8] sm:$0xff] }
 0x70a   :  { %2283 = vmatpush.msra.mxu2 %v2165_v43  ;;  %v8679_v43 = vld [vmem:[#allocation9_spill] sm:$0xff] }
 0x70b   :  { %2314 = vmatpush.msra.mxu3 %v2193_v55  ;;  %2341 = vmatpush.msra.mxu1 %v2229_v61  ;;  %v7192_v55 = vld [vmem:[%s8645_s16 + $0x310] sm:$0xff]  ;;  %v2230_v61 = vld [vmem:[%s8645_s16 + $0x238] sm:$0xff] }
 0x70c   :  { %2284 = vmatpush.msra.mxu2 %v2163_v44  ;;  %2372 = vmatpush.msra.mxu0 %v7192_v55 }
 0x70d   :  { %2315 = vmatpush.msra.mxu3 %v2191_v7  ;;  %2342 = vmatpush.msra.mxu1 %v2227_v40  ;;  %v7203_v7 = vld [vmem:[%s8645_s16 + $0x300] sm:$0xff]  ;;  %v2184_v40 = vld [vmem:[%s8645_s16 + $0xc8] sm:$0xff] }
 0x70e   :  { %2285 = vmatpush.msra.mxu2 %v2161_v29  ;;  %2373 = vmatpush.msra.mxu0 %v7203_v7  ;;  %v8682_v29 = vld [vmem:[#allocation6_spill] sm:$0xff] }
 0x70f   :  { %2416 = vmatpush.msrb.mxu3 %v2222_v28  ;;  %2343 = vmatpush.msra.mxu1 %v2225_v33  ;;  %v2192_v28 = vld [vmem:[%s8645_s16 + $0x108] sm:$0xff]  ;;  %v7218_v33 = vld [vmem:[%s8645_s16 + $0x318] sm:$0xff] }
 0x710   :  { %2286 = vmatpush.msra.mxu2 %v2159_v50  ;;  %2488 = vmatpush.msrb.mxu0 %v7218_v33  ;;  %v8684_v50 = vld [vmem:[#allocation7_spill] sm:$0xff] }
 0x711   :  { %2417 = vmatpush.msrb.mxu3 %v2220_v54  ;;  %2344 = vmatpush.msra.mxu1 %v2223_v47  ;;  %v2226_v54 = vld [vmem:[%s8645_s16 + $0x218] sm:$0xff]  ;;  %v7230_v47 = vld [vmem:[%s8645_s16 + $0x308] sm:$0xff] }
 0x712   :  { %2387 = vmatpush.msrb.mxu2 %v2190_v25  ;;  %2489 = vmatpush.msrb.mxu0 %v7230_v47  ;;  %v4738_v25 = vld [vmem:[%s8642_s13 + $0x8] sm:$0xff] }
 0x713   :  { %2418 = vmatpush.msrb.mxu3 %v2218_v46  ;;  %2445 = vmatpush.msrb.mxu1 %v2254_v5  ;;  %v2180_v5 = vld [vmem:[%s8645_s16 + $0xa8] sm:$0xff]  ;;  %v2178_v46 = vld [vmem:[%s8645_s16 + $0x98] sm:$0xff] }
 0x714   :  { %2388 = vmatpush.msrb.mxu2 %v2188_v37  ;;  %v4741_v37 = vld [vmem:[%s8642_s13 + $0x20] sm:$0xff] }
 0x715   :  { %2419 = vmatpush.msrb.mxu3 %v2216_v53  ;;  %2446 = vmatpush.msrb.mxu1 %v2252_v16  ;;  %v2176_v16 = vld [vmem:[%s8645_s16 + $0x88] sm:$0xff] }
 0x716   :  { %2389 = vmatpush.msrb.mxu2 %v2186_v10  ;;  %v2172_v53 = vld [vmem:[%s8645_s16 + $0x68] sm:$0xff]  ;;  %v4744_v10 = vld [vmem:[%s8642_s13 + $0x38] sm:$0xff] }
 0x717   :  { %2420 = vmatpush.msrb.mxu3 %v2214_v62  ;;  %2447 = vmatpush.msrb.mxu1 %v2250_v52  ;;  %v2170_v62 = vld [vmem:[%s8645_s16 + $0x58] sm:$0xff] }
 0x718   :  { %2390 = vmatpush.msrb.mxu2 %v2184_v40  ;;  %v2166_v52 = vld [vmem:[%s8645_s16 + $0x38] sm:$0xff] }
 0x719   :  { %2421 = vmatpush.msrb.mxu3 %v2212_v8  ;;  %2448 = vmatpush.msrb.mxu1 %v2248_v2  ;;  %v2164_v8 = vld [vmem:[%s8645_s16 + $0x28] sm:$0xff] }
 0x71a   :  { %2391 = vmatpush.msrb.mxu2 %v2182_v57 }
 0x71b   :  { %2422 = vmatpush.msrb.mxu3 %v2210_v21  ;;  %2449 = vmatpush.msrb.mxu1 %v2246_v20  ;;  %v2160_v21 = vld [vmem:[%s8645_s16 + $0x8] sm:$0xff] }
 0x71c   :  { %2392 = vmatpush.msrb.mxu2 %v2180_v5 }
 0x71d   :  { %2423 = vmatpush.msrb.mxu3 %v2208_v38  ;;  %2450 = vmatpush.msrb.mxu1 %v2244_v30 }
 0x71e   :  { %2393 = vmatpush.msrb.mxu2 %v2178_v46 }
 0x71f   :  { %2424 = vmatpush.msrb.mxu3 %v2206_v1  ;;  %2451 = vmatpush.msrb.mxu1 %v2242_v58  ;;  %v8678_v1 = vld [vmem:[#allocation8_spill] sm:$0xff] }
 0x720   :  { %2394 = vmatpush.msrb.mxu2 %v2176_v16 }
 0x721   :  { %2425 = vmatpush.msrb.mxu3 %v2204_v34  ;;  %2452 = vmatpush.msrb.mxu1 %v2240_v45 }
 0x722   :  { %2395 = vmatpush.msrb.mxu2 %v2174_v0 }
 0x723   :  { %2426 = vmatpush.msrb.mxu3 %v2202_v41  ;;  %2453 = vmatpush.msrb.mxu1 %v2238_v23 }
 0x724   :  { %2396 = vmatpush.msrb.mxu2 %v2172_v53 }
 0x725   :  { %2454 = vmatpush.msrb.mxu1 %v2236_v18  ;;  %2427 = vmatpush.msrb.mxu3 %v2200_v22  ;;  %v4737_v22 = vld [vmem:[%s8642_s13] sm:$0xff] }
 0x726   :  { %2397 = vmatpush.msrb.mxu2 %v2170_v62 }
 0x727   :  { %2455 = vmatpush.msrb.mxu1 %v2234_v49  ;;  %2428 = vmatpush.msrb.mxu3 %v2198_v63  ;;  %v4739_v63 = vld [vmem:[%s8642_s13 + $0x10] sm:$0xff]  ;;  %v4740_v49 = vld [vmem:[%s8642_s13 + $0x18] sm:$0xff] }
 0x728   :  { %2398 = vmatpush.msrb.mxu2 %v2168_v39 }
 0x729   :  { %2456 = vmatpush.msrb.mxu1 %v2232_v48  ;;  %2429 = vmatpush.msrb.mxu3 %v2196_v12  ;;  %v4742_v12 = vld [vmem:[%s8642_s13 + $0x28] sm:$0xff]  ;;  %v4743_v48 = vld [vmem:[%s8642_s13 + $0x30] sm:$0xff] }
 0x72a   :  { %2399 = vmatpush.msrb.mxu2 %v2166_v52 }
 0x72b   :  { %2457 = vmatpush.msrb.mxu1 %v2230_v61  ;;  %2430 = vmatpush.msrb.mxu3 %v2194_v17 }
 0x72c   :  { %2400 = vmatpush.msrb.mxu2 %v2164_v8 }
 0x72d   :  { %2458 = vmatpush.msrb.mxu1 %v2228_v9  ;;  %2431 = vmatpush.msrb.mxu3 %v2192_v28 }
 0x72e   :  { %2401 = vmatpush.msrb.mxu2 %v2162_v42 }
 0x72f   :  { %2459 = vmatpush.msrb.mxu1 %v2226_v54 }
 0x730   :  { %2402 = vmatpush.msrb.mxu2 %v2160_v21 }
 0x731   :  { %2460 = vmatpush.msrb.mxu1 %v2224_v35 }
 0x761   :  { %v2060_v2 = vpop.f32.mrf.mxu2 }
 0x762   :  { %2287 = vmatmul.f32.vlgmr.msra.gmra.mxu2 %v2060_v2 }
 0x763   :  { %4595 = vmatpush.msra.mxu2 %v7218_v33 }
 0x765   :  { %4596 = vmatpush.msra.mxu2 %v7230_v47 }
 0x767   :  { %v2089_v20 = vpop.f32.mrf.mxu3 }
 0x768   :  { %2316 = vmatmul.f32.vlgmr.msra.gmra.mxu3 %v2089_v20 }
 0x769   :  { %4472 = vmatpush.msk.msra.mxu3 %vm1025_vm3, %v6683_v24  ;;  %v2063_v36 = vpop.f32.mrf.mxu2 }
 0x76a   :  { %2290 = vmatmul.f32.gmra.mxu2 %v2063_v36 }
 0x76b   :  { %v2147_v38 = vpop.f32.mrf.mxu0  ;;  %2823 = vmatpush.msra.mxu3 %v6674_v3 }
 0x76c   :  { %4441 = vmatmul.msk.f32.vlgmr.msra.gmra.mxu0 %vm8676_vm2, %v2147_v38  ;;  %vm8692_vm2 = vmmov %vm8689_vm8 }
 0x76d   :  { %v2118_v30 = vpop.f32.mrf.mxu1  ;;  %4490 = vmatpush.msk.msra.mxu0 %vm1025_vm3, %v6776_v59  ;;  %vm8693_vm13 = vmmov %vm8692_vm2 }
 0x76e   :  { %2345 = vmatmul.f32.vlgmr.msra.gmra.mxu1 %v2118_v30 }
 0x76f   :  { %4481 = vmatpush.msk.msra.mxu1 %vm1025_vm3, %v2726_v11  ;;  %2905 = vmatpush.msra.mxu0 %v8678_v1  ;;  %v2092_v24 = vpop.f32.mrf.mxu3 }
 0x770   :  { %2319 = vmatmul.f32.gmra.mxu3 %v2092_v24 }
 0x771   :  { %2864 = vmatpush.msra.mxu1 %v8679_v43 }
 0x772   :  { %v2066_v3 = vpop.f32.mrf.mxu2 }
 0x773   :  { %v2150_v58 = vpop.f32.mrf.mxu0  ;;  %2293 = vmatmul.f32.gmra.mxu2 %v2066_v3 }
 0x774   :  { %4442 = vmatmul.msk.f32.gmra.mxu0 %vm8680_vm14, %v2150_v58  ;;  %vm8694_vm14 = vmmov %vm8692_vm2 }
 0x775   :  { %v2121_v34 = vpop.f32.mrf.mxu1 }
 0x776   :  { %2348 = vmatmul.f32.gmra.mxu1 %v2121_v34 }
 0x777   :  { %v2095_v44 = vpop.f32.mrf.mxu3 }
 0x778   :  { %2322 = vmatmul.f32.gmra.mxu3 %v2095_v44 }
 0x77a   :  { %v2069_v45 = vpop.f32.mrf.mxu2 }
 0x77b   :  { %v2153_v6 = vpop.f32.mrf.mxu0  ;;  %2296 = vmatmul.f32.gmra.mxu2 %v2069_v45 }
 0x77c   :  { %4443 = vmatmul.msk.f32.gmra.mxu0 %vm8681_vm12, %v2153_v6  ;;  %vm8695_vm12 = vmmov %vm8692_vm2 }
 0x77d   :  { %v2124_v59 = vpop.f32.mrf.mxu1 }
 0x77e   :  { %2351 = vmatmul.f32.gmra.mxu1 %v2124_v59 }
 0x77f   :  { %v2098_v41 = vpop.f32.mrf.mxu3 }
 0x780   :  { %2325 = vmatmul.f32.gmra.mxu3 %v2098_v41 }
 0x783   :  { %v2156_v23 = vpop.f32.mrf.mxu0  ;;  %2403 = vmatmul.f32.vlgmr.msrb.gmra.mxu2 %v2060_v2 }
 0x784   :  { %4463 = vmatpush.msk.msrb.mxu2 %vm1025_vm3, %v8682_v29  ;;  %4444 = vmatmul.msk.f32.gmra.mxu0 %vm8683_vm6, %v2156_v23  ;;  %vm8696_vm6 = vmmov %vm8692_vm2  ;;  %v4450_v29 = vld [vmem:[%s8646_s17 + $0x48] sm:$0xff] }
 0x785   :  { %v2127_v18 = vpop.f32.mrf.mxu1 }
 0x786   :  { %2354 = vmatmul.f32.gmra.mxu1 %v2127_v18  ;;  %2782 = vmatpush.msrb.mxu2 %v8684_v50 }
 0x788   :  { %2432 = vmatmul.f32.vlgmr.msrb.gmra.mxu3 %v2089_v20 }
 0x78b   :  { %2406 = vmatmul.f32.gmra.mxu2 %v2063_v36 }
 0x78c   :  { %4445 = vmatmul.msk.f32.vlgmr.msrb.gmra.mxu0 %vm8685_vm1, %v2147_v38  ;;  %vm8697_vm1 = vmmov %vm8692_vm2 }
 0x78e   :  { %2461 = vmatmul.f32.vlgmr.msrb.gmra.mxu1 %v2118_v30 }
 0x790   :  { %2435 = vmatmul.f32.gmra.mxu3 %v2092_v24 }
 0x793   :  { %2409 = vmatmul.f32.gmra.mxu2 %v2066_v3 }
 0x794   :  { %4446 = vmatmul.msk.f32.gmra.mxu0 %vm8686_vm4, %v2150_v58  ;;  %vm8698_vm4 = vmmov %vm8697_vm1 }
 0x796   :  { %2464 = vmatmul.f32.gmra.mxu1 %v2121_v34 }
 0x798   :  { %2438 = vmatmul.f32.gmra.mxu3 %v2095_v44 }
 0x79b   :  { %2412 = vmatmul.f32.gmra.mxu2 %v2069_v45 }
 0x79c   :  { %4447 = vmatmul.msk.f32.gmra.mxu0 %vm8687_vm5, %v2153_v6  ;;  %vm8699_vm5 = vmmov %vm8697_vm1 }
 0x79e   :  { %2467 = vmatmul.f32.gmra.mxu1 %v2124_v59 }
 0x7a0   :  { %2441 = vmatmul.f32.gmra.mxu3 %v2098_v41 }
 0x7a3   :  { %4448 = vmatmul.msk.f32.vlgmr.msra.gmra.mxu2 %vm8688_vm7, %v2156_v23  ;;  %vm8700_vm7 = vmmov %vm8697_vm1 }
 0x7a4   :  { %4491 = vmatmul.msk.f32.vlgmr.msra.gmra.mxu0 %vm8689_vm8, %v4737_v22  ;;  %vm8701_vm8 = vmmov %vm8697_vm1 }
 0x7a6   :  { %2470 = vmatmul.f32.gmra.mxu1 %v2127_v18  ;;  %v2512_v18 = vld [vmem:[%s8646_s17 + $0x8] sm:$0xff] }
 0x7a8   :  { %4473 = vmatmul.msk.f32.vlgmr.msra.gmra.mxu3 %vm8690_vm9, %v4737_v22  ;;  %vm8702_vm9 = vmmov %vm8697_vm1 }
 0x7ab   :  { %4464 = vmatmul.msk.f32.vlgmr.msrb.gmra.mxu2 %vm8691_vm10, %v4737_v22  ;;  %vm8703_vm10 = vmmov %vm8697_vm1 }
 0x7ac   :  { %4492 = vmatmul.msk.f32.gmra.mxu0 %vm8692_vm2, %v4738_v25  ;;  %vm8704_vm2 = vmmov %vm8697_vm1 }
 0x7ae   :  { %4482 = vmatmul.msk.f32.vlgmr.msra.gmra.mxu1 %vm8693_vm13, %v4737_v22  ;;  %vm8705_vm13 = vmmov %vm8697_vm1  ;;  %v4449_v22 = vld [vmem:[%s8646_s17 + $0x40] sm:$0xff] }
 0x7b0   :  { %4474 = vmatmul.msk.f32.gmra.mxu3 %vm8694_vm14, %v4738_v25  ;;  %vm8706_vm14 = vmmov %vm8697_vm1 }
 0x7b3   :  { %4465 = vmatmul.msk.f32.gmra.mxu2 %vm8695_vm12, %v4738_v25  ;;  %vm8707_vm12 = vmmov %vm8697_vm1 }
 0x7b4   :  { %4493 = vmatmul.msk.f32.gmra.mxu0 %vm8696_vm6, %v4739_v63  ;;  %vm8708_vm6 = vmmov %vm8697_vm1 }
 0x7b6   :  { %4483 = vmatmul.msk.f32.gmra.mxu1 %vm8697_vm1, %v4738_v25  ;;  %v2511_v25 = vld [vmem:[%s8646_s17] sm:$0xff] }
 0x7b8   :  { %4475 = vmatmul.msk.f32.gmra.mxu3 %vm8698_vm4, %v4739_v63  ;;  %vm8709_vm4 = vmmov %vm8697_vm1 }
 0x7bb   :  { %4466 = vmatmul.msk.f32.gmra.mxu2 %vm8699_vm5, %v4739_v63  ;;  %vm8710_vm5 = vmmov %vm8697_vm1 }
 0x7bc   :  { %4494 = vmatmul.msk.f32.gmra.mxu0 %vm8700_vm7, %v4740_v49  ;;  %vm8711_vm7 = vmmov %vm8697_vm1 }
 0x7be   :  { %4484 = vmatmul.msk.f32.gmra.mxu1 %vm8701_vm8, %v4739_v63  ;;  %vm8712_vm8 = vmmov %vm8697_vm1 }
 0x7c0   :  { %4476 = vmatmul.msk.f32.gmra.mxu3 %vm8702_vm9, %v4740_v49  ;;  %vm8713_vm9 = vmmov %vm8697_vm1 }
 0x7c3   :  { %4467 = vmatmul.msk.f32.gmra.mxu2 %vm8703_vm10, %v4740_v49  ;;  %vm8714_vm10 = vmmov %vm8697_vm1 }
 0x7c4   :  { %4495 = vmatmul.msk.f32.gmra.mxu0 %vm8704_vm2, %v4741_v37  ;;  %vm8715_vm2 = vmmov %vm8697_vm1 }
 0x7c6   :  { %4485 = vmatmul.msk.f32.gmra.mxu1 %vm8705_vm13, %v4740_v49  ;;  %vm8716_vm13 = vmmov %vm8697_vm1 }
 0x7c8   :  { %4477 = vmatmul.msk.f32.gmra.mxu3 %vm8706_vm14, %v4741_v37  ;;  %vm8717_vm14 = vmmov %vm8697_vm1 }
 0x7cb   :  { %4468 = vmatmul.msk.f32.gmra.mxu2 %vm8707_vm12, %v4741_v37  ;;  %vm8718_vm12 = vmmov %vm8697_vm1 }
 0x7cc   :  { %4496 = vmatmul.msk.f32.gmra.mxu0 %vm8708_vm6, %v4742_v12  ;;  %vm8719_vm6 = vmmov %vm8697_vm1 }
 0x7ce   :  { %4486 = vmatmul.msk.f32.gmra.mxu1 %vm8697_vm1, %v4741_v37  ;;  %vm8720_vm1 = vcmask 588800  }
 0x7d0   :  { %4478 = vmatmul.msk.f32.gmra.mxu3 %vm8709_vm4, %v4742_v12  ;;  %vm8721_vm4 = vmmov %vm8720_vm1 }
 0x7d3   :  { %4469 = vmatmul.msk.f32.gmra.mxu2 %vm8710_vm5, %v4742_v12  ;;  %vm8722_vm5 = vmmov %vm8720_vm1 }
 0x7d4   :  { %4497 = vmatmul.msk.f32.gmra.mxu0 %vm8711_vm7, %v4743_v48  ;;  %vm8723_vm7 = vmmov %vm8720_vm1 }
 0x7d6   :  { %4487 = vmatmul.msk.f32.gmra.mxu1 %vm8712_vm8, %v4742_v12  ;;  %vm8724_vm8 = vmmov %vm8720_vm1 }
 0x7d8   :  { %4479 = vmatmul.msk.f32.gmra.mxu3 %vm8713_vm9, %v4743_v48  ;;  %vm8725_vm9 = vmmov %vm8720_vm1 }
 0x7db   :  { %4470 = vmatmul.msk.f32.gmra.mxu2 %vm8714_vm10, %v4743_v48  ;;  %vm8726_vm10 = vmmov %vm8720_vm1 }
 0x7dc   :  { %4498 = vmatmul.msk.f32.gmra.mxu0 %vm8715_vm2, %v4744_v10  ;;  %vm8727_vm2 = vmmov %vm8720_vm1 }
 0x7de   :  { %4488 = vmatmul.msk.f32.gmra.mxu1 %vm8716_vm13, %v4743_v48 }
 0x7e0   :  { %4480 = vmatmul.msk.f32.gmra.mxu3 %vm8717_vm14, %v4744_v10 }
 0x7e3   :  { %4471 = vmatmul.msk.f32.gmra.mxu2 %vm8718_vm12, %v4744_v10 }
 0x7e5   :  { %v2288_v61 = vpop.f32.mrf.mxu2 }
 0x7e6   :  { %4489 = vmatmul.msk.f32.gmra.mxu1 %vm8719_vm6, %v4744_v10 }
 0x7e9   :  { %v2375_v17 = vpop.f32.mrf.mxu0 }
 0x7eb   :  { %v2346_v40 = vpop.f32.mrf.mxu1  ;;  %v2317_v9 = vpop.f32.mrf.mxu3 }
 0x7ec   :  { %v2318_v8 = vadd.f32 %v2317_v9, %v2288_v61 }
 0x7ed   :  { %v2291_v28 = vpop.f32.mrf.mxu2 }
 0x7ee   :  { %v2347_v2 = vadd.f32 %v2346_v40, %v2318_v8 }
 0x7f0   :  { %v2376_v30 = vadd.f32 %v2375_v17, %v2347_v2 }
 0x7f1   :  { %v2378_v57 = vpop.f32.mrf.mxu0 }
 0x7f2   :  { %4689 = vtanh.f32 %v2376_v30 }
 0x7f3   :  { %v2349_v54 = vpop.f32.mrf.mxu1  ;;  %v2320_v5 = vpop.f32.mrf.mxu3 }
 0x7f4   :  { %v2321_v11 = vadd.f32 %v2320_v5, %v2291_v28 }
 0x7f6   :  { %v2294_v35 = vpop.f32.mrf.mxu2  ;;  %v2350_v3 = vadd.f32 %v2349_v54, %v2321_v11 }
 0x7f8   :  { %v2379_v6 = vadd.f32 %v2378_v57, %v2350_v3  ;;  %v4690_v50 = vpop.eup %4689 }
 0x7f9   :  { %v2381_v46 = vpop.f32.mrf.mxu0  ;;  %v2552_v61 = vmul.f32 %v4690_v50, %v4449_v22  ;;  %v2519_v17 = vmul.f32 %v4690_v50, %v2511_v25  ;;  %v4453_v22 = vld [vmem:[%s8646_s17 + $0x60] sm:$0xff] }
 0x7fb   :  { %v2352_v16 = vpop.f32.mrf.mxu1  ;;  %v2323_v0 = vpop.f32.mrf.mxu3 }
 0x7fc   :  { %v2324_v59 = vadd.f32 %v2323_v0, %v2294_v35 }
 0x7fe   :  { %v2297_v53 = vpop.f32.mrf.mxu2  ;;  %v2353_v37 = vadd.f32 %v2352_v16, %v2324_v59  ;;  %v4452_v16 = vld [vmem:[%s8646_s17 + $0x58] sm:$0xff] }
 0x800   :  { %v2382_v0 = vadd.f32 %v2381_v46, %v2353_v37  ;;  %v2513_v46 = vld [vmem:[%s8646_s17 + $0x10] sm:$0xff] }
 0x801   :  { %v7350_v62 = vpop.f32.mrf.mxu0 }
 0x803   :  { %v2355_v39 = vpop.f32.mrf.mxu1  ;;  %v2326_v52 = vpop.f32.mrf.mxu3 }
 0x804   :  { %v2327_v8 = vadd.f32 %v2326_v52, %v2297_v53 }
 0x806   :  { %v2404_v42 = vpop.f32.mrf.mxu2 }
 0x809   :  { %v2491_v21 = vpop.f32.mrf.mxu0 }
 0x80b   :  { %v2462_v20 = vpop.f32.mrf.mxu1  ;;  %v2433_v36 = vpop.f32.mrf.mxu3 }
 0x80c   :  { %v2434_v38 = vadd.f32 %v2433_v36, %v2404_v42  ;;  %v4451_v36 = vld [vmem:[%s8646_s17 + $0x50] sm:$0xff] }
 0x80e   :  { %v2463_v1 = vadd.f32 %v2462_v20, %v2434_v38  ;;  %v2407_v24 = vpop.f32.mrf.mxu2  ;;  %v2356_v38 = vadd.f32 %v2355_v39, %v2327_v8  ;;  %v4455_v8 = vld [vmem:[%s8646_s17 + $0x70] sm:$0xff] }
 0x810   :  { %v2492_v43 = vadd.f32 %v2491_v21, %v2463_v1  ;;  %v2514_v21 = vld [vmem:[%s8646_s17 + $0x18] sm:$0xff] }
 0x811   :  { %v2494_v58 = vpop.f32.mrf.mxu0 }
 0x812   :  { %4691 = vtanh.f32 %v2492_v43 }
 0x813   :  { %v2465_v34 = vpop.f32.mrf.mxu1  ;;  %v2436_v44 = vpop.f32.mrf.mxu3  ;;  %4693 = vtanh.f32 %v2379_v6 }
 0x814   :  { %v2437_v45 = vadd.f32 %v2436_v44, %v2407_v24 }
 0x816   :  { %v2466_v41 = vadd.f32 %v2465_v34, %v2437_v45  ;;  %v2410_v23 = vpop.f32.mrf.mxu2 }
 0x818   :  { %v4692_v63 = vpop.eup %4691  ;;  %v2495_v49 = vadd.f32 %v2494_v58, %v2466_v41  ;;  %v2385_v41 = vadd.f32 %v7350_v62, %v2356_v38  ;;  %v2515_v62 = vld [vmem:[%s8646_s17 + $0x20] sm:$0xff] }
 0x819   :  { %v2497_v12 = vpop.f32.mrf.mxu0  ;;  %v2553_v48 = vmul.f32 %v4692_v63, %v4450_v29  ;;  %v2520_v10 = vmul.f32 %v4692_v63, %v2512_v18  ;;  %v4694_v20 = vpop.eup %4693  ;;  %v4454_v29 = vld [vmem:[%s8646_s17 + $0x68] sm:$0xff] }
 0x81a   :  { %4695 = vtanh.f32 %v2495_v49  ;;  %v2554_v24 = vmul.f32 %v4694_v20, %v4451_v36  ;;  %v2521_v43 = vmul.f32 %v4694_v20, %v2513_v46  ;;  %v2516_v18 = vld [vmem:[%s8646_s17 + $0x28] sm:$0xff] }
 0x81b   :  { %v2468_v40 = vpop.f32.mrf.mxu1  ;;  %v2439_v9 = vpop.f32.mrf.mxu3  ;;  %v2560_v28 = vsel %vm8720_vm1, %v2553_v48, 0.0  ;;  %v2527_v57 = vsel %vm8721_vm4, %v2520_v10, 0.0  ;;  %4697 = vtanh.f32 %v2382_v0 }
 0x81c   :  { %v2440_v54 = vadd.f32 %v2439_v9, %v2410_v23  ;;  %v2561_v5 = vadd.f32 %v2560_v28, %v2552_v61  ;;  %v2528_v35 = vadd.f32 %v2527_v57, %v2519_v17 }
 0x81e   :  { %v2469_v42 = vadd.f32 %v2468_v40, %v2440_v54  ;;  %v2413_v2 = vpop.f32.mrf.mxu2  ;;  %2562 = vadd.xlane.f32.xlu2 %v2561_v5  ;;  %2529 = vadd.xlane.f32.xlu0 %v2528_v35  ;;  %v4456_v5 = vld [vmem:[%s8646_s17 + $0x78] sm:$0xff] }
 0x81f   :  { %v2518_v35 = vld [vmem:[%s8646_s17 + $0x38] sm:$0xff] }
 0x820   :  { %v4696_v53 = vpop.eup %4695  ;;  %v2498_v52 = vadd.f32 %v2497_v12, %v2469_v42  ;;  %v2517_v42 = vld [vmem:[%s8646_s17 + $0x30] sm:$0xff] }
 0x821   :  { %v7378_v30 = vpop.f32.mrf.mxu0  ;;  %v2555_v11 = vmul.f32 %v4696_v53, %v4452_v16  ;;  %v2522_v1 = vmul.f32 %v4696_v53, %v2514_v21  ;;  %v4698_v50 = vpop.eup %4697 }
 0x822   :  { %4699 = vtanh.f32 %v2498_v52  ;;  %v2556_v48 = vmul.f32 %v4698_v50, %v4453_v22  ;;  %v2523_v10 = vmul.f32 %v4698_v50, %v2515_v62  ;;  %v2908_v50 = vadd.f32 %v7378_v30, %v6543_v26 }
 0x823   :  { %v2471_v3 = vpop.f32.mrf.mxu1  ;;  %v2442_v58 = vpop.f32.mrf.mxu3  ;;  %v2564_v34 = vsel %vm8722_vm5, %v2555_v11, 0.0  ;;  %v2531_v44 = vsel %vm8723_vm7, %v2522_v1, 0.0  ;;  %4701 = vtanh.f32 %v2385_v41 }
 0x824   :  { %v2443_v45 = vadd.f32 %v2442_v58, %v2413_v2  ;;  %v2565_v6 = vadd.f32 %v2564_v34, %v2554_v24  ;;  %v2532_v59 = vadd.f32 %v2531_v44, %v2521_v43  ;;  %vm2934_vm13 = vcmp.gt.f32.partialorder %v2908_v50, 0.0 }
 0x826   :  { %v2472_v23 = vadd.f32 %v2471_v3, %v2443_v45  ;;  %v2500_v39 = vpop.f32.mrf.mxu2  ;;  %2566 = vadd.xlane.f32.xlu1 %v2565_v6  ;;  %2533 = vadd.xlane.f32.xlu2 %v2532_v59 }
 0x828   :  { %v4700_v25 = vpop.eup %4699  ;;  %v2501_v63 = vadd.f32 %v2500_v39, %v2472_v23 }
 0x829   :  { %v2910_v49 = vpop.f32.mrf.mxu0  ;;  %v2557_v37 = vmul.f32 %v4700_v25, %v4454_v29  ;;  %v2524_v12 = vmul.f32 %v4700_v25, %v2516_v18  ;;  %v4702_v0 = vpop.eup %4701 }
 0x82a   :  { %4703 = vtanh.f32 %v2501_v63  ;;  %v2558_v36 = vmul.f32 %v4702_v0, %v4455_v8  ;;  %v2525_v46 = vmul.f32 %v4702_v0, %v2517_v42  ;;  %v2911_v63 = vadd.f32 %v2910_v49, %v6546_v27 }
 0x82b   :  { %v2866_v61 = vpop.f32.mrf.mxu1  ;;  %v2825_v17 = vpop.f32.mrf.mxu3  ;;  %v2568_v40 = vsel %vm8724_vm8, %v2557_v37, 0.0  ;;  %v2535_v9 = vsel %vm8725_vm9, %v2524_v12, 0.0  ;;  %v2966_v37 = vmul.f32 0.01, %v2908_v50 }
 0x82c   :  { %v2569_v28 = vadd.f32 %v2568_v40, %v2556_v48  ;;  %v2536_v57 = vadd.f32 %v2535_v9, %v2523_v10  ;;  %v7421_v40 = vadd.f32 %v2866_v61, %v6543_v26  ;;  %vm2938_vm14 = vcmp.gt.f32.partialorder %v2911_v63, 0.0 }
 0x82e   :  { %v2784_v54 = vpop.f32.mrf.mxu2  ;;  %2570 = vadd.xlane.f32.xlu0 %v2569_v28  ;;  %2537 = vadd.xlane.f32.xlu1 %v2536_v57  ;;  %v2970_v28 = vmul.f32 0.01, %v2911_v63  ;;  %v7423_v57 = vsel %vm2934_vm13, %v2908_v50, %v2966_v37 }
 0x82f   :  { %v7432_v0 = vadd.f32 %v2784_v54, %v6543_v26 }
 0x830   :  { %v4704_v2 = vpop.eup %4703 }
 0x831   :  { %v2913_v16 = vpop.f32.mrf.mxu0  ;;  %v2559_v21 = vmul.f32 %v4704_v2, %v4456_v5  ;;  %v2526_v20 = vmul.f32 %v4704_v2, %v2518_v35  ;;  %v7429_v35 = vadd.f32 %v2825_v17, %v6543_v26  ;;  %v7441_v17 = vsel %vm2938_vm14, %v2911_v63, %v2970_v28 }
 0x832   :  { %v2914_v48 = vadd.f32 %v2913_v16, %v6535_v15 }
 0x833   :  { %v2869_v53 = vpop.f32.mrf.mxu1  ;;  %v2828_v52 = vpop.f32.mrf.mxu3  ;;  %v2572_v38 = vsel %vm8726_vm10, %v2559_v21, 0.0  ;;  %v2539_v11 = vsel %vm8727_vm2, %v2526_v20, 0.0 }
 0x834   :  { %v2573_v1 = vadd.f32 %v2572_v38, %v2558_v36  ;;  %v2540_v24 = vadd.f32 %v2539_v11, %v2525_v46  ;;  %v2974_v2 = vmul.f32 0.01, %v2914_v48  ;;  %vm2942_vm6 = vcmp.gt.f32.partialorder %v2914_v48, 0.0 }
 0x835   :  { %v7436_v20 = vadd.f32 %v2869_v53, %v6546_v27  ;;  %v7439_v36 = vadd.f32 %v2828_v52, %v6546_v27 }
 0x836   :  { %v2787_v43 = vpop.f32.mrf.mxu2  ;;  %2574 = vadd.xlane.f32.xlu2 %v2573_v1  ;;  %2541 = vadd.xlane.f32.xlu0 %v2540_v24 }
 0x837   :  { %v7444_v54 = vadd.f32 %v2787_v43, %v6546_v27 }
 0x839   :  { %v2916_v3 = vpop.f32.mrf.mxu0 }
 0x83a   :  { %v2917_v30 = vadd.f32 %v2916_v3, %v6524_v19  ;;  %v3006_v3 = vsel %vm2942_vm6, %v2914_v48, %v2974_v2 }
 0x83b   :  { %v2872_v58 = vpop.f32.mrf.mxu1  ;;  %v2831_v34 = vpop.f32.mrf.mxu3 }
 0x83c   :  { %v2978_v1 = vmul.f32 0.01, %v2917_v30  ;;  %vm2946_vm5 = vcmp.gt.f32.partialorder %v2917_v30, 0.0  ;;  %v7447_v53 = vadd.f32 %v2872_v58, %v6535_v15  ;;  %v7453_v43 = vadd.f32 %v2831_v34, %v6535_v15 }
 0x83e   :  { %v2790_v44 = vpop.f32.mrf.mxu2  ;;  %v3010_v37 = vsel %vm2946_vm5, %v2917_v30, %v2978_v1  ;;  %vm2941_vm14 = vcmp.gt.f32.partialorder %v7447_v53, 0.0 }
 0x83f   :  { %v7461_v63 = vadd.f32 %v2790_v44, %v6535_v15 }
 0x841   :  { %v2919_v45 = vpop.f32.mrf.mxu0 }
 0x842   :  { %v2920_v61 = vadd.f32 %v2919_v45, %v6512_v13 }
 0x843   :  { %v2875_v6 = vpop.f32.mrf.mxu1  ;;  %v2834_v59 = vpop.f32.mrf.mxu3 }
 0x844   :  { %v2982_v24 = vmul.f32 0.01, %v2920_v61  ;;  %vm2950_vm7 = vcmp.gt.f32.partialorder %v2920_v61, 0.0  ;;  %v7464_v58 = vadd.f32 %v2834_v59, %v6524_v19 }
 0x846   :  { %v2793_v41 = vpop.f32.mrf.mxu2 }
 0x847   :  { %v7467_v48 = vadd.f32 %v2793_v41, %v6524_v19 }
 0x849   :  { %v2922_v23 = vpop.f32.mrf.mxu0 }
 0x84a   :  { %v2923_v5 = vadd.f32 %v2922_v23, %v6503_v60  ;;  %v7456_v23 = vadd.f32 %v2875_v6, %v6524_v19 }
 0x84b   :  { %v2878_v39 = vpop.f32.mrf.mxu1  ;;  %v2837_v29 = vpop.f32.mrf.mxu3 }
 0x84c   :  { %v2986_v11 = vmul.f32 0.01, %v2923_v5  ;;  %vm2954_vm4 = vcmp.gt.f32.partialorder %v2923_v5, 0.0  ;;  %v7450_v52 = vadd.f32 %v2878_v39, %v6512_v13  ;;  %v7470_v34 = vadd.f32 %v2837_v29, %v6512_v13 }
 0x84d   :  { %vm2945_vm9 = vcmp.gt.f32.partialorder %v7456_v23, 0.0 }
 0x84e   :  { %v7411_v18 = vpop.f32.mrf.mxu2  ;;  %v3018_v39 = vsel %vm2954_vm4, %v2923_v5, %v2986_v11  ;;  %vm2949_vm8 = vcmp.gt.f32.partialorder %v7450_v52, 0.0  ;;  %vm2937_vm4 = vcmp.gt.f32.partialorder %v7436_v20, 0.0  ;;  %v2981_v11 = vmul.f32 0.01, %v7450_v52 }
 0x84f   :  { %v7480_v41 = vadd.f32 %v7411_v18, %v6512_v13 }
 0x851   :  { %v2925_v22 = vpop.f32.mrf.mxu0 }
 0x852   :  { %v2926_v10 = vadd.f32 %v2925_v22, %v6533_v14 }
 0x853   :  { %v2881_v62 = vpop.f32.mrf.mxu1  ;;  %v2840_v25 = vpop.f32.mrf.mxu3 }
 0x854   :  { %v2990_v21 = vmul.f32 0.01, %v2926_v10  ;;  %vm2958_vm1 = vcmp.gt.f32.partialorder %v2926_v10, 0.0  ;;  %v2882_v50 = vadd.f32 %v2881_v62, %v6503_v60  ;;  %v2841_v44 = vadd.f32 %v2840_v25, %v6503_v60 }
 0x856   :  { %v7416_v12 = vpop.f32.mrf.mxu2  ;;  %v3022_v45 = vsel %vm2958_vm1, %v2926_v10, %v2990_v21  ;;  %v2985_v5 = vmul.f32 0.01, %v2882_v50  ;;  %v2984_v21 = vmul.f32 0.01, %v2841_v44  ;;  %vm2953_vm1 = vcmp.gt.f32.partialorder %v2882_v50, 0.0 }
 0x859   :  { %v2928_v9 = vpop.f32.mrf.mxu0 }
 0x85a   :  { %v2929_v49 = vadd.f32 %v2928_v9, %v6483_v31  ;;  %v3014_v9 = vsel %vm2950_vm7, %v2920_v61, %v2982_v24  ;;  %vm2952_vm7 = vcmp.gt.f32.partialorder %v2841_v44, 0.0 }
 0x85b   :  { %v2884_v8 = vpop.f32.mrf.mxu1  ;;  %v2843_v42 = vpop.f32.mrf.mxu3 }
 0x85c   :  { %v2994_v16 = vmul.f32 0.01, %v2929_v49  ;;  %vm2962_vm12 = vcmp.gt.f32.partialorder %v2929_v49, 0.0  ;;  %v2885_v22 = vadd.f32 %v2884_v8, %v6533_v14  ;;  %v2844_v6 = vadd.f32 %v2843_v42, %v6533_v14 }
 0x85d   :  { %v2800_v8 = vadd.f32 %v7416_v12, %v6503_v60 }
 0x85e   :  { %v2802_v46 = vpop.f32.mrf.mxu2  ;;  %v3026_v38 = vsel %vm2962_vm12, %v2929_v49, %v2994_v16  ;;  %v2989_v30 = vmul.f32 0.01, %v2885_v22  ;;  %vm2957_vm13 = vcmp.gt.f32.partialorder %v2885_v22, 0.0  ;;  %v2988_v18 = vmul.f32 0.01, %v2844_v6 }
 0x85f   :  { %3122 = vmatpush.msrb.mxu0 %v3026_v38  ;;  %v2803_v29 = vadd.f32 %v2802_v46, %v6533_v14  ;;  %vm2956_vm12 = vcmp.gt.f32.partialorder %v2844_v6, 0.0 }
 0x860   :  { %v3021_v12 = vsel %vm2957_vm13, %v2885_v22, %v2989_v30  ;;  %v3020_v24 = vsel %vm2956_vm12, %v2844_v6, %v2988_v18  ;;  %v2977_v22 = vmul.f32 0.01, %v7456_v23  ;;  %v2979_v6 = vmul.f32 0.01, %v7480_v41  ;;  %v4752_v18 = vld [vmem:[%s8645_s16 + $0x1e0] sm:$0xff] }
 0x861   :  { %3123 = vmatpush.msrb.mxu0 %v3022_v45  ;;  %v2987_v38 = vmul.f32 0.01, %v2803_v29  ;;  %vm2955_vm5 = vcmp.gt.f32.partialorder %v2803_v29, 0.0  ;;  %v2983_v45 = vmul.f32 0.01, %v2800_v8  ;;  %vm2947_vm13 = vcmp.gt.f32.partialorder %v7480_v41, 0.0 }
 0x862   :  { %vm2944_vm12 = vcmp.gt.f32.partialorder %v7464_v58, 0.0 }
 0x863   :  { %v2887_v62 = vpop.f32.mrf.mxu1  ;;  %3124 = vmatpush.msrb.mxu0 %v3018_v39  ;;  %v2846_v10 = vpop.f32.mrf.mxu3  ;;  %v3017_v39 = vsel %vm2953_vm1, %v2882_v50, %v2985_v5  ;;  %v3013_v50 = vsel %vm2949_vm8, %v7450_v52, %v2981_v11  ;;  %v2975_v52 = vmul.f32 0.01, %v7467_v48  ;;  %vm2943_vm8 = vcmp.gt.f32.partialorder %v7467_v48, 0.0  ;;  %v4760_v11 = vld [vmem:[%s8645_s16 + $0x1c0] sm:$0xff] }
 0x864   :  { %v2888_v59 = vadd.f32 %v2887_v62, %v6483_v31  ;;  %v2847_v28 = vadd.f32 %v2846_v10, %v6483_v31  ;;  %v2976_v62 = vmul.f32 0.01, %v7464_v58  ;;  %v4745_v10 = vld [vmem:[%s8644_s15] sm:$0xff]  ;;  %v2971_v5 = vmul.f32 0.01, %v7461_v63 }
 0x865   :  { %3125 = vmatpush.msrb.mxu0 %v3014_v9  ;;  %vm2936_vm1 = vcmp.gt.f32.partialorder %v7439_v36, 0.0 }
 0x866   :  { %v2993_v49 = vmul.f32 0.01, %v2888_v59  ;;  %v2992_v61 = vmul.f32 0.01, %v2847_v28  ;;  %v2805_v25 = vpop.f32.mrf.mxu2  ;;  %vm2961_vm10 = vcmp.gt.f32.partialorder %v2888_v59, 0.0  ;;  %vm2960_vm2 = vcmp.gt.f32.partialorder %v2847_v28, 0.0 }
 0x867   :  { %v2806_v42 = vadd.f32 %v2805_v25, %v6483_v31  ;;  %3126 = vmatpush.msrb.mxu0 %v3010_v37  ;;  %v3016_v37 = vsel %vm2952_vm7, %v2841_v44, %v2984_v21  ;;  %v3008_v30 = vsel %vm2944_vm12, %v7464_v58, %v2976_v62  ;;  %v3007_v58 = vsel %vm2943_vm8, %v7467_v48, %v2975_v52  ;;  %v4756_v21 = vld [vmem:[%s8645_s16 + $0x1d0] sm:$0xff]  ;;  %v4770_v62 = vld [vmem:[%s8645_s16 + $0x260] sm:$0xff] }
 0x868   :  { %v3025_v2 = vsel %vm2961_vm10, %v2888_v59, %v2993_v49  ;;  %v3024_v16 = vsel %vm2960_vm2, %v2847_v28, %v2992_v61  ;;  %vm2951_vm10 = vcmp.gt.f32.partialorder %v2800_v8, 0.0  ;;  %vm2948_vm2 = vcmp.gt.f32.partialorder %v7470_v34, 0.0  ;;  %v4776_v52 = vld [vmem:[%s8645_s16 + $0x240] sm:$0xff] }
 0x869   :  { %v2991_v46 = vmul.f32 0.01, %v2806_v42  ;;  %3093 = vmatpush.msrb.mxu1 %v3025_v2  ;;  %3127 = vmatpush.msrb.mxu0 %v3006_v3  ;;  %vm2959_vm6 = vcmp.gt.f32.partialorder %v2806_v42, 0.0  ;;  %v2980_v3 = vmul.f32 0.01, %v7470_v34  ;;  %v3015_v9 = vsel %vm2951_vm10, %v2800_v8, %v2983_v45  ;;  %v4753_v2 = vld [vmem:[%s8645_s16 + $0xe0] sm:$0xff] }
 0x86a   :  { %3064 = vmatpush.msrb.mxu3 %v3024_v16  ;;  %v2972_v59 = vmul.f32 0.01, %v7453_v43  ;;  %v3009_v28 = vsel %vm2945_vm9, %v7456_v23, %v2977_v22  ;;  %v2968_v49 = vmul.f32 0.01, %v7439_v36  ;;  %vm2939_vm9 = vcmp.gt.f32.partialorder %v7461_v63, 0.0  ;;  %v4754_v16 = vld [vmem:[%s8644_s15 + $0x10] sm:$0xff] }
 0x86b   :  { %3094 = vmatpush.msrb.mxu1 %v3021_v12  ;;  %3128 = vmatpush.msrb.mxu0 %v7441_v17  ;;  %v3023_v1 = vsel %vm2959_vm6, %v2806_v42, %v2991_v46  ;;  %v3019_v17 = vsel %vm2955_vm5, %v2803_v29, %v2987_v38  ;;  %v3012_v44 = vsel %vm2948_vm2, %v7470_v34, %v2980_v3  ;;  %vm2940_vm6 = vcmp.gt.f32.partialorder %v7453_v43, 0.0  ;;  %v4751_v42 = vld [vmem:[%s8645_s16 + $0x2d0] sm:$0xff]  ;;  %v4759_v12 = vld [vmem:[%s8645_s16 + $0x2a0] sm:$0xff] }
 0x86c   :  { %3035 = vmatpush.msra.mxu2 %v3023_v1  ;;  %3065 = vmatpush.msrb.mxu3 %v3020_v24  ;;  %v2969_v29 = vmul.f32 0.01, %v7436_v20  ;;  %v3011_v34 = vsel %vm2947_vm13, %v7480_v41, %v2979_v6  ;;  %v2965_v41 = vmul.f32 0.01, %v7421_v40  ;;  %vm2933_vm5 = vcmp.gt.f32.partialorder %v7421_v40, 0.0  ;;  %v4757_v46 = vld [vmem:[%s8645_s16 + $0x2b0] sm:$0xff] }
 0x86d   :  { %3095 = vmatpush.msrb.mxu1 %v3017_v39  ;;  %3129 = vmatpush.msrb.mxu0 %v7423_v57  ;;  %v2973_v57 = vmul.f32 0.01, %v7447_v53  ;;  %v2967_v61 = vmul.f32 0.01, %v7444_v54  ;;  %v2964_v48 = vmul.f32 0.01, %v7429_v35  ;;  %v3003_v25 = vsel %vm2939_vm9, %v7461_v63, %v2971_v5 }
 0x86e   :  { %3036 = vmatpush.msra.mxu2 %v3019_v17  ;;  %3066 = vmatpush.msrb.mxu3 %v3016_v37  ;;  %vm2932_vm7 = vcmp.gt.f32.partialorder %v7429_v35, 0.0  ;;  %v2963_v8 = vmul.f32 0.01, %v7432_v0  ;;  %v4758_v38 = vld [vmem:[%s8645_s16 + $0xd0] sm:$0xff]  ;;  %v4761_v1 = vld [vmem:[%s8645_s16 + $0xc0] sm:$0xff]  ;;  %v4765_v39 = vld [vmem:[%s8644_s15 + $0x18] sm:$0xff] }
 0x86f   :  { %3096 = vmatpush.msrb.mxu1 %v3013_v50  ;;  %4511 = vmatmul.msk.f32.vlgmr.msrb.gmra.mxu0 %vm158_vm0, %v4745_v10  ;;  %v3005_v23 = vsel %vm2941_vm14, %v7447_v53, %v2973_v57  ;;  %v3001_v53 = vsel %vm2937_vm4, %v7436_v20, %v2969_v29  ;;  %vm2935_vm14 = vcmp.gt.f32.partialorder %v7444_v54, 0.0  ;;  %vm2931_vm4 = vcmp.gt.f32.partialorder %v7432_v0, 0.0  ;;  %v4746_v20 = vld [vmem:[%s8644_s15 + $0x8] sm:$0xff]  ;;  %v4762_v24 = vld [vmem:[%s8645_s16 + $0x290] sm:$0xff]  ;;  %v4766_v22 = vld [vmem:[%s8645_s16 + $0x280] sm:$0xff] }
 0x870   :  { %3037 = vmatpush.msra.mxu2 %v3015_v9  ;;  %3067 = vmatpush.msrb.mxu3 %v3012_v44  ;;  %v2995_v63 = vsel %vm2931_vm4, %v7432_v0, %v2963_v8  ;;  %v4750_v0 = vld [vmem:[%s8645_s16 + $0xf0] sm:$0xff]  ;;  %v4767_v17 = vld [vmem:[%s8645_s16 + $0x1a0] sm:$0xff]  ;;  %vm8728_vm10 = vcmask 1042432   ;;  %vm8729_vm2 = vcmask 1043456   ;;  %vm8730_vm13 = vcmask 1039360  }
 0x871   :  { %3097 = vmatpush.msrb.mxu1 %v3009_v28  ;;  %3256 = vmatpush.msra.mxu0 %v7192_v55  ;;  %v3004_v55 = vsel %vm2940_vm6, %v7453_v43, %v2972_v59  ;;  %v3000_v43 = vsel %vm2936_vm1, %v7439_v36, %v2968_v49  ;;  %v2999_v36 = vsel %vm2935_vm14, %v7444_v54, %v2967_v61  ;;  %v4748_v54 = vld [vmem:[%s8645_s16 + $0x2e0] sm:$0xff]  ;;  %v4763_v45 = vld [vmem:[%s8645_s16 + $0x1b0] sm:$0xff]  ;;  %vm8731_vm12 = vcmask 1031168   ;;  %vm8734_vm9 = vmmov %vm8728_vm10 }
 0x872   :  { %3038 = vmatpush.msra.mxu2 %v3011_v34  ;;  %3068 = vmatpush.msrb.mxu3 %v3008_v30  ;;  %v4764_v3 = vld [vmem:[%s8645_s16 + $0xb0] sm:$0xff]  ;;  %v4769_v6 = vld [vmem:[%s8645_s16 + $0xa0] sm:$0xff]  ;;  %vm8732_vm8 = vcmask 1045504   ;;  %vm8733_vm6 = vcmask 130048   ;;  %vm8735_vm1 = vmmov %vm8729_vm2  ;;  %vm8739_vm4 = vcmask 1022976  }
 0x873   :  { %3098 = vmatpush.msrb.mxu1 %v3005_v23  ;;  %3257 = vmatpush.msra.mxu0 %v7203_v7  ;;  %v2997_v7 = vsel %vm2933_vm5, %v7421_v40, %v2965_v41  ;;  %v4747_v40 = vld [vmem:[%s8645_s16 + $0x2f0] sm:$0xff]  ;;  %v4774_v9 = vld [vmem:[%s8645_s16 + $0x180] sm:$0xff]  ;;  %vm8736_vm5 = vcmask 1046528   ;;  %vm8737_vm14 = vmmov %vm8730_vm13 }
 0x874   :  { %3039 = vmatpush.msra.mxu2 %v3007_v58  ;;  %3069 = vmatpush.msrb.mxu3 %v3004_v55  ;;  %v4768_v37 = vld [vmem:[%s8645_s16 + $0x270] sm:$0xff]  ;;  %v4775_v44 = vld [vmem:[%s8645_s16 + $0x80] sm:$0xff] }
 0x875   :  { %3099 = vmatpush.msrb.mxu1 %v3001_v53  ;;  %3372 = vmatpush.msrb.mxu0 %v7218_v33  ;;  %v2996_v33 = vsel %vm2932_vm7, %v7429_v35, %v2964_v48  ;;  %v4749_v35 = vld [vmem:[%s8645_s16 + $0x1f0] sm:$0xff]  ;;  %v4780_v34 = vld [vmem:[%s8645_s16 + $0x160] sm:$0xff]  ;;  %v4789_v53 = vld [vmem:[%s8645_s16 + $0x2f8] sm:$0xff] }
 0x876   :  { %3040 = vmatpush.msra.mxu2 %v3003_v25  ;;  %3070 = vmatpush.msrb.mxu3 %v3000_v43  ;;  %v4771_v50 = vld [vmem:[%s8645_s16 + $0x190] sm:$0xff]  ;;  %v4781_v30 = vld [vmem:[%s8645_s16 + $0x220] sm:$0xff]  ;;  %v4792_v43 = vld [vmem:[%s8645_s16 + $0x2e8] sm:$0xff] }
 0x877   :  { %3100 = vmatpush.msrb.mxu1 %v2997_v7  ;;  %4512 = vmatmul.msk.f32.gmra.mxu0 %vm158_vm0, %v4746_v20  ;;  %v4772_v57 = vld [vmem:[%s8645_s16 + $0x90] sm:$0xff]  ;;  %v4782_v5 = vld [vmem:[%s8645_s16 + $0x60] sm:$0xff]  ;;  %vm8738_vm7 = vmmov %vm8730_vm13 }
 0x878   :  { %4507 = vmatmul.msk.f32.vlgmr.msrb.gmra.mxu1 %vm158_vm0, %v4745_v10  ;;  %3041 = vmatpush.msra.mxu2 %v2999_v36  ;;  %v4777_v59 = vld [vmem:[%s8645_s16 + $0x170] sm:$0xff]  ;;  %v4786_v58 = vld [vmem:[%s8645_s16 + $0x140] sm:$0xff] }
 0x879   :  { %3071 = vmatpush.msrb.mxu3 %v2996_v33  ;;  %3213 = vmatpush.msra.mxu1 %v4747_v40  ;;  %v4778_v28 = vld [vmem:[%s8645_s16 + $0x230] sm:$0xff]  ;;  %v4787_v55 = vld [vmem:[%s8645_s16 + $0x200] sm:$0xff] }
 0x87a   :  { %4503 = vmatmul.msk.f32.vlgmr.msrb.gmra.mxu3 %vm158_vm0, %v4745_v10  ;;  %3042 = vmatpush.msra.mxu2 %v2995_v63  ;;  %v4779_v29 = vld [vmem:[%s8645_s16 + $0x70] sm:$0xff]  ;;  %v4788_v61 = vld [vmem:[%s8645_s16 + $0x40] sm:$0xff]  ;;  %v4798_v63 = vld [vmem:[%s8645_s16 + $0x2c8] sm:$0xff] }
 0x87b   :  { %4499 = vmatmul.msk.f32.vlgmr.msra.gmra.mxu2 %vm158_vm0, %v4745_v10  ;;  %3214 = vmatpush.msra.mxu1 %v4748_v54  ;;  %v4773_v10 = vld [vmem:[%s8645_s16 + $0x250] sm:$0xff]  ;;  %v4793_v8 = vld [vmem:[%s8645_s16 + $0x120] sm:$0xff]  ;;  %v4800_v54 = vld [vmem:[%s8645_s16 + $0x1f8] sm:$0xff] }
 0x87c   :  { %3184 = vmatpush.msra.mxu3 %v4749_v35  ;;  %3155 = vmatpush.msrb.mxu2 %v4750_v0  ;;  %v4783_v49 = vld [vmem:[%s8645_s16 + $0x150] sm:$0xff]  ;;  %v4794_v7 = vld [vmem:[%s8645_s16 + $0x20] sm:$0xff]  ;;  %v4802_v0 = vld [vmem:[%s8645_s16 + $0x2b8] sm:$0xff] }
 0x87d   :  { %3215 = vmatpush.msra.mxu1 %v4751_v42  ;;  %3373 = vmatpush.msrb.mxu0 %v7230_v47  ;;  %v4755_v47 = vld [vmem:[%s8645_s16 + $0x2c0] sm:$0xff]  ;;  %v4784_v23 = vld [vmem:[%s8645_s16 + $0x210] sm:$0xff]  ;;  %v4803_v42 = vld [vmem:[%s8645_s16 + $0xf8] sm:$0xff] }
 0x87e   :  { %3185 = vmatpush.msra.mxu3 %v4752_v18  ;;  %3156 = vmatpush.msrb.mxu2 %v4753_v2  ;;  %v4785_v41 = vld [vmem:[%s8645_s16 + $0x50] sm:$0xff]  ;;  %v4799_v40 = vld [vmem:[%s8645_s16 + $0x100] sm:$0xff]  ;;  %v4804_v18 = vld [vmem:[%s8645_s16 + $0x1e8] sm:$0xff] }
 0x87f   :  { %4513 = vmatmul.msk.f32.gmra.mxu0 %vm158_vm0, %v4754_v16  ;;  %3216 = vmatpush.msra.mxu1 %v4755_v47  ;;  %v4790_v48 = vld [vmem:[%s8645_s16 + $0x130] sm:$0xff]  ;;  %v4801_v35 = vld [vmem:[%s8645_s16] sm:$0xff]  ;;  %v4805_v2 = vld [vmem:[%s8645_s16 + $0x2a8] sm:$0xff] }
 0x880   :  { %4508 = vmatmul.msk.f32.gmra.mxu1 %vm158_vm0, %v4746_v20  ;;  %3186 = vmatpush.msra.mxu3 %v4756_v21  ;;  %v4791_v25 = vld [vmem:[%s8645_s16 + $0x30] sm:$0xff]  ;;  %v4807_v47 = vld [vmem:[%s8645_s16 + $0x1d8] sm:$0xff] }
 0x881   :  { %3217 = vmatpush.msra.mxu1 %v4757_v46  ;;  %3157 = vmatpush.msrb.mxu2 %v4758_v38  ;;  %v4796_v36 = vld [vmem:[%s8645_s16 + $0x110] sm:$0xff]  ;;  %v4808_v21 = vld [vmem:[%s8645_s16 + $0x298] sm:$0xff]  ;;  %v4810_v38 = vld [vmem:[%s8645_s16 + $0x1c8] sm:$0xff] }
 0x882   :  { %4504 = vmatmul.msk.f32.gmra.mxu3 %vm158_vm0, %v4746_v20  ;;  %v4797_v33 = vld [vmem:[%s8645_s16 + $0x10] sm:$0xff]  ;;  %v4809_v46 = vld [vmem:[%s8645_s16 + $0xd8] sm:$0xff] }
 0x883   :  { %4500 = vmatmul.msk.f32.gmra.mxu2 %vm158_vm0, %v4746_v20  ;;  %3218 = vmatpush.msra.mxu1 %v4759_v12  ;;  %v4795_v20 = vld [vmem:[%s8645_s16 + $0x2d8] sm:$0xff]  ;;  %v4811_v12 = vld [vmem:[%s8645_s16 + $0x288] sm:$0xff] }
 0x884   :  { %3187 = vmatpush.msra.mxu3 %v4760_v11  ;;  %3158 = vmatpush.msrb.mxu2 %v4761_v1  ;;  %v4812_v11 = vld [vmem:[%s8645_s16 + $0xc8] sm:$0xff]  ;;  %v4813_v1 = vld [vmem:[%s8645_s16 + $0x1b8] sm:$0xff] }
 0x885   :  { %3219 = vmatpush.msra.mxu1 %v4762_v24  ;;  %v4814_v24 = vld [vmem:[%s8645_s16 + $0x278] sm:$0xff] }
 0x886   :  { %3188 = vmatpush.msra.mxu3 %v4763_v45  ;;  %3159 = vmatpush.msrb.mxu2 %v4764_v3  ;;  %v4815_v45 = vld [vmem:[%s8645_s16 + $0xb8] sm:$0xff]  ;;  %v4816_v3 = vld [vmem:[%s8645_s16 + $0x1a8] sm:$0xff] }
 0x887   :  { %4514 = vmatmul.msk.f32.gmra.mxu0 %vm158_vm0, %v4765_v39  ;;  %3220 = vmatpush.msra.mxu1 %v4766_v22  ;;  %v4818_v22 = vld [vmem:[%s8645_s16 + $0xa8] sm:$0xff] }
 0x888   :  { %4509 = vmatmul.msk.f32.gmra.mxu1 %vm158_vm0, %v4754_v16  ;;  %3189 = vmatpush.msra.mxu3 %v4767_v17  ;;  %v4819_v17 = vld [vmem:[%s8645_s16 + $0x198] sm:$0xff] }
 0x889   :  { %3221 = vmatpush.msra.mxu1 %v4768_v37  ;;  %3160 = vmatpush.msrb.mxu2 %v4769_v6  ;;  %v4820_v37 = vld [vmem:[%s8645_s16 + $0x258] sm:$0xff] }
 0x88a   :  { %4505 = vmatmul.msk.f32.gmra.mxu3 %vm158_vm0, %v4754_v16  ;;  %v4821_v6 = vld [vmem:[%s8645_s16 + $0x98] sm:$0xff] }
 0x88b   :  { %4501 = vmatmul.msk.f32.gmra.mxu2 %vm158_vm0, %v4754_v16  ;;  %3222 = vmatpush.msra.mxu1 %v4770_v62  ;;  %v4806_v16 = vld [vmem:[%s8645_s16 + $0xe8] sm:$0xff] }
 0x88c   :  { %3190 = vmatpush.msra.mxu3 %v4771_v50  ;;  %3161 = vmatpush.msrb.mxu2 %v4772_v57  ;;  %v4822_v62 = vld [vmem:[%s8645_s16 + $0x188] sm:$0xff] }
 0x88d   :  { %3223 = vmatpush.msra.mxu1 %v4773_v10  ;;  %v4823_v50 = vld [vmem:[%s8645_s16 + $0x248] sm:$0xff]  ;;  %v4825_v10 = vld [vmem:[%s8645_s16 + $0x178] sm:$0xff] }
 0x88e   :  { %3191 = vmatpush.msra.mxu3 %v4774_v9  ;;  %3162 = vmatpush.msrb.mxu2 %v4775_v44  ;;  %v4824_v57 = vld [vmem:[%s8645_s16 + $0x88] sm:$0xff]  ;;  %v4826_v9 = vld [vmem:[%s8645_s16 + $0x238] sm:$0xff] }
 0x88f   :  { %3224 = vmatpush.msra.mxu1 %v4776_v52  ;;  %v4827_v44 = vld [vmem:[%s8645_s16 + $0x78] sm:$0xff]  ;;  %v4828_v52 = vld [vmem:[%s8645_s16 + $0x168] sm:$0xff] }
 0x890   :  { %4510 = vmatmul.msk.f32.gmra.mxu1 %vm158_vm0, %v4765_v39  ;;  %3192 = vmatpush.msra.mxu3 %v4777_v59  ;;  %v4829_v59 = vld [vmem:[%s8645_s16 + $0x228] sm:$0xff] }
 0x891   :  { %3225 = vmatpush.msra.mxu1 %v4778_v28  ;;  %3163 = vmatpush.msrb.mxu2 %v4779_v29  ;;  %v4830_v28 = vld [vmem:[%s8645_s16 + $0x68] sm:$0xff]  ;;  %v4831_v29 = vld [vmem:[%s8645_s16 + $0x158] sm:$0xff] }
 0x892   :  { %4506 = vmatmul.msk.f32.gmra.mxu3 %vm158_vm0, %v4765_v39 }
 0x893   :  { %4502 = vmatmul.msk.f32.gmra.mxu2 %vm158_vm0, %v4765_v39  ;;  %3193 = vmatpush.msra.mxu3 %v4780_v34  ;;  %v4817_v39 = vld [vmem:[%s8645_s16 + $0x268] sm:$0xff]  ;;  %v4832_v34 = vld [vmem:[%s8645_s16 + $0x218] sm:$0xff] }
 0x894   :  { %3226 = vmatpush.msra.mxu1 %v4781_v30  ;;  %3164 = vmatpush.msrb.mxu2 %v4782_v5  ;;  %v4833_v30 = vld [vmem:[%s8645_s16 + $0x58] sm:$0xff]  ;;  %v4834_v5 = vld [vmem:[%s8645_s16 + $0x148] sm:$0xff] }
 0x895   :  { %3194 = vmatpush.msra.mxu3 %v4783_v49  ;;  %v4835_v49 = vld [vmem:[%s8645_s16 + $0x208] sm:$0xff] }
 0x896   :  { %3227 = vmatpush.msra.mxu1 %v4784_v23  ;;  %3165 = vmatpush.msrb.mxu2 %v4785_v41  ;;  %v4836_v23 = vld [vmem:[%s8645_s16 + $0x48] sm:$0xff]  ;;  %v4837_v41 = vld [vmem:[%s8645_s16 + $0x138] sm:$0xff] }
 0x897   :  { %3195 = vmatpush.msra.mxu3 %v4786_v58  ;;  %v4838_v58 = vld [vmem:[%s8645_s16 + $0x38] sm:$0xff] }
 0x898   :  { %3228 = vmatpush.msra.mxu1 %v4787_v55  ;;  %3166 = vmatpush.msrb.mxu2 %v4788_v61  ;;  %v4839_v55 = vld [vmem:[%s8645_s16 + $0x128] sm:$0xff] }
 0x899   :  { %3196 = vmatpush.msra.mxu3 %v4790_v48  ;;  %v4840_v61 = vld [vmem:[%s8645_s16 + $0x28] sm:$0xff]  ;;  %v4842_v48 = vld [vmem:[%s8645_s16 + $0x18] sm:$0xff] }
 0x89a   :  { %3329 = vmatpush.msrb.mxu1 %v4789_v53  ;;  %3167 = vmatpush.msrb.mxu2 %v4791_v25  ;;  %v4841_v53 = vld [vmem:[%s8645_s16 + $0x118] sm:$0xff]  ;;  %v4843_v25 = vld [vmem:[%s8645_s16 + $0x108] sm:$0xff] }
 0x89b   :  { %3197 = vmatpush.msra.mxu3 %v4793_v8  ;;  %v4643_v8 = vpop.permute.xlu1 %4642 }
 0x89c   :  { %3330 = vmatpush.msrb.mxu1 %v4792_v43  ;;  %3168 = vmatpush.msrb.mxu2 %v4794_v7  ;;  %v4844_v43 = vld [vmem:[%s8645_s16 + $0x8] sm:$0xff]  ;;  %v3534_v7 = vpop.permute.xlu0 %3533 }
 0x89d   :  { %3198 = vmatpush.msra.mxu3 %v4796_v36  ;;  %v4648_v36 = vpop.permute.xlu2 %4647 }
 0x89e   :  { %3331 = vmatpush.msrb.mxu1 %v4795_v20  ;;  %3169 = vmatpush.msrb.mxu2 %v4797_v33 }
 0x89f   :  { %3199 = vmatpush.msra.mxu3 %v4799_v40 }
 0x8a0   :  { %3332 = vmatpush.msrb.mxu1 %v4798_v63  ;;  %3170 = vmatpush.msrb.mxu2 %v4801_v35 }
 0x8a1   :  { %3300 = vmatpush.msrb.mxu3 %v4800_v54 }
 0x8a2   :  { %3333 = vmatpush.msrb.mxu1 %v4802_v0  ;;  %3271 = vmatpush.msra.mxu2 %v4803_v42 }
 0x8a3   :  { %3301 = vmatpush.msrb.mxu3 %v4804_v18  ;;  %v3553_v20 = vpop.permute.xlu1 %3552 }
 0x8a4   :  { %3334 = vmatpush.msrb.mxu1 %v4805_v2  ;;  %3272 = vmatpush.msra.mxu2 %v4806_v16  ;;  %v4653_v33 = vpop.permute.xlu0 %4652 }
 0x8a5   :  { %3302 = vmatpush.msrb.mxu3 %v4807_v47  ;;  %v3572_v40 = vpop.permute.xlu2 %3571 }
 0x8a6   :  { %3335 = vmatpush.msrb.mxu1 %v4808_v21  ;;  %3273 = vmatpush.msra.mxu2 %v4809_v46 }
 0x8a7   :  { %3303 = vmatpush.msrb.mxu3 %v4810_v38 }
 0x8a8   :  { %3336 = vmatpush.msrb.mxu1 %v4811_v12  ;;  %3274 = vmatpush.msra.mxu2 %v4812_v11 }
 0x8a9   :  { %3304 = vmatpush.msrb.mxu3 %v4813_v1 }
 0x8aa   :  { %3337 = vmatpush.msrb.mxu1 %v4814_v24  ;;  %3275 = vmatpush.msra.mxu2 %v4815_v45  ;;  %v4644_v24 = vunpack.i.l.bf16 %v4643_v8 }
 0x8ab   :  { %3305 = vmatpush.msrb.mxu3 %v4816_v3  ;;  %v7877_v63 = vpop.permute.xlu1 %3582 }
 0x8ac   :  { %3338 = vmatpush.msrb.mxu1 %v4817_v39  ;;  %3276 = vmatpush.msra.mxu2 %v4818_v22  ;;  %v7879_v54 = vpop.permute.xlu0 %3584 }
 0x8ad   :  { %3306 = vmatpush.msrb.mxu3 %v4819_v17  ;;  %v3587_v0 = vpop.permute.xlu2 %3586 }
 0x8ae   :  { %3339 = vmatpush.msrb.mxu1 %v4820_v37  ;;  %3277 = vmatpush.msra.mxu2 %v4821_v6 }
 0x8af   :  { %3307 = vmatpush.msrb.mxu3 %v4822_v62  ;;  %v4650_v62 = vunpack.i.h.bf16 %v4648_v36 }
 0x8b0   :  { %3340 = vmatpush.msrb.mxu1 %v4823_v50  ;;  %3278 = vmatpush.msra.mxu2 %v4824_v57 }
 0x8b1   :  { %3308 = vmatpush.msrb.mxu3 %v4825_v10 }
 0x8b2   :  { %3341 = vmatpush.msrb.mxu1 %v4826_v9  ;;  %3279 = vmatpush.msra.mxu2 %v4827_v44  ;;  %v4649_v9 = vunpack.i.l.bf16 %v4648_v36 }
 0x8b3   :  { %3309 = vmatpush.msrb.mxu3 %v4828_v52  ;;  %v3536_v35 = vpop.permute.xlu1 %3535 }
 0x8b4   :  { %3342 = vmatpush.msrb.mxu1 %v4829_v59  ;;  %3280 = vmatpush.msra.mxu2 %v4830_v28  ;;  %v3600_v42 = vsel %vm1025_vm3, %v6925_v51, %v3536_v35  ;;  %v3555_v18 = vpop.permute.xlu0 %3554  ;;  %v3539_v47 = vsel %vm8730_vm13, %v3534_v7, %v3536_v35  ;;  %v4645_v51 = vunpack.i.h.bf16 %v4643_v8  ;;  %vm8742_vm13 = vmmov %vm8734_vm9  ;;  %v3557_v28 = vsel %vm8731_vm12, %v4650_v62, %v3553_v20 }
 0x8b5   :  { %3310 = vmatpush.msrb.mxu3 %v4831_v29  ;;  %v3604_v2 = vsel %vm8728_vm10, %v3600_v42, %v3536_v35  ;;  %v3574_v46 = vpop.permute.xlu2 %3573  ;;  %v3599_v38 = vsel %vm1025_vm3, %v6843_v32, %v3539_v47  ;;  %v3558_v12 = vsel %vm8731_vm12, %v3553_v20, %v3555_v18  ;;  %vm8740_vm10 = vmmov %vm8733_vm6  ;;  %v4655_v29 = vunpack.i.h.bf16 %v4653_v33 }
 0x8b6   :  { %3343 = vmatpush.msrb.mxu1 %v4832_v34  ;;  %3281 = vmatpush.msra.mxu2 %v4833_v30  ;;  %v3608_v16 = vsel %vm8729_vm2, %v3604_v2, %v3555_v18  ;;  %v3603_v3 = vsel %vm8734_vm9, %v3599_v38, %v3539_v47  ;;  %v3538_v22 = vsel %vm8737_vm14, %v4645_v51, %v3534_v7  ;;  %vm8741_vm2 = vmmov %vm8732_vm8  ;;  %v4847_v38 = vld [vmem:[%s8642_s13 + $0x10] sm:$0xff] }
 0x8b7   :  { %3311 = vmatpush.msrb.mxu3 %v4834_v5  ;;  %v3612_v21 = vsel %vm1660_vm11, %v3608_v16, %v3555_v18  ;;  %v3607_v39 = vsel %vm8735_vm1, %v3603_v3, %v3558_v12  ;;  %v3537_v17 = vsel %vm8738_vm7, %v4644_v24, %v4645_v51  ;;  %v3598_v6 = vsel %vm1025_vm3, %v6786_v56, %v3538_v22  ;;  %vm8746_vm1 = vmmov %vm8731_vm12  ;;  %v4851_v51 = vld [vmem:[%s8642_s13 + $0x30] sm:$0xff]  ;;  %v4852_v24 = vld [vmem:[%s8642_s13 + $0x38] sm:$0xff] }
 0x8b8   :  { %3344 = vmatpush.msrb.mxu1 %v4835_v49  ;;  %3282 = vmatpush.msra.mxu2 %v4836_v23  ;;  %v3616_v1 = vsel %vm8732_vm8, %v3612_v21, %v3574_v46  ;;  %v3611_v37 = vsel %vm1660_vm11, %v3607_v39, %v3558_v12  ;;  %v3597_v50 = vsel %vm1025_vm3, %v6759_v4, %v3537_v17  ;;  %vm8743_vm8 = vcmask 1014784   ;;  %vm8748_vm14 = vmmov %vm8739_vm4  ;;  %v4845_v21 = vld [vmem:[%s8642_s13] sm:$0xff]  ;;  %v4848_v12 = vld [vmem:[%s8642_s13 + $0x18] sm:$0xff] }
 0x8b9   :  { %3312 = vmatpush.msrb.mxu3 %v4837_v41  ;;  %v3620_v32 = vsel %vm8736_vm5, %v3616_v1, %v3574_v46  ;;  %v3577_v57 = vsel %vm8739_vm4, %v3572_v40, %v3574_v46  ;;  %v3602_v59 = vsel %vm8742_vm13, %v3598_v6, %v3538_v22  ;;  %v4654_v4 = vunpack.i.l.bf16 %v4653_v33  ;;  %vm8750_vm13 = vmmov %vm8743_vm8  ;;  %v4846_v46 = vld [vmem:[%s8642_s13 + $0x8] sm:$0xff] }
 0x8ba   :  { %3283 = vmatpush.msra.mxu2 %v4838_v58  ;;  %v3615_v52 = vsel %vm8741_vm2, %v3611_v37, %v3577_v57  ;;  %v3556_v5 = vsel %vm8746_vm1, %v4649_v9, %v4650_v62  ;;  %v3576_v23 = vsel %vm8748_vm14, %v4655_v29, %v3572_v40  ;;  %v3591_v8 = vsel %vm8750_vm13, %v7879_v54, %v3587_v0  ;;  %vm8751_vm12 = vmmov %vm8741_vm2  ;;  %v4850_v1 = vld [vmem:[%s8642_s13 + $0x28] sm:$0xff] }
 0x8bb   :  { %3313 = vmatpush.msrb.mxu3 %v4839_v55  ;;  %v3589_v45 = vpop.permute.xlu1 %3588  ;;  %v3575_v58 = vsel %vm8739_vm4, %v4654_v4, %v4655_v29  ;;  %v3590_v36 = vsel %vm8743_vm8, %v7877_v63, %v7879_v54  ;;  %vm8759_vm4 = vcmask 80896  }
 0x8bc   :  { %3284 = vmatpush.msra.mxu2 %v4840_v61  ;;  %v3592_v56 = vsel %vm8743_vm8, %v3587_v0, %v3589_v45 }
 0x8bd   :  { %3314 = vmatpush.msrb.mxu3 %v4841_v53 }
 0x8be   :  { %3285 = vmatpush.msra.mxu2 %v4842_v48 }
 0x8bf   :  { %3315 = vmatpush.msrb.mxu3 %v4843_v25 }
 0x8c0   :  { %3286 = vmatpush.msra.mxu2 %v4844_v43 }
 0x8ec   :  { %v7890_v11 = vpop.f32.mrf.mxu0 }
 0x8ed   :  { %4515 = vmatmul.msk.f32.vlgmr.msra.gmra.mxu0 %vm8733_vm6, %v7890_v11  ;;  %vm8744_vm6 = vmmov %vm8734_vm9 }
 0x8ee   :  { %4556 = vmatpush.msk.msra.mxu0 %vm1025_vm3, %v3589_v45  ;;  %v3601_v34 = vsel %vm8744_vm6, %v3597_v50, %v3537_v17  ;;  %vm8745_vm9 = vmmov %vm8736_vm5  ;;  %vm8747_vm5 = vcmask 1043456  }
 0x8ef   :  { %v3619_v30 = vsel %vm8745_vm9, %v3615_v52, %v3577_v57  ;;  %v3606_v49 = vsel %vm8747_vm5, %v3602_v59, %v3557_v28  ;;  %vm8749_vm7 = vmmov %vm8747_vm5 }
 0x8f0   :  { %3771 = vmatpush.msra.mxu0 %v3620_v32  ;;  %v3605_v41 = vsel %vm8749_vm7, %v3601_v34, %v3556_v5  ;;  %v3610_v55 = vsel %vm1660_vm11, %v3606_v49, %v3557_v28  ;;  %vm8752_vm6 = vmmov %vm8745_vm9 }
 0x8f1   :  { %v3614_v25 = vsel %vm8741_vm2, %v3610_v55, %v3576_v23  ;;  %v3609_v43 = vsel %vm1660_vm11, %v3605_v41, %v3556_v5  ;;  %vm8753_vm11 = vmmov %vm8752_vm6 }
 0x8f2   :  { %v3613_v20 = vsel %vm8751_vm12, %v3609_v43, %v3575_v58  ;;  %v3618_v33 = vsel %vm8752_vm6, %v3614_v25, %v3576_v23  ;;  %vm8754_vm9 = vmmov %vm8740_vm10 }
 0x8f3   :  { %v3617_v40 = vsel %vm8753_vm11, %v3613_v20, %v3575_v58  ;;  %vm8755_vm1 = vmmov %vm8754_vm9 }
 0x8f4   :  { %v3134_v10 = vpop.f32.mrf.mxu0  ;;  %vm8756_vm5 = vmmov %vm8755_vm1 }
 0x8f5   :  { %v3102_v44 = vpop.f32.mrf.mxu1  ;;  %4516 = vmatmul.msk.f32.gmra.mxu0 %vm8740_vm10, %v3134_v10  ;;  %vm8757_vm14 = vmmov %vm8755_vm1 }
 0x8f6   :  { %3229 = vmatmul.f32.vlgmr.msra.gmra.mxu1 %v3102_v44  ;;  %vm8758_vm7 = vmmov %vm8755_vm1 }
 0x8f7   :  { %4547 = vmatpush.msk.msra.mxu1 %vm1025_vm3, %v3592_v56  ;;  %vm8761_vm2 = vmmov %vm8759_vm4 }
 0x8f8   :  { %vm8762_vm13 = vmmov %vm8761_vm2 }
 0x8f9   :  { %3730 = vmatpush.msra.mxu1 %v3619_v30  ;;  %vm8763_vm12 = vmmov %vm8761_vm2 }
 0x8fa   :  { %vm8764_vm8 = vmmov %vm8761_vm2 }
 0x8fb   :  { %vm8765_vm6 = vmmov %vm8761_vm2 }
 0x8fc   :  { %v3137_v61 = vpop.f32.mrf.mxu0  ;;  %vm8766_vm11 = vmmov %vm8761_vm2 }
 0x8fd   :  { %v3073_v53 = vpop.f32.mrf.mxu3  ;;  %v3105_v48 = vpop.f32.mrf.mxu1  ;;  %4517 = vmatmul.msk.f32.gmra.mxu0 %vm8740_vm10, %v3137_v61  ;;  %vm8760_vm10 = vmmov %vm8759_vm4 }
 0x8fe   :  { %3200 = vmatmul.f32.vlgmr.msra.gmra.mxu3 %v3073_v53  ;;  %3232 = vmatmul.f32.gmra.mxu1 %v3105_v48  ;;  %v3044_v7 = vpop.f32.mrf.mxu2 }
 0x8ff   :  { %4538 = vmatpush.msk.msra.mxu3 %vm1025_vm3, %v3591_v8  ;;  %3171 = vmatmul.f32.vlgmr.msrb.gmra.mxu2 %v3044_v7 }
 0x900   :  { %4529 = vmatpush.msk.msrb.mxu2 %vm1025_vm3, %v3590_v36 }
 0x901   :  { %3689 = vmatpush.msra.mxu3 %v3618_v33 }
 0x902   :  { %3648 = vmatpush.msrb.mxu2 %v3617_v40 }
 0x904   :  { %v3140_v35 = vpop.f32.mrf.mxu0 }
 0x905   :  { %v3076_v0 = vpop.f32.mrf.mxu3  ;;  %v3108_v42 = vpop.f32.mrf.mxu1  ;;  %4518 = vmatmul.msk.f32.gmra.mxu0 %vm8754_vm9, %v3140_v35  ;;  %vm8767_vm9 = vmmov %vm8761_vm2 }
 0x906   :  { %3203 = vmatmul.f32.gmra.mxu3 %v3076_v0  ;;  %3235 = vmatmul.f32.gmra.mxu1 %v3108_v42  ;;  %v3047_v18 = vpop.f32.mrf.mxu2 }
 0x907   :  { %3174 = vmatmul.f32.gmra.mxu2 %v3047_v18 }
 0x90d   :  { %v3079_v63 = vpop.f32.mrf.mxu3  ;;  %v3111_v54 = vpop.f32.mrf.mxu1  ;;  %4519 = vmatmul.msk.f32.vlgmr.msrb.gmra.mxu0 %vm8755_vm1, %v7890_v11  ;;  %vm8768_vm1 = vmmov %vm8761_vm2  ;;  %v4849_v11 = vld [vmem:[%s8642_s13 + $0x20] sm:$0xff] }
 0x90e   :  { %3206 = vmatmul.f32.gmra.mxu3 %v3079_v63  ;;  %3238 = vmatmul.f32.gmra.mxu1 %v3111_v54  ;;  %v3050_v2 = vpop.f32.mrf.mxu2 }
 0x90f   :  { %3177 = vmatmul.f32.gmra.mxu2 %v3050_v2 }
 0x915   :  { %v3082_v16 = vpop.f32.mrf.mxu3  ;;  %4520 = vmatmul.msk.f32.gmra.mxu0 %vm8756_vm5, %v3134_v10  ;;  %vm8769_vm5 = vmmov %vm8768_vm1 }
 0x916   :  { %3209 = vmatmul.f32.gmra.mxu3 %v3082_v16  ;;  %3345 = vmatmul.f32.vlgmr.msrb.gmra.mxu1 %v3102_v44  ;;  %v3053_v47 = vpop.f32.mrf.mxu2 }
 0x917   :  { %3180 = vmatmul.f32.gmra.mxu2 %v3053_v47 }
 0x91d   :  { %4521 = vmatmul.msk.f32.gmra.mxu0 %vm8757_vm14, %v3137_v61  ;;  %vm8770_vm14 = vmmov %vm8768_vm1 }
 0x91e   :  { %3316 = vmatmul.f32.vlgmr.msrb.gmra.mxu3 %v3073_v53  ;;  %3348 = vmatmul.f32.gmra.mxu1 %v3105_v48 }
 0x91f   :  { %3287 = vmatmul.f32.vlgmr.msra.gmra.mxu2 %v3044_v7 }
 0x925   :  { %4522 = vmatmul.msk.f32.gmra.mxu0 %vm8758_vm7, %v3140_v35  ;;  %vm8771_vm7 = vmmov %vm8768_vm1 }
 0x926   :  { %3319 = vmatmul.f32.gmra.mxu3 %v3076_v0  ;;  %3351 = vmatmul.f32.gmra.mxu1 %v3108_v42 }
 0x927   :  { %3290 = vmatmul.f32.gmra.mxu2 %v3047_v18 }
 0x92d   :  { %4557 = vmatmul.msk.f32.vlgmr.msra.gmra.mxu0 %vm8759_vm4, %v4845_v21  ;;  %vm8772_vm4 = vmmov %vm8768_vm1 }
 0x92e   :  { %3322 = vmatmul.f32.gmra.mxu3 %v3079_v63  ;;  %3354 = vmatmul.f32.gmra.mxu1 %v3111_v54 }
 0x92f   :  { %3293 = vmatmul.f32.gmra.mxu2 %v3050_v2  ;;  %v8009_v2 = vld [vmem:[%s8646_s17 + $0x8] sm:$0xff] }
 0x935   :  { %4558 = vmatmul.msk.f32.gmra.mxu0 %vm8760_vm10, %v4846_v46  ;;  %vm8773_vm10 = vmmov %vm8768_vm1 }
 0x936   :  { %3325 = vmatmul.f32.gmra.mxu3 %v3082_v16  ;;  %4548 = vmatmul.msk.f32.vlgmr.msra.gmra.mxu1 %vm8761_vm2, %v4845_v21  ;;  %vm8774_vm2 = vmmov %vm8768_vm1 }
 0x937   :  { %3296 = vmatmul.f32.gmra.mxu2 %v3053_v47  ;;  %v8015_v47 = vld [vmem:[%s8646_s17 + $0x48] sm:$0xff] }
 0x93d   :  { %4559 = vmatmul.msk.f32.gmra.mxu0 %vm8762_vm13, %v4847_v38  ;;  %vm8775_vm13 = vmmov %vm8768_vm1 }
 0x93e   :  { %4539 = vmatmul.msk.f32.vlgmr.msra.gmra.mxu3 %vm8763_vm12, %v4845_v21  ;;  %4549 = vmatmul.msk.f32.gmra.mxu1 %vm8764_vm8, %v4846_v46  ;;  %vm8776_vm12 = vmmov %vm8768_vm1 }
 0x93f   :  { %4530 = vmatmul.msk.f32.vlgmr.msrb.gmra.mxu2 %vm8765_vm6, %v4845_v21  ;;  %vm8777_vm8 = vmmov %vm8768_vm1 }
 0x940   :  { %vm8778_vm6 = vmmov %vm8768_vm1 }
 0x945   :  { %4560 = vmatmul.msk.f32.gmra.mxu0 %vm8766_vm11, %v4848_v12  ;;  %vm8779_vm11 = vmmov %vm8768_vm1 }
 0x946   :  { %4540 = vmatmul.msk.f32.gmra.mxu3 %vm8767_vm9, %v4846_v46  ;;  %4550 = vmatmul.msk.f32.gmra.mxu1 %vm8768_vm1, %v4847_v38  ;;  %vm8780_vm9 = vmmov %vm8768_vm1 }
 0x947   :  { %4531 = vmatmul.msk.f32.gmra.mxu2 %vm8769_vm5, %v4846_v46  ;;  %vm8781_vm5 = vmmov %vm8768_vm1 }
 0x94d   :  { %4561 = vmatmul.msk.f32.gmra.mxu0 %vm8770_vm14, %v4849_v11  ;;  %vm8782_vm14 = vmmov %vm8768_vm1 }
 0x94e   :  { %4541 = vmatmul.msk.f32.gmra.mxu3 %vm8771_vm7, %v4847_v38  ;;  %4551 = vmatmul.msk.f32.gmra.mxu1 %vm8772_vm4, %v4848_v12  ;;  %vm8783_vm7 = vmmov %vm8768_vm1 }
 0x94f   :  { %4532 = vmatmul.msk.f32.gmra.mxu2 %vm8773_vm10, %v4847_v38  ;;  %vm8784_vm4 = vmmov %vm8768_vm1  ;;  %v8021_v38 = vld [vmem:[%s8646_s17] sm:$0xff] }
 0x950   :  { %vm8785_vm10 = vmmov %vm8768_vm1 }
 0x955   :  { %4562 = vmatmul.msk.f32.gmra.mxu0 %vm8774_vm2, %v4850_v1  ;;  %vm8786_vm2 = vmmov %vm8768_vm1 }
 0x956   :  { %4542 = vmatmul.msk.f32.gmra.mxu3 %vm8775_vm13, %v4848_v12  ;;  %4552 = vmatmul.msk.f32.gmra.mxu1 %vm8776_vm12, %v4849_v11  ;;  %vm8787_vm13 = vmmov %vm8768_vm1 }
 0x957   :  { %4533 = vmatmul.msk.f32.gmra.mxu2 %vm8777_vm8, %v4848_v12  ;;  %vm8788_vm12 = vmmov %vm8768_vm1 }
 0x958   :  { %vm8789_vm8 = vmmov %vm8768_vm1 }
 0x95d   :  { %4563 = vmatmul.msk.f32.gmra.mxu0 %vm8778_vm6, %v4851_v51  ;;  %vm8790_vm6 = vcmask 588800  }
 0x95e   :  { %4543 = vmatmul.msk.f32.gmra.mxu3 %vm8779_vm11, %v4849_v11  ;;  %4553 = vmatmul.msk.f32.gmra.mxu1 %vm8780_vm9, %v4850_v1  ;;  %vm8791_vm11 = vmmov %vm8790_vm6 }
 0x95f   :  { %4534 = vmatmul.msk.f32.gmra.mxu2 %vm8768_vm1, %v4849_v11  ;;  %v8027_v11 = vld [vmem:[%s8646_s17 + $0x40] sm:$0xff]  ;;  %vm8792_vm9 = vmmov %vm8790_vm6 }
 0x960   :  { %vm8793_vm1 = vmmov %vm8790_vm6 }
 0x965   :  { %4564 = vmatmul.msk.f32.gmra.mxu0 %vm8781_vm5, %v4852_v24  ;;  %vm8794_vm5 = vmmov %vm8793_vm1 }
 0x966   :  { %4544 = vmatmul.msk.f32.gmra.mxu3 %vm8782_vm14, %v4850_v1  ;;  %4554 = vmatmul.msk.f32.gmra.mxu1 %vm8783_vm7, %v4851_v51  ;;  %vm8795_vm14 = vmmov %vm8793_vm1 }
 0x967   :  { %4535 = vmatmul.msk.f32.gmra.mxu2 %vm8784_vm4, %v4850_v1  ;;  %vm8797_vm7 = vmmov %vm8793_vm1 }
 0x968   :  { %vm8798_vm4 = vmmov %vm8793_vm1 }
 0x96a   :  { %v3259_v45 = vpop.f32.mrf.mxu0 }
 0x96e   :  { %4545 = vmatmul.msk.f32.gmra.mxu3 %vm8785_vm10, %v4851_v51  ;;  %4555 = vmatmul.msk.f32.gmra.mxu1 %vm8786_vm2, %v4852_v24 }
 0x96f   :  { %4536 = vmatmul.msk.f32.gmra.mxu2 %vm8787_vm13, %v4851_v51 }
 0x972   :  { %v3262_v3 = vpop.f32.mrf.mxu0 }
 0x973   :  { %v3230_v39 = vpop.f32.mrf.mxu1 }
 0x976   :  { %4546 = vmatmul.msk.f32.gmra.mxu3 %vm8788_vm12, %v4852_v24 }
 0x977   :  { %4537 = vmatmul.msk.f32.gmra.mxu2 %vm8789_vm8, %v4852_v24 }
 0x97a   :  { %v7996_v32 = vpop.f32.mrf.mxu0 }
 0x97b   :  { %v3233_v22 = vpop.f32.mrf.mxu1 }
 0x981   :  { %v3201_v17 = vpop.f32.mrf.mxu3 }
 0x982   :  { %v7998_v37 = vpop.f32.mrf.mxu0  ;;  %v3172_v6 = vpop.f32.mrf.mxu2 }
 0x983   :  { %v3236_v62 = vpop.f32.mrf.mxu1  ;;  %v3202_v30 = vadd.f32 %v3201_v17, %v3172_v6 }
 0x985   :  { %v3231_v5 = vadd.f32 %v3230_v39, %v3202_v30  ;;  %v8059_v30 = vld [vmem:[%s8646_s17 + $0x10] sm:$0xff] }
 0x987   :  { %v3260_v61 = vadd.f32 %v3259_v45, %v3231_v5 }
 0x989   :  { %v3204_v50 = vpop.f32.mrf.mxu3  ;;  %4705 = vtanh.f32 %v3260_v61 }
 0x98a   :  { %v3375_v57 = vpop.f32.mrf.mxu0  ;;  %v3175_v10 = vpop.f32.mrf.mxu2 }
 0x98b   :  { %v8000_v9 = vpop.f32.mrf.mxu1  ;;  %v3205_v53 = vadd.f32 %v3204_v50, %v3175_v10 }
 0x98d   :  { %v3234_v43 = vadd.f32 %v3233_v22, %v3205_v53 }
 0x98f   :  { %v3263_v40 = vadd.f32 %v3262_v3, %v3234_v43  ;;  %v4706_v42 = vpop.eup %4705 }
 0x990   :  { %v3395_v12 = vmul.f32 %v8021_v38, %v4706_v42  ;;  %v3419_v1 = vmul.f32 %v8027_v11, %v4706_v42  ;;  %v8079_v42 = vld [vmem:[%s8646_s17 + $0x68] sm:$0xff] }
 0x991   :  { %v3207_v44 = vpop.f32.mrf.mxu3 }
 0x992   :  { %v3378_v52 = vpop.f32.mrf.mxu0  ;;  %v3178_v59 = vpop.f32.mrf.mxu2 }
 0x993   :  { %v3346_v28 = vpop.f32.mrf.mxu1  ;;  %v3208_v35 = vadd.f32 %v3207_v44, %v3178_v59 }
 0x995   :  { %v3237_v54 = vadd.f32 %v3236_v62, %v3208_v35  ;;  %v8073_v35 = vld [vmem:[%s8646_s17 + $0x28] sm:$0xff] }
 0x997   :  { %v3266_v62 = vadd.f32 %v7996_v32, %v3237_v54  ;;  %v8047_v32 = vld [vmem:[%s8646_s17 + $0x18] sm:$0xff] }
 0x999   :  { %v3210_v29 = vpop.f32.mrf.mxu3 }
 0x99a   :  { %v3381_v56 = vpop.f32.mrf.mxu0  ;;  %v3181_v34 = vpop.f32.mrf.mxu2 }
 0x99b   :  { %v3349_v4 = vpop.f32.mrf.mxu1  ;;  %v3211_v50 = vadd.f32 %v3210_v29, %v3181_v34 }
 0x99d   :  { %v3240_v59 = vadd.f32 %v8000_v9, %v3211_v50  ;;  %v8053_v9 = vld [vmem:[%s8646_s17 + $0x50] sm:$0xff] }
 0x99f   :  { %v3269_v43 = vadd.f32 %v7998_v37, %v3240_v59 }
 0x9a1   :  { %v3317_v49 = vpop.f32.mrf.mxu3 }
 0x9a2   :  { %v8002_v23 = vpop.f32.mrf.mxu0  ;;  %v3288_v41 = vpop.f32.mrf.mxu2 }
 0x9a3   :  { %v3318_v58 = vadd.f32 %v3317_v49, %v3288_v41  ;;  %v3352_v55 = vpop.f32.mrf.mxu1 }
 0x9a5   :  { %v3347_v48 = vadd.f32 %v3346_v28, %v3318_v58  ;;  %v8041_v28 = vld [vmem:[%s8646_s17 + $0x58] sm:$0xff] }
 0x9a7   :  { %v3376_v25 = vadd.f32 %v3375_v57, %v3347_v48 }
 0x9a9   :  { %4707 = vtanh.f32 %v3376_v25  ;;  %v3320_v8 = vpop.f32.mrf.mxu3 }
 0x9aa   :  { %v8004_v7 = vpop.f32.mrf.mxu0  ;;  %v3291_v20 = vpop.f32.mrf.mxu2  ;;  %4709 = vtanh.f32 %v3263_v40 }
 0x9ab   :  { %v3321_v36 = vadd.f32 %v3320_v8, %v3291_v20  ;;  %v3355_v33 = vpop.f32.mrf.mxu1 }
 0x9ad   :  { %v3350_v0 = vadd.f32 %v3349_v4, %v3321_v36 }
 0x9af   :  { %v4708_v18 = vpop.eup %4707  ;;  %v3379_v63 = vadd.f32 %v3378_v52, %v3350_v0 }
 0x9b0   :  { %v3396_v16 = vmul.f32 %v8009_v2, %v4708_v18  ;;  %v3420_v21 = vmul.f32 %v8015_v47, %v4708_v18  ;;  %v4710_v10 = vpop.eup %4709 }
 0x9b1   :  { %4711 = vtanh.f32 %v3379_v63  ;;  %v3323_v46 = vpop.f32.mrf.mxu3  ;;  %v3397_v5 = vmul.f32 %v8059_v30, %v4710_v10  ;;  %v8093_v63 = vld [vmem:[%s8646_s17 + $0x60] sm:$0xff] }
 0x9b2   :  { %v8030_v51 = vpop.f32.mrf.mxu0  ;;  %v3294_v24 = vpop.f32.mrf.mxu2  ;;  %v3403_v45 = vsel %vm8790_vm6, %v3396_v16, 0.0  ;;  %v3427_v3 = vsel %vm8791_vm11, %v3420_v21, 0.0  ;;  %4713 = vtanh.f32 %v3266_v62  ;;  %v8111_v62 = vld [vmem:[%s8646_s17 + $0x78] sm:$0xff] }
 0x9b3   :  { %v3324_v39 = vadd.f32 %v3323_v46, %v3294_v24  ;;  %v8034_v22 = vpop.f32.mrf.mxu1  ;;  %v3404_v17 = vadd.f32 %v3403_v45, %v3395_v12  ;;  %v3428_v6 = vadd.f32 %v3427_v3, %v3419_v1 }
 0x9b5   :  { %v3353_v57 = vadd.f32 %v3352_v55, %v3324_v39  ;;  %3405 = vadd.xlane.f32.xlu1 %v3404_v17  ;;  %3429 = vadd.xlane.f32.xlu0 %v3428_v6  ;;  %v8105_v17 = vld [vmem:[%s8646_s17 + $0x38] sm:$0xff] }
 0x9b7   :  { %v4712_v44 = vpop.eup %4711  ;;  %v3382_v52 = vadd.f32 %v3381_v56, %v3353_v57  ;;  %v3421_v56 = vmul.f32 %v8053_v9, %v4710_v10  ;;  %v8119_v10 = vld [vmem:[%s8646_s17 + $0x30] sm:$0xff] }
 0x9b8   :  { %v3422_v4 = vmul.f32 %v8041_v28, %v4712_v44  ;;  %v3398_v29 = vmul.f32 %v8047_v32, %v4712_v44  ;;  %v4714_v20 = vpop.eup %4713  ;;  %8796 = vst [vmem:[#allocation8_spill] sm:$0xff] %v8119_v10 }
 0x9b9   :  { %4715 = vtanh.f32 %v3382_v52  ;;  %v3326_v34 = vpop.f32.mrf.mxu3  ;;  %v3423_v54 = vmul.f32 %v8093_v63, %v4714_v20  ;;  %v8125_v52 = vld [vmem:[%s8646_s17 + $0x70] sm:$0xff] }
 0x9ba   :  { %v8062_v49 = vpop.f32.mrf.mxu0  ;;  %v3297_v41 = vpop.f32.mrf.mxu2  ;;  %v3431_v58 = vsel %vm8792_vm9, %v3422_v4, 0.0  ;;  %v3407_v55 = vsel %vm8793_vm1, %v3398_v29, 0.0  ;;  %4717 = vtanh.f32 %v3269_v43 }
 0x9bb   :  { %v3327_v61 = vadd.f32 %v3326_v34, %v3297_v41  ;;  %v8066_v53 = vpop.f32.mrf.mxu1  ;;  %v3432_v48 = vadd.f32 %v3431_v58, %v3421_v56  ;;  %v3408_v25 = vadd.f32 %v3407_v55, %v3397_v5 }
 0x9bd   :  { %v3356_v8 = vadd.f32 %v3355_v33, %v3327_v61  ;;  %3433 = vadd.xlane.f32.xlu2 %v3432_v48  ;;  %3409 = vadd.xlane.f32.xlu0 %v3408_v25 }
 0x9bf   :  { %v4716_v36 = vpop.eup %4715  ;;  %v3385_v40 = vadd.f32 %v8002_v23, %v3356_v8  ;;  %v8087_v23 = vld [vmem:[%s8646_s17 + $0x20] sm:$0xff] }
 0x9c0   :  { %v3400_v0 = vmul.f32 %v8073_v35, %v4716_v36  ;;  %v3424_v37 = vmul.f32 %v8079_v42, %v4716_v36  ;;  %v3399_v18 = vmul.f32 %v8087_v23, %v4714_v20  ;;  %v4718_v3 = vpop.eup %4717 }
 0x9c1   :  { %4719 = vtanh.f32 %v3385_v40  ;;  %v8082_v33 = vpop.f32.mrf.mxu3  ;;  %v3401_v44 = vmul.f32 %v8119_v10, %v4718_v3  ;;  %v3425_v59 = vmul.f32 %v8125_v52, %v4718_v3 }
 0x9c2   :  { %v3782_v16 = vpop.f32.mrf.mxu0  ;;  %v8096_v21 = vpop.f32.mrf.mxu2  ;;  %v3411_v46 = vsel %vm8794_vm5, %v3400_v0, 0.0  ;;  %v3435_v12 = vsel %vm8795_vm14, %v3424_v37, 0.0 }
 0x9c3   :  { %v8100_v1 = vpop.f32.mrf.mxu1  ;;  %v3412_v24 = vadd.f32 %v3411_v46, %v3399_v18  ;;  %v3436_v45 = vadd.f32 %v3435_v12, %v3423_v54 }
 0x9c5   :  { %3413 = vadd.xlane.f32.xlu2 %v3412_v24  ;;  %3437 = vadd.xlane.f32.xlu0 %v3436_v45 }
 0x9c7   :  { %v4720_v39 = vpop.eup %4719 }
 0x9c8   :  { %v3402_v6 = vmul.f32 %v8105_v17, %v4720_v39  ;;  %v3426_v50 = vmul.f32 %v8111_v62, %v4720_v39  ;;  %v3783_v39 = vadd.f32 %v3782_v16, %v6524_v19  ;;  %v3774_v16 = vadd.f32 %v8004_v7, %v6543_v26 }
 0x9c9   :  { %v8114_v57 = vpop.f32.mrf.mxu3 }
 0x9ca   :  { %v3785_v4 = vpop.f32.mrf.mxu0  ;;  %v8128_v29 = vpop.f32.mrf.mxu2  ;;  %v3415_v34 = vsel %vm8797_vm7, %v3402_v6, 0.0  ;;  %v3439_v56 = vsel %vm8798_vm4, %v3426_v50, 0.0  ;;  %vm3812_vm8 = vcmp.gt.f32.partialorder %v3783_v39, 0.0  ;;  %vm3800_vm14 = vcmp.gt.f32.partialorder %v3774_v16, 0.0 }
 0x9cb   :  { %v3741_v5 = vpop.f32.mrf.mxu1  ;;  %v3416_v41 = vadd.f32 %v3415_v34, %v3401_v44  ;;  %v8132_v58 = vadd.f32 %v3439_v56, %v3425_v59  ;;  %v3786_v24 = vadd.f32 %v3785_v4, %v6512_v13  ;;  %v3780_v44 = vadd.f32 %v8062_v49, %v6535_v15 }
 0x9cd   :  { %3417 = vadd.xlane.f32.xlu1 %v3416_v41  ;;  %v3848_v59 = vmul.f32 0.01, %v3786_v24  ;;  %vm3816_vm12 = vcmp.gt.f32.partialorder %v3786_v24, 0.0  ;;  %vm3808_vm6 = vcmp.gt.f32.partialorder %v3780_v44, 0.0 }
 0x9d1   :  { %v8134_v55 = vpop.f32.mrf.mxu3 }
 0x9d2   :  { %v3788_v61 = vpop.f32.mrf.mxu0  ;;  %v8136_v48 = vpop.f32.mrf.mxu2 }
 0x9d3   :  { %v3744_v25 = vpop.f32.mrf.mxu1  ;;  %v3789_v54 = vadd.f32 %v3788_v61, %v6503_v60  ;;  %v3777_v61 = vadd.f32 %v8030_v51, %v6546_v27 }
 0x9d5   :  { %v3852_v6 = vmul.f32 0.01, %v3789_v54  ;;  %vm3820_vm13 = vcmp.gt.f32.partialorder %v3789_v54, 0.0  ;;  %v3836_v51 = vmul.f32 0.01, %v3777_v61  ;;  %vm3804_vm1 = vcmp.gt.f32.partialorder %v3777_v61, 0.0 }
 0x9d9   :  { %v8138_v43 = vpop.f32.mrf.mxu3 }
 0x9da   :  { %v3791_v8 = vpop.f32.mrf.mxu0  ;;  %v8140_v20 = vpop.f32.mrf.mxu2 }
 0x9db   :  { %v3747_v36 = vpop.f32.mrf.mxu1  ;;  %v3792_v40 = vadd.f32 %v3791_v8, %v6533_v14  ;;  %v3844_v8 = vmul.f32 0.01, %v3783_v39 }
 0x9dc   :  { %v3748_v49 = vadd.f32 %v3747_v36, %v6503_v60 }
 0x9dd   :  { %v3856_v45 = vmul.f32 0.01, %v3792_v40  ;;  %vm3824_vm2 = vcmp.gt.f32.partialorder %v3792_v40, 0.0  ;;  %v3876_v10 = vsel %vm3812_vm8, %v3783_v39, %v3844_v8  ;;  %v3739_v39 = vadd.f32 %v8100_v1, %v6535_v15  ;;  %v8177_v1 = vld [vmem:[%s8644_s15] sm:$0xff] }
 0x9de   :  { %v3851_v36 = vmul.f32 0.01, %v3748_v49  ;;  %vm3819_vm5 = vcmp.gt.f32.partialorder %v3748_v49, 0.0 }
 0x9df   :  { %v3888_v56 = vsel %vm3824_vm2, %v3792_v40, %v3856_v45  ;;  %v3840_v40 = vmul.f32 0.01, %v3780_v44  ;;  %v3745_v45 = vadd.f32 %v3744_v25, %v6512_v13  ;;  %vm3807_vm2 = vcmp.gt.f32.partialorder %v3739_v39, 0.0 }
 0x9e1   :  { %v8143_v0 = vpop.f32.mrf.mxu3  ;;  %v3872_v25 = vsel %vm3808_vm6, %v3780_v44, %v3840_v40  ;;  %vm3815_vm7 = vcmp.gt.f32.partialorder %v3745_v45, 0.0 }
 0x9e2   :  { %v3794_v37 = vpop.f32.mrf.mxu0  ;;  %v8145_v18 = vpop.f32.mrf.mxu2 }
 0x9e3   :  { %v3795_v46 = vadd.f32 %v3794_v37, %v6483_v31  ;;  %v3750_v12 = vpop.f32.mrf.mxu1 }
 0x9e4   :  { %v3751_v41 = vadd.f32 %v3750_v12, %v6533_v14  ;;  %v3880_v12 = vsel %vm3816_vm12, %v3786_v24, %v3848_v59  ;;  %v3733_v24 = vadd.f32 %v8034_v22, %v6543_v26 }
 0x9e5   :  { %vm3828_vm10 = vcmp.gt.f32.partialorder %v3795_v46, 0.0  ;;  %v3860_v3 = vmul.f32 0.01, %v3795_v46 }
 0x9e6   :  { %vm3823_vm9 = vcmp.gt.f32.partialorder %v3751_v41, 0.0  ;;  %v3831_v44 = vmul.f32 0.01, %v3733_v24 }
 0x9e7   :  { %v3892_v50 = vsel %vm3828_vm10, %v3795_v46, %v3860_v3  ;;  %v3884_v46 = vsel %vm3820_vm13, %v3789_v54, %v3852_v6  ;;  %v3742_v54 = vadd.f32 %v3741_v5, %v6524_v19  ;;  %v3847_v5 = vmul.f32 0.01, %v3745_v45 }
 0x9e8   :  { %3988 = vmatpush.msrb.mxu0 %v3892_v50  ;;  %v3855_v50 = vmul.f32 0.01, %v3751_v41  ;;  %vm3799_vm10 = vcmp.gt.f32.partialorder %v3733_v24, 0.0 }
 0x9e9   :  { %v8153_v34 = vpop.f32.mrf.mxu3  ;;  %v3843_v22 = vmul.f32 0.01, %v3742_v54  ;;  %vm3811_vm4 = vcmp.gt.f32.partialorder %v3742_v54, 0.0 }
 0x9ea   :  { %3989 = vmatpush.msrb.mxu0 %v3888_v56  ;;  %v8156_v4 = vpop.f32.mrf.mxu2  ;;  %v3832_v56 = vmul.f32 0.01, %v3774_v16  ;;  %v3887_v8 = vsel %vm3823_vm9, %v3751_v41, %v3855_v50  ;;  %v3863_v50 = vsel %vm3799_vm10, %v3733_v24, %v3831_v44 }
 0x9eb   :  { %v3753_v37 = vpop.f32.mrf.mxu1 }
 0x9ec   :  { %v3754_v3 = vadd.f32 %v3753_v37, %v6483_v31  ;;  %3990 = vmatpush.msrb.mxu0 %v3884_v46  ;;  %v3736_v37 = vadd.f32 %v8066_v53, %v6546_v27  ;;  %v3868_v46 = vsel %vm3804_vm1, %v3777_v61, %v3836_v51  ;;  %v3864_v40 = vsel %vm3800_vm14, %v3774_v16, %v3832_v56  ;;  %v4870_v61 = vld [vmem:[%s8645_s16 + $0x310] sm:$0xff] }
 0x9ed   :  { %v3839_v53 = vmul.f32 0.01, %v3739_v39  ;;  %v3875_v16 = vsel %vm3811_vm4, %v3742_v54, %v3843_v22  ;;  %v3707_v56 = vadd.f32 %v8153_v34, %v6503_v60  ;;  %v4871_v54 = vld [vmem:[%s8645_s16 + $0x300] sm:$0xff]  ;;  %v4872_v34 = vld [vmem:[%s8645_s16 + $0x318] sm:$0xff]  ;;  %v3698_v22 = vadd.f32 %v8134_v55, %v6535_v15  ;;  %v8220_v55 = vld [vmem:[%s8644_s15 + $0x8] sm:$0xff] }
 0x9ee   :  { %vm3827_vm11 = vcmp.gt.f32.partialorder %v3754_v3, 0.0  ;;  %v3859_v7 = vmul.f32 0.01, %v3754_v3  ;;  %3991 = vmatpush.msrb.mxu0 %v3880_v12  ;;  %v3835_v12 = vmul.f32 0.01, %v3736_v37  ;;  %vm3803_vm13 = vcmp.gt.f32.partialorder %v3736_v37, 0.0 }
 0x9ef   :  { %vm3818_vm9 = vcmp.gt.f32.partialorder %v3707_v56, 0.0  ;;  %vm3806_vm10 = vcmp.gt.f32.partialorder %v3698_v22, 0.0 }
 0x9f0   :  { %3992 = vmatpush.msrb.mxu0 %v3876_v10  ;;  %v3891_v6 = vsel %vm3827_vm11, %v3754_v3, %v3859_v7  ;;  %v3883_v3 = vsel %vm3819_vm5, %v3748_v49, %v3851_v36  ;;  %v3879_v7 = vsel %vm3815_vm7, %v3745_v45, %v3847_v5 }
 0x9f1   :  { %v3709_v59 = vpop.f32.mrf.mxu3  ;;  %3959 = vmatpush.msrb.mxu1 %v3891_v6  ;;  %v3871_v6 = vsel %vm3807_vm2, %v3739_v39, %v3839_v53  ;;  %v3654_v53 = vadd.f32 %v8128_v29, %v6546_v27 }
 0x9f2   :  { %3993 = vmatpush.msrb.mxu0 %v3872_v25  ;;  %v3668_v10 = vpop.f32.mrf.mxu2  ;;  %v3710_v41 = vadd.f32 %v3709_v59, %v6533_v14  ;;  %v3867_v25 = vsel %vm3803_vm13, %v3736_v37, %v3835_v12  ;;  %v3704_v59 = vadd.f32 %v8143_v0, %v6512_v13  ;;  %v3663_v37 = vadd.f32 %v8145_v18, %v6512_v13 }
 0x9f3   :  { %3960 = vmatpush.msrb.mxu1 %v3887_v8  ;;  %v3669_v49 = vadd.f32 %v3668_v10, %v6533_v14  ;;  %v3666_v14 = vadd.f32 %v8156_v4, %v6503_v60  ;;  %v3701_v60 = vadd.f32 %v8138_v43, %v6524_v19  ;;  %v3850_v4 = vmul.f32 0.01, %v3707_v56 }
 0x9f4   :  { %3994 = vmatpush.msrb.mxu0 %v3868_v46  ;;  %v3854_v39 = vmul.f32 0.01, %v3710_v41  ;;  %vm3822_vm6 = vcmp.gt.f32.partialorder %v3710_v41, 0.0  ;;  %v3660_v13 = vadd.f32 %v8140_v20, %v6524_v19  ;;  %v3657_v43 = vadd.f32 %v8136_v48, %v6535_v15  ;;  %v4875_v48 = vld [vmem:[%s8645_s16 + $0x2f0] sm:$0xff] }
 0x9f5   :  { %3961 = vmatpush.msrb.mxu1 %v3883_v3  ;;  %v3853_v10 = vmul.f32 0.01, %v3669_v49  ;;  %vm3821_vm11 = vcmp.gt.f32.partialorder %v3669_v49, 0.0  ;;  %v3849_v18 = vmul.f32 0.01, %v3666_v14  ;;  %vm3817_vm1 = vcmp.gt.f32.partialorder %v3666_v14, 0.0 }
 0x9f6   :  { %3995 = vmatpush.msrb.mxu0 %v3864_v40  ;;  %v3846_v3 = vmul.f32 0.01, %v3704_v59  ;;  %v3886_v44 = vsel %vm3822_vm6, %v3710_v41, %v3854_v39  ;;  %v3845_v19 = vmul.f32 0.01, %v3663_v37  ;;  %vm3814_vm5 = vcmp.gt.f32.partialorder %v3704_v59, 0.0 }
 0x9f7   :  { %3962 = vmatpush.msrb.mxu1 %v3879_v7  ;;  %4577 = vmatmul.msk.f32.vlgmr.msrb.gmra.mxu0 %vm158_vm0, %v8177_v1  ;;  %v3885_v20 = vsel %vm3821_vm11, %v3669_v49, %v3853_v10  ;;  %v3695_v40 = vadd.f32 %v8114_v57, %v6546_v27  ;;  %v3842_v12 = vmul.f32 0.01, %v3701_v60  ;;  %v3882_v15 = vsel %vm3818_vm9, %v3707_v56, %v3850_v4  ;;  %v4876_v49 = vld [vmem:[%s8645_s16 + $0x2e0] sm:$0xff]  ;;  %v4877_v56 = vld [vmem:[%s8645_s16 + $0x2d0] sm:$0xff] }
 0x9f8   :  { %4122 = vmatpush.msra.mxu0 %v4870_v61  ;;  %vm3813_vm14 = vcmp.gt.f32.partialorder %v3663_v37, 0.0  ;;  %v3841_v7 = vmul.f32 0.01, %v3660_v13  ;;  %v3881_v41 = vsel %vm3817_vm1, %v3666_v14, %v3849_v18  ;;  %vm3810_vm7 = vcmp.gt.f32.partialorder %v3701_v60, 0.0  ;;  %v4879_v14 = vld [vmem:[%s8645_s16 + $0x2c0] sm:$0xff]  ;;  %v4882_v10 = vld [vmem:[%s8645_s16 + $0xf0] sm:$0xff] }
 0x9f9   :  { %v3712_v45 = vpop.f32.mrf.mxu3  ;;  %3963 = vmatpush.msrb.mxu1 %v3875_v16  ;;  %v3692_v57 = vadd.f32 %v8082_v33, %v6543_v26  ;;  %v3838_v16 = vmul.f32 0.01, %v3698_v22  ;;  %v3878_v61 = vsel %vm3814_vm5, %v3704_v59, %v3846_v3  ;;  %vm3809_vm4 = vcmp.gt.f32.partialorder %v3660_v13, 0.0  ;;  %v4887_v4 = vld [vmem:[%s8645_s16 + $0x1d0] sm:$0xff]  ;;  %v4890_v18 = vld [vmem:[%s8645_s16 + $0x1c0] sm:$0xff] }
 0x9fa   :  { %v3713_v51 = vadd.f32 %v3712_v45, %v6483_v31  ;;  %v3671_v36 = vpop.f32.mrf.mxu2  ;;  %4123 = vmatpush.msra.mxu0 %v4871_v54  ;;  %v3651_v27 = vadd.f32 %v8096_v21, %v6543_v26  ;;  %v3837_v29 = vmul.f32 0.01, %v3657_v43  ;;  %v3877_v45 = vsel %vm3813_vm14, %v3663_v37, %v3845_v19  ;;  %v8251_v54 = vld [vmem:[%s8644_s15 + $0x10] sm:$0xff]  ;;  %v4896_v19 = vld [vmem:[%s8645_s16 + $0xa0] sm:$0xff] }
 0x9fb   :  { %v3672_v24 = vadd.f32 %v3671_v36, %v6483_v31  ;;  %3964 = vmatpush.msrb.mxu1 %v3871_v6  ;;  %v4873_v31 = vld [vmem:[%s8645_s16 + $0x308] sm:$0xff]  ;;  %v3874_v33 = vsel %vm3810_vm7, %v3701_v60, %v3842_v12  ;;  %vm3805_vm2 = vcmp.gt.f32.partialorder %v3657_v43, 0.0  ;;  %v3873_v36 = vsel %vm3809_vm4, %v3660_v13, %v3841_v7  ;;  %v4880_v37 = vld [vmem:[%s8645_s16 + $0x2b0] sm:$0xff]  ;;  %v4886_v60 = vld [vmem:[%s8645_s16 + $0x2a0] sm:$0xff] }
 0x9fc   :  { %4238 = vmatpush.msrb.mxu0 %v4872_v34  ;;  %vm3826_vm12 = vcmp.gt.f32.partialorder %v3713_v51, 0.0  ;;  %v3858_v5 = vmul.f32 0.01, %v3713_v51  ;;  %vm3802_vm13 = vcmp.gt.f32.partialorder %v3695_v40, 0.0  ;;  %v3830_v26 = vmul.f32 0.01, %v3692_v57 }
 0x9fd   :  { %vm3825_vm8 = vcmp.gt.f32.partialorder %v3672_v24, 0.0  ;;  %v3857_v0 = vmul.f32 0.01, %v3672_v24  ;;  %3965 = vmatpush.msrb.mxu1 %v3867_v25  ;;  %v3870_v21 = vsel %vm3806_vm10, %v3698_v22, %v3838_v16  ;;  %v3829_v6 = vmul.f32 0.01, %v3651_v27  ;;  %v4889_v13 = vld [vmem:[%s8645_s16 + $0x290] sm:$0xff] }
 0x9fe   :  { %4239 = vmatpush.msrb.mxu0 %v4873_v31  ;;  %v3890_v8 = vsel %vm3826_vm12, %v3713_v51, %v3858_v5  ;;  %v3833_v51 = vmul.f32 0.01, %v3654_v53  ;;  %vm3801_vm12 = vcmp.gt.f32.partialorder %v3654_v53, 0.0  ;;  %v3869_v25 = vsel %vm3805_vm2, %v3657_v43, %v3837_v29  ;;  %v4881_v5 = vld [vmem:[%s8645_s16 + $0x1f0] sm:$0xff]  ;;  %v4885_v31 = vld [vmem:[%s8645_s16 + $0xe0] sm:$0xff] }
 0x9ff   :  { %3930 = vmatpush.msrb.mxu3 %v3890_v8  ;;  %3966 = vmatpush.msrb.mxu1 %v3863_v50  ;;  %v3889_v46 = vsel %vm3825_vm8, %v3672_v24, %v3857_v0  ;;  %v3834_v50 = vmul.f32 0.01, %v3695_v40  ;;  %vm3798_vm8 = vcmp.gt.f32.partialorder %v3692_v57, 0.0  ;;  %vm3797_vm6 = vcmp.gt.f32.partialorder %v3651_v27, 0.0  ;;  %v8276_v0 = vld [vmem:[%s8644_s15 + $0x18] sm:$0xff]  ;;  %v4888_v8 = vld [vmem:[%s8645_s16 + $0xd0] sm:$0xff] }
 0xa00   :  { %3901 = vmatpush.msra.mxu2 %v3889_v46  ;;  %4573 = vmatmul.msk.f32.vlgmr.msrb.gmra.mxu1 %vm158_vm0, %v8177_v1  ;;  %v3865_v24 = vsel %vm3801_vm12, %v3654_v53, %v3833_v51  ;;  %v3862_v34 = vsel %vm3798_vm8, %v3692_v57, %v3830_v26  ;;  %v3861_v39 = vsel %vm3797_vm6, %v3651_v27, %v3829_v6  ;;  %v4891_v46 = vld [vmem:[%s8645_s16 + $0xc0] sm:$0xff]  ;;  %v4892_v22 = vld [vmem:[%s8645_s16 + $0x1b0] sm:$0xff]  ;;  %vm8807_vm10 = vcmask 588800  }
 0xa01   :  { %3931 = vmatpush.msrb.mxu3 %v3886_v44  ;;  %4578 = vmatmul.msk.f32.gmra.mxu0 %vm158_vm0, %v8220_v55  ;;  %v3866_v59 = vsel %vm3802_vm13, %v3695_v40, %v3834_v50  ;;  %v4893_v3 = vld [vmem:[%s8645_s16 + $0xb0] sm:$0xff]  ;;  %v4894_v44 = vld [vmem:[%s8645_s16 + $0x1a0] sm:$0xff]  ;;  %vm8808_vm2 = vmmov %vm8807_vm10 }
 0xa02   :  { %3902 = vmatpush.msra.mxu2 %v3885_v20  ;;  %4079 = vmatpush.msra.mxu1 %v4875_v48  ;;  %v4895_v43 = vld [vmem:[%s8645_s16 + $0x280] sm:$0xff]  ;;  %v4897_v20 = vld [vmem:[%s8645_s16 + $0x190] sm:$0xff]  ;;  %vm8809_vm13 = vmmov %vm8808_vm2 }
 0xa03   :  { %3932 = vmatpush.msrb.mxu3 %v3882_v15  ;;  %v4899_v40 = vld [vmem:[%s8645_s16 + $0x90] sm:$0xff]  ;;  %v4900_v12 = vld [vmem:[%s8645_s16 + $0x180] sm:$0xff]  ;;  %vm8810_vm12 = vmmov %vm8808_vm2 }
 0xa04   :  { %3903 = vmatpush.msra.mxu2 %v3881_v41  ;;  %4080 = vmatpush.msra.mxu1 %v4876_v49  ;;  %v4901_v15 = vld [vmem:[%s8645_s16 + $0x260] sm:$0xff]  ;;  %v4903_v53 = vld [vmem:[%s8645_s16 + $0x170] sm:$0xff]  ;;  %vm8811_vm8 = vmmov %vm8808_vm2 }
 0xa05   :  { %3933 = vmatpush.msrb.mxu3 %v3878_v61  ;;  %v4902_v48 = vld [vmem:[%s8645_s16 + $0x80] sm:$0xff]  ;;  %v4904_v7 = vld [vmem:[%s8645_s16 + $0x70] sm:$0xff]  ;;  %vm8812_vm6 = vmmov %vm8808_vm2 }
 0xa06   :  { %3904 = vmatpush.msra.mxu2 %v3877_v45  ;;  %4081 = vmatpush.msra.mxu1 %v4877_v56  ;;  %v4905_v41 = vld [vmem:[%s8645_s16 + $0x250] sm:$0xff]  ;;  %v4906_v57 = vld [vmem:[%s8645_s16 + $0x160] sm:$0xff] }
 0xa07   :  { %3934 = vmatpush.msrb.mxu3 %v3874_v33  ;;  %v4907_v16 = vld [vmem:[%s8645_s16 + $0x60] sm:$0xff]  ;;  %v4909_v49 = vld [vmem:[%s8645_s16 + $0x150] sm:$0xff] }
 0xa08   :  { %3905 = vmatpush.msra.mxu2 %v3873_v36  ;;  %4574 = vmatmul.msk.f32.gmra.mxu1 %vm158_vm0, %v8220_v55  ;;  %v4908_v61 = vld [vmem:[%s8645_s16 + $0x240] sm:$0xff]  ;;  %v4910_v27 = vld [vmem:[%s8645_s16 + $0x50] sm:$0xff] }
 0xa09   :  { %3935 = vmatpush.msrb.mxu3 %v3870_v21  ;;  %4579 = vmatmul.msk.f32.gmra.mxu0 %vm158_vm0, %v8251_v54  ;;  %v4911_v29 = vld [vmem:[%s8645_s16 + $0x230] sm:$0xff]  ;;  %v4912_v45 = vld [vmem:[%s8645_s16 + $0x140] sm:$0xff] }
 0xa0a   :  { %3906 = vmatpush.msra.mxu2 %v3869_v25  ;;  %4082 = vmatpush.msra.mxu1 %v4879_v14  ;;  %v4913_v50 = vld [vmem:[%s8645_s16 + $0x40] sm:$0xff]  ;;  %v4914_v33 = vld [vmem:[%s8645_s16 + $0x130] sm:$0xff]  ;;  %v4924_v14 = vld [vmem:[%s8645_s16 + $0x2f8] sm:$0xff] }
 0xa0b   :  { %3936 = vmatpush.msrb.mxu3 %v3866_v59  ;;  %v4915_v56 = vld [vmem:[%s8645_s16 + $0x30] sm:$0xff]  ;;  %v4916_v51 = vld [vmem:[%s8645_s16 + $0x220] sm:$0xff] }
 0xa0c   :  { %3907 = vmatpush.msra.mxu2 %v3865_v24  ;;  %4083 = vmatpush.msra.mxu1 %v4880_v37  ;;  %v4917_v36 = vld [vmem:[%s8645_s16 + $0x120] sm:$0xff]  ;;  %v4919_v21 = vld [vmem:[%s8645_s16 + $0x210] sm:$0xff]  ;;  %v4927_v37 = vld [vmem:[%s8645_s16 + $0xf8] sm:$0xff] }
 0xa0d   :  { %3937 = vmatpush.msrb.mxu3 %v3862_v34  ;;  %v4918_v26 = vld [vmem:[%s8645_s16 + $0x20] sm:$0xff]  ;;  %v4920_v6 = vld [vmem:[%s8645_s16 + $0x110] sm:$0xff]  ;;  %v4926_v34 = vld [vmem:[%s8645_s16 + $0x1f8] sm:$0xff] }
 0xa0e   :  { %3908 = vmatpush.msra.mxu2 %v3861_v39  ;;  %4569 = vmatmul.msk.f32.vlgmr.msrb.gmra.mxu3 %vm158_vm0, %v8177_v1  ;;  %v4921_v25 = vld [vmem:[%s8645_s16 + $0x10] sm:$0xff]  ;;  %v4923_v59 = vld [vmem:[%s8645_s16 + $0x100] sm:$0xff]  ;;  %v4928_v39 = vld [vmem:[%s8645_s16 + $0x2e8] sm:$0xff] }
 0xa0f   :  { %4565 = vmatmul.msk.f32.vlgmr.msra.gmra.mxu2 %vm158_vm0, %v8177_v1  ;;  %4050 = vmatpush.msra.mxu3 %v4881_v5  ;;  %v4884_v1 = vld [vmem:[%s8645_s16 + $0x1e0] sm:$0xff]  ;;  %v4929_v5 = vld [vmem:[%s8645_s16 + $0x1e8] sm:$0xff] }
 0xa10   :  { %4575 = vmatmul.msk.f32.gmra.mxu1 %vm158_vm0, %v8251_v54  ;;  %4021 = vmatpush.msrb.mxu2 %v4882_v10  ;;  %v4925_v24 = vld [vmem:[%s8645_s16] sm:$0xff]  ;;  %v4930_v10 = vld [vmem:[%s8645_s16 + $0xe8] sm:$0xff] }
 0xa11   :  { %4580 = vmatmul.msk.f32.gmra.mxu0 %vm158_vm0, %v8276_v0  ;;  %4051 = vmatpush.msra.mxu3 %v4884_v1  ;;  %v4932_v1 = vld [vmem:[%s8645_s16 + $0x1d8] sm:$0xff] }
 0xa12   :  { %4022 = vmatpush.msrb.mxu2 %v4885_v31  ;;  %4084 = vmatpush.msra.mxu1 %v4886_v60  ;;  %v4933_v31 = vld [vmem:[%s8645_s16 + $0xd8] sm:$0xff]  ;;  %v4934_v60 = vld [vmem:[%s8645_s16 + $0x2c8] sm:$0xff] }
 0xa13   :  { %4052 = vmatpush.msra.mxu3 %v4887_v4  ;;  %v4935_v4 = vld [vmem:[%s8645_s16 + $0x1c8] sm:$0xff] }
 0xa14   :  { %4023 = vmatpush.msrb.mxu2 %v4888_v8  ;;  %4085 = vmatpush.msra.mxu1 %v4889_v13  ;;  %v4936_v8 = vld [vmem:[%s8645_s16 + $0xc8] sm:$0xff]  ;;  %v4937_v13 = vld [vmem:[%s8645_s16 + $0x2b8] sm:$0xff] }
 0xa15   :  { %4053 = vmatpush.msra.mxu3 %v4890_v18  ;;  %v4938_v18 = vld [vmem:[%s8645_s16 + $0x1b8] sm:$0xff] }
 0xa16   :  { %4570 = vmatmul.msk.f32.gmra.mxu3 %vm158_vm0, %v8220_v55  ;;  %4024 = vmatpush.msrb.mxu2 %v4891_v46  ;;  %v4939_v46 = vld [vmem:[%s8645_s16 + $0xb8] sm:$0xff] }
 0xa17   :  { %4566 = vmatmul.msk.f32.gmra.mxu2 %vm158_vm0, %v8220_v55  ;;  %4054 = vmatpush.msra.mxu3 %v4892_v22  ;;  %v4898_v55 = vld [vmem:[%s8645_s16 + $0x270] sm:$0xff]  ;;  %v4940_v22 = vld [vmem:[%s8645_s16 + $0x2a8] sm:$0xff] }
 0xa18   :  { %4576 = vmatmul.msk.f32.gmra.mxu1 %vm158_vm0, %v8276_v0  ;;  %4025 = vmatpush.msrb.mxu2 %v4893_v3  ;;  %v4941_v3 = vld [vmem:[%s8645_s16 + $0x1a8] sm:$0xff] }
 0xa19   :  { %4055 = vmatpush.msra.mxu3 %v4894_v44  ;;  %4086 = vmatpush.msra.mxu1 %v4895_v43  ;;  %v4942_v44 = vld [vmem:[%s8645_s16 + $0xa8] sm:$0xff]  ;;  %v4943_v43 = vld [vmem:[%s8645_s16 + $0x298] sm:$0xff] }
 0xa1a   :  { %4026 = vmatpush.msrb.mxu2 %v4896_v19  ;;  %v4944_v19 = vld [vmem:[%s8645_s16 + $0x198] sm:$0xff] }
 0xa1b   :  { %4056 = vmatpush.msra.mxu3 %v4897_v20  ;;  %4087 = vmatpush.msra.mxu1 %v4898_v55  ;;  %v4945_v20 = vld [vmem:[%s8645_s16 + $0x98] sm:$0xff]  ;;  %v4946_v55 = vld [vmem:[%s8645_s16 + $0x288] sm:$0xff] }
 0xa1c   :  { %4027 = vmatpush.msrb.mxu2 %v4899_v40  ;;  %v4947_v40 = vld [vmem:[%s8645_s16 + $0x188] sm:$0xff] }
 0xa1d   :  { %4057 = vmatpush.msra.mxu3 %v4900_v12  ;;  %4088 = vmatpush.msra.mxu1 %v4901_v15  ;;  %v4948_v12 = vld [vmem:[%s8645_s16 + $0x88] sm:$0xff]  ;;  %v4949_v15 = vld [vmem:[%s8645_s16 + $0x278] sm:$0xff] }
 0xa1e   :  { %4571 = vmatmul.msk.f32.gmra.mxu3 %vm158_vm0, %v8251_v54  ;;  %4028 = vmatpush.msrb.mxu2 %v4902_v48  ;;  %v4950_v48 = vld [vmem:[%s8645_s16 + $0x178] sm:$0xff] }
 0xa1f   :  { %4567 = vmatmul.msk.f32.gmra.mxu2 %vm158_vm0, %v8251_v54  ;;  %4058 = vmatpush.msra.mxu3 %v4903_v53  ;;  %v4922_v54 = vld [vmem:[%s8645_s16 + $0x200] sm:$0xff]  ;;  %v4951_v53 = vld [vmem:[%s8645_s16 + $0x78] sm:$0xff] }
 0xa20   :  { %4029 = vmatpush.msrb.mxu2 %v4904_v7  ;;  %4089 = vmatpush.msra.mxu1 %v4905_v41  ;;  %v4952_v7 = vld [vmem:[%s8645_s16 + $0x268] sm:$0xff] }
 0xa21   :  { %4059 = vmatpush.msra.mxu3 %v4906_v57  ;;  %v4953_v41 = vld [vmem:[%s8645_s16 + $0x168] sm:$0xff] }
 0xa22   :  { %4030 = vmatpush.msrb.mxu2 %v4907_v16  ;;  %4090 = vmatpush.msra.mxu1 %v4908_v61  ;;  %v4954_v57 = vld [vmem:[%s8645_s16 + $0x68] sm:$0xff]  ;;  %v4955_v16 = vld [vmem:[%s8645_s16 + $0x258] sm:$0xff] }
 0xa23   :  { %4060 = vmatpush.msra.mxu3 %v4909_v49  ;;  %v4956_v61 = vld [vmem:[%s8645_s16 + $0x158] sm:$0xff] }
 0xa24   :  { %4031 = vmatpush.msrb.mxu2 %v4910_v27  ;;  %4091 = vmatpush.msra.mxu1 %v4911_v29  ;;  %v4957_v49 = vld [vmem:[%s8645_s16 + $0x58] sm:$0xff]  ;;  %v4958_v27 = vld [vmem:[%s8645_s16 + $0x248] sm:$0xff] }
 0xa25   :  { %4061 = vmatpush.msra.mxu3 %v4912_v45  ;;  %v4959_v29 = vld [vmem:[%s8645_s16 + $0x148] sm:$0xff] }
 0xa26   :  { %4572 = vmatmul.msk.f32.gmra.mxu3 %vm158_vm0, %v8276_v0  ;;  %4032 = vmatpush.msrb.mxu2 %v4913_v50  ;;  %v4960_v45 = vld [vmem:[%s8645_s16 + $0x48] sm:$0xff]  ;;  %v4961_v50 = vld [vmem:[%s8645_s16 + $0x238] sm:$0xff] }
 0xa27   :  { %4568 = vmatmul.msk.f32.gmra.mxu2 %vm158_vm0, %v8276_v0  ;;  %4062 = vmatpush.msra.mxu3 %v4914_v33  ;;  %v4931_v0 = vld [vmem:[%s8645_s16 + $0x2d8] sm:$0xff]  ;;  %vm8799_vm0 = vcmask 130048  }
 0xa28   :  { %4033 = vmatpush.msrb.mxu2 %v4915_v56  ;;  %4092 = vmatpush.msra.mxu1 %v4916_v51  ;;  %v4962_v33 = vld [vmem:[%s8645_s16 + $0x138] sm:$0xff]  ;;  %v4964_v51 = vld [vmem:[%s8645_s16 + $0x228] sm:$0xff]  ;;  %vm8800_vm11 = vmmov %vm8799_vm0 }
 0xa29   :  { %4063 = vmatpush.msra.mxu3 %v4917_v36  ;;  %v4963_v56 = vld [vmem:[%s8645_s16 + $0x38] sm:$0xff]  ;;  %v4965_v36 = vld [vmem:[%s8645_s16 + $0x128] sm:$0xff]  ;;  %vm8801_vm9 = vmmov %vm8799_vm0 }
 0xa2a   :  { %4034 = vmatpush.msrb.mxu2 %v4918_v26  ;;  %4093 = vmatpush.msra.mxu1 %v4919_v21  ;;  %v4966_v26 = vld [vmem:[%s8645_s16 + $0x28] sm:$0xff]  ;;  %v4967_v21 = vld [vmem:[%s8645_s16 + $0x218] sm:$0xff]  ;;  %vm8802_vm1 = vmmov %vm8799_vm0 }
 0xa2b   :  { %4064 = vmatpush.msra.mxu3 %v4920_v6  ;;  %v4968_v6 = vld [vmem:[%s8645_s16 + $0x118] sm:$0xff]  ;;  %vm8803_vm5 = vmmov %vm8799_vm0 }
 0xa2c   :  { %4035 = vmatpush.msrb.mxu2 %v4921_v25  ;;  %4094 = vmatpush.msra.mxu1 %v4922_v54  ;;  %v4969_v25 = vld [vmem:[%s8645_s16 + $0x18] sm:$0xff]  ;;  %v4970_v54 = vld [vmem:[%s8645_s16 + $0x208] sm:$0xff]  ;;  %vm8804_vm14 = vmmov %vm8799_vm0 }
 0xa2d   :  { %4065 = vmatpush.msra.mxu3 %v4923_v59  ;;  %v4971_v59 = vld [vmem:[%s8645_s16 + $0x108] sm:$0xff]  ;;  %vm8805_vm7 = vmmov %vm8799_vm0 }
 0xa2e   :  { %4195 = vmatpush.msrb.mxu1 %v4924_v14  ;;  %4036 = vmatpush.msrb.mxu2 %v4925_v24  ;;  %v4972_v14 = vld [vmem:[%s8645_s16 + $0x8] sm:$0xff]  ;;  %vm8806_vm4 = vmmov %vm8799_vm0 }
 0xa2f   :  { %4166 = vmatpush.msrb.mxu3 %v4926_v34 }
 0xa30   :  { %4137 = vmatpush.msra.mxu2 %v4927_v37  ;;  %4196 = vmatpush.msrb.mxu1 %v4928_v39 }
 0xa31   :  { %4167 = vmatpush.msrb.mxu3 %v4929_v5 }
 0xa32   :  { %4138 = vmatpush.msra.mxu2 %v4930_v10  ;;  %4197 = vmatpush.msrb.mxu1 %v4931_v0 }
 0xa33   :  { %4168 = vmatpush.msrb.mxu3 %v4932_v1 }
 0xa34   :  { %4139 = vmatpush.msra.mxu2 %v4933_v31  ;;  %4198 = vmatpush.msrb.mxu1 %v4934_v60 }
 0xa35   :  { %4169 = vmatpush.msrb.mxu3 %v4935_v4 }
 0xa36   :  { %4140 = vmatpush.msra.mxu2 %v4936_v8  ;;  %4199 = vmatpush.msrb.mxu1 %v4937_v13 }
 0xa37   :  { %4170 = vmatpush.msrb.mxu3 %v4938_v18 }
 0xa38   :  { %4141 = vmatpush.msra.mxu2 %v4939_v46  ;;  %4200 = vmatpush.msrb.mxu1 %v4940_v22 }
 0xa39   :  { %4171 = vmatpush.msrb.mxu3 %v4941_v3 }
 0xa3a   :  { %4142 = vmatpush.msra.mxu2 %v4942_v44  ;;  %4201 = vmatpush.msrb.mxu1 %v4943_v43 }
 0xa3b   :  { %4172 = vmatpush.msrb.mxu3 %v4944_v19 }
 0xa3c   :  { %4143 = vmatpush.msra.mxu2 %v4945_v20  ;;  %4202 = vmatpush.msrb.mxu1 %v4946_v55 }
 0xa3d   :  { %4173 = vmatpush.msrb.mxu3 %v4947_v40 }
 0xa3e   :  { %4144 = vmatpush.msra.mxu2 %v4948_v12  ;;  %4203 = vmatpush.msrb.mxu1 %v4949_v15 }
 0xa3f   :  { %4174 = vmatpush.msrb.mxu3 %v4950_v48 }
 0xa40   :  { %4145 = vmatpush.msra.mxu2 %v4951_v53  ;;  %4204 = vmatpush.msrb.mxu1 %v4952_v7 }
 0xa41   :  { %4175 = vmatpush.msrb.mxu3 %v4953_v41 }
 0xa42   :  { %4146 = vmatpush.msra.mxu2 %v4954_v57  ;;  %4205 = vmatpush.msrb.mxu1 %v4955_v16 }
 0xa43   :  { %4176 = vmatpush.msrb.mxu3 %v4956_v61 }
 0xa44   :  { %4147 = vmatpush.msra.mxu2 %v4957_v49  ;;  %4206 = vmatpush.msrb.mxu1 %v4958_v27 }
 0xa45   :  { %4177 = vmatpush.msrb.mxu3 %v4959_v29 }
 0xa46   :  { %4148 = vmatpush.msra.mxu2 %v4960_v45  ;;  %4207 = vmatpush.msrb.mxu1 %v4961_v50 }
 0xa47   :  { %4178 = vmatpush.msrb.mxu3 %v4962_v33 }
 0xa48   :  { %4149 = vmatpush.msra.mxu2 %v4963_v56  ;;  %4208 = vmatpush.msrb.mxu1 %v4964_v51 }
 0xa49   :  { %4179 = vmatpush.msrb.mxu3 %v4965_v36 }
 0xa4a   :  { %4150 = vmatpush.msra.mxu2 %v4966_v26  ;;  %4209 = vmatpush.msrb.mxu1 %v4967_v21 }
 0xa4b   :  { %4180 = vmatpush.msrb.mxu3 %v4968_v6 }
 0xa4c   :  { %4151 = vmatpush.msra.mxu2 %v4969_v25  ;;  %4210 = vmatpush.msrb.mxu1 %v4970_v54 }
 0xa4d   :  { %4181 = vmatpush.msrb.mxu3 %v4971_v59 }
 0xa4e   :  { %4152 = vmatpush.msra.mxu2 %v4972_v14 }
 0xa74   :  { %v3997_v24 = vpop.f32.mrf.mxu0 }
 0xa75   :  { %4581 = vmatmul.msk.f32.vlgmr.msra.gmra.mxu0 %vm8799_vm0, %v3997_v24  ;;  %vm8814_vm0 = vmmov %vm8808_vm2 }
 0xa7d   :  { %v3968_v34 = vpop.f32.mrf.mxu1 }
 0xa7e   :  { %4095 = vmatmul.f32.vlgmr.msra.gmra.mxu1 %v3968_v34  ;;  %v4000_v37 = vpop.f32.mrf.mxu0 }
 0xa7f   :  { %4582 = vmatmul.msk.f32.gmra.mxu0 %vm8800_vm11, %v4000_v37  ;;  %vm8815_vm11 = vmmov %vm8814_vm0 }
 0xa85   :  { %v3971_v39 = vpop.f32.mrf.mxu1 }
 0xa86   :  { %4098 = vmatmul.f32.gmra.mxu1 %v3971_v39  ;;  %v4003_v5 = vpop.f32.mrf.mxu0 }
 0xa87   :  { %4583 = vmatmul.msk.f32.gmra.mxu0 %vm8801_vm9, %v4003_v5  ;;  %vm2576_vm9 = vcmask 7168  }
 0xa8d   :  { %v3974_v10 = vpop.f32.mrf.mxu1 }
 0xa8e   :  { %4101 = vmatmul.f32.gmra.mxu1 %v3974_v10  ;;  %v4006_v0 = vpop.f32.mrf.mxu0 }
 0xa8f   :  { %4584 = vmatmul.msk.f32.gmra.mxu0 %vm8802_vm1, %v4006_v0  ;;  %vm8816_vm1 = vcmask 1040384  }
 0xa91   :  { %v3939_v1 = vpop.f32.mrf.mxu3 }
 0xa92   :  { %v3910_v31 = vpop.f32.mrf.mxu2  ;;  %4066 = vmatmul.f32.vlgmr.msra.gmra.mxu3 %v3939_v1 }
 0xa93   :  { %4037 = vmatmul.f32.vlgmr.msrb.gmra.mxu2 %v3910_v31 }
 0xa95   :  { %v3977_v60 = vpop.f32.mrf.mxu1 }
 0xa96   :  { %4104 = vmatmul.f32.gmra.mxu1 %v3977_v60 }
 0xa97   :  { %4585 = vmatmul.msk.f32.vlgmr.msrb.gmra.mxu0 %vm8803_vm5, %v3997_v24 }
 0xa99   :  { %v3942_v4 = vpop.f32.mrf.mxu3 }
 0xa9a   :  { %v3913_v8 = vpop.f32.mrf.mxu2  ;;  %4069 = vmatmul.f32.gmra.mxu3 %v3942_v4 }
 0xa9b   :  { %4040 = vmatmul.f32.gmra.mxu2 %v3913_v8 }
 0xa9e   :  { %4211 = vmatmul.f32.vlgmr.msrb.gmra.mxu1 %v3968_v34 }
 0xa9f   :  { %4586 = vmatmul.msk.f32.gmra.mxu0 %vm8804_vm14, %v4000_v37 }
 0xaa1   :  { %v3945_v13 = vpop.f32.mrf.mxu3 }
 0xaa2   :  { %v3916_v18 = vpop.f32.mrf.mxu2  ;;  %4072 = vmatmul.f32.gmra.mxu3 %v3945_v13 }
 0xaa3   :  { %4043 = vmatmul.f32.gmra.mxu2 %v3916_v18 }
 0xaa6   :  { %4214 = vmatmul.f32.gmra.mxu1 %v3971_v39 }
 0xaa7   :  { %4587 = vmatmul.msk.f32.gmra.mxu0 %vm8805_vm7, %v4003_v5 }
 0xaa9   :  { %v3948_v46 = vpop.f32.mrf.mxu3 }
 0xaaa   :  { %v3919_v22 = vpop.f32.mrf.mxu2  ;;  %4075 = vmatmul.f32.gmra.mxu3 %v3948_v46 }
 0xaab   :  { %4046 = vmatmul.f32.gmra.mxu2 %v3919_v22 }
 0xaae   :  { %4217 = vmatmul.f32.gmra.mxu1 %v3974_v10 }
 0xaaf   :  { %4588 = vmatmul.msk.f32.gmra.mxu0 %vm8806_vm4, %v4006_v0 }
 0xab2   :  { %4182 = vmatmul.f32.vlgmr.msrb.gmra.mxu3 %v3939_v1 }
 0xab3   :  { %4153 = vmatmul.f32.vlgmr.msra.gmra.mxu2 %v3910_v31 }
 0xab6   :  { %4220 = vmatmul.f32.gmra.mxu1 %v3977_v60 }
 0xaba   :  { %4185 = vmatmul.f32.gmra.mxu3 %v3942_v4 }
 0xabb   :  { %4156 = vmatmul.f32.gmra.mxu2 %v3913_v8 }
 0xac2   :  { %4188 = vmatmul.f32.gmra.mxu3 %v3945_v13 }
 0xac3   :  { %4159 = vmatmul.f32.gmra.mxu2 %v3916_v18 }
 0xaca   :  { %4191 = vmatmul.f32.gmra.mxu3 %v3948_v46 }
 0xacb   :  { %4162 = vmatmul.f32.gmra.mxu2 %v3919_v22 }
 0xaf2   :  { %v4125_v44 = vpop.f32.mrf.mxu0 }
 0xafb   :  { %v4096_v3 = vpop.f32.mrf.mxu1 }
 0xafc   :  { %v4128_v55 = vpop.f32.mrf.mxu0 }
 0xb03   :  { %v4099_v43 = vpop.f32.mrf.mxu1 }
 0xb04   :  { %v4131_v48 = vpop.f32.mrf.mxu0 }
 0xb0b   :  { %v4102_v15 = vpop.f32.mrf.mxu1 }
 0xb0c   :  { %v8569_v57 = vpop.f32.mrf.mxu0 }
 0xb13   :  { %v4105_v41 = vpop.f32.mrf.mxu1 }
 0xb14   :  { %v4241_v45 = vpop.f32.mrf.mxu0 }
 0xb15   :  { %v4067_v19 = vpop.f32.mrf.mxu3 }
 0xb16   :  { %v4038_v20 = vpop.f32.mrf.mxu2 }
 0xb17   :  { %v4068_v49 = vadd.f32 %v4067_v19, %v4038_v20 }
 0xb19   :  { %v4097_v29 = vadd.f32 %v4096_v3, %v4068_v49 }
 0xb1b   :  { %v4212_v27 = vpop.f32.mrf.mxu1  ;;  %v4126_v51 = vadd.f32 %v4125_v44, %v4097_v29 }
 0xb1c   :  { %v4244_v14 = vpop.f32.mrf.mxu0 }
 0xb1d   :  { %v4070_v40 = vpop.f32.mrf.mxu3  ;;  %4721 = vtanh.f32 %v4126_v51 }
 0xb1e   :  { %v4041_v12 = vpop.f32.mrf.mxu2 }
 0xb1f   :  { %v4071_v36 = vadd.f32 %v4070_v40, %v4041_v12 }
 0xb21   :  { %v4100_v6 = vadd.f32 %v4099_v43, %v4071_v36 }
 0xb23   :  { %v4215_v25 = vpop.f32.mrf.mxu1  ;;  %v4129_v34 = vadd.f32 %v4128_v55, %v4100_v6  ;;  %v4722_v5 = vpop.eup %4721 }
 0xb24   :  { %v4261_v8 = vmul.f32 %v8021_v38, %v4722_v5  ;;  %v4285_v13 = vmul.f32 %v8027_v11, %v4722_v5 }
 0xb25   :  { %v4073_v53 = vpop.f32.mrf.mxu3 }
 0xb26   :  { %v4044_v7 = vpop.f32.mrf.mxu2 }
 0xb27   :  { %v4074_v37 = vadd.f32 %v4073_v53, %v4044_v7 }
 0xb29   :  { %v4103_v1 = vadd.f32 %v4102_v15, %v4074_v37 }
 0xb2b   :  { %v4218_v46 = vpop.f32.mrf.mxu1  ;;  %v4132_v20 = vadd.f32 %v4131_v48, %v4103_v1  ;;  %v2567_v1 = vpop.xlane.xlu1 %2566 }
 0xb2d   :  { %v4076_v16 = vpop.f32.mrf.mxu3 }
 0xb2e   :  { %v4047_v61 = vpop.f32.mrf.mxu2 }
 0xb2f   :  { %v4077_v55 = vadd.f32 %v4076_v16, %v4047_v61 }
 0xb31   :  { %v4106_v11 = vadd.f32 %v4105_v41, %v4077_v55 }
 0xb33   :  { %v4135_v41 = vadd.f32 %v8569_v57, %v4106_v11 }
 0xb35   :  { %v4183_v50 = vpop.f32.mrf.mxu3 }
 0xb36   :  { %v4154_v33 = vpop.f32.mrf.mxu2 }
 0xb37   :  { %v4184_v56 = vadd.f32 %v4183_v50, %v4154_v33  ;;  %v4221_v33 = vpop.f32.mrf.mxu1 }
 0xb39   :  { %v4213_v26 = vadd.f32 %v4212_v27, %v4184_v56 }
 0xb3b   :  { %v4242_v21 = vadd.f32 %v4241_v45, %v4213_v26 }
 0xb3d   :  { %4723 = vtanh.f32 %v4242_v21  ;;  %v4186_v54 = vpop.f32.mrf.mxu3 }
 0xb3e   :  { %v4157_v59 = vpop.f32.mrf.mxu2  ;;  %4725 = vtanh.f32 %v4129_v34 }
 0xb3f   :  { %v4187_v24 = vadd.f32 %v4186_v54, %v4157_v59 }
 0xb41   :  { %v4216_v39 = vadd.f32 %v4215_v25, %v4187_v24  ;;  %v8813_v24 = vld [vmem:[#allocation8_spill] sm:$0xff] }
 0xb43   :  { %v4724_v10 = vpop.eup %4723  ;;  %v4245_v0 = vadd.f32 %v4244_v14, %v4216_v39 }
 0xb44   :  { %v4262_v31 = vmul.f32 %v8009_v2, %v4724_v10  ;;  %v4286_v60 = vmul.f32 %v8015_v47, %v4724_v10  ;;  %v4247_v2 = vpop.f32.mrf.mxu0  ;;  %v4726_v47 = vpop.eup %4725 }
 0xb45   :  { %4727 = vtanh.f32 %v4245_v0  ;;  %v4189_v4 = vpop.f32.mrf.mxu3  ;;  %v4287_v7 = vmul.f32 %v8053_v9, %v4726_v47  ;;  %v4263_v49 = vmul.f32 %v8059_v30, %v4726_v47  ;;  %v2530_v10 = vpop.xlane.xlu0 %2529 }
 0xb46   :  { %v4160_v18 = vpop.f32.mrf.mxu2  ;;  %v4269_v22 = vsel %vm8807_vm10, %v4262_v31, 0.0  ;;  %v4293_v3 = vsel %vm8808_vm2, %v4286_v60, 0.0  ;;  %4729 = vtanh.f32 %v4132_v20  ;;  %v2538_v60 = vpop.xlane.xlu1 %2537 }
 0xb47   :  { %v4190_v44 = vadd.f32 %v4189_v4, %v4160_v18  ;;  %v4270_v43 = vadd.f32 %v4269_v22, %v4261_v8  ;;  %v4294_v19 = vadd.f32 %v4293_v3, %v4285_v13 }
 0xb49   :  { %v4219_v40 = vadd.f32 %v4218_v46, %v4190_v44  ;;  %4271 = vadd.xlane.f32.xlu1 %v4270_v43  ;;  %4295 = vadd.xlane.f32.xlu2 %v4294_v19 }
 0xb4b   :  { %v4728_v12 = vpop.eup %4727  ;;  %v4248_v38 = vadd.f32 %v4247_v2, %v4219_v40 }
 0xb4c   :  { %v4288_v15 = vmul.f32 %v8041_v28, %v4728_v12  ;;  %v4264_v53 = vmul.f32 %v8047_v32, %v4728_v12  ;;  %v4730_v32 = vpop.eup %4729  ;;  %v4250_v56 = vpop.f32.mrf.mxu0 }
 0xb4d   :  { %4731 = vtanh.f32 %v4248_v38  ;;  %v4192_v16 = vpop.f32.mrf.mxu3  ;;  %v4289_v26 = vmul.f32 %v8093_v63, %v4730_v32  ;;  %v4265_v21 = vmul.f32 %v8087_v23, %v4730_v32  ;;  %v2571_v0 = vpop.xlane.xlu0 %2570 }
 0xb4e   :  { %v4163_v48 = vpop.f32.mrf.mxu2  ;;  %v4297_v61 = vsel %vm8809_vm13, %v4288_v15, 0.0  ;;  %v4273_v27 = vsel %vm8810_vm12, %v4264_v53, 0.0  ;;  %4733 = vtanh.f32 %v4135_v41  ;;  %v2579_v19 = vsel %vm2576_vm9, %v2538_v60, %v2571_v0 }
 0xb4f   :  { %v4193_v29 = vadd.f32 %v4192_v16, %v4163_v48  ;;  %v4298_v45 = vadd.f32 %v4297_v61, %v4287_v7  ;;  %v4274_v50 = vadd.f32 %v4273_v27, %v4263_v49  ;;  %v2584_v38 = vsel %vm1558_vm15, %v2579_v19, 0.0 }
 0xb51   :  { %v4222_v28 = vadd.f32 %v4221_v33, %v4193_v29  ;;  %4299 = vadd.xlane.f32.xlu1 %v4298_v45  ;;  %4275 = vadd.xlane.f32.xlu0 %v4274_v50 }
 0xb53   :  { %v4732_v9 = vpop.eup %4731  ;;  %v4251_v51 = vadd.f32 %v4250_v56, %v4222_v28 }
 0xb54   :  { %v4290_v30 = vmul.f32 %v8079_v42, %v4732_v9  ;;  %v4266_v36 = vmul.f32 %v8073_v35, %v4732_v9  ;;  %v4734_v59 = vpop.eup %4733 }
 0xb55   :  { %4735 = vtanh.f32 %v4251_v51  ;;  %v4291_v63 = vmul.f32 %v8125_v52, %v4734_v59  ;;  %v4267_v23 = vmul.f32 %v8813_v24, %v4734_v59  ;;  %v2542_v31 = vpop.xlane.xlu0 %2541  ;;  %v3406_v52 = vpop.xlane.xlu1 %3405 }
 0xb56   :  { %v4301_v57 = vsel %vm8811_vm8, %v4290_v30, 0.0  ;;  %v4277_v6 = vsel %vm8812_vm6, %v4266_v36, 0.0 }
 0xb57   :  { %v4302_v25 = vadd.f32 %v4301_v57, %v4289_v26  ;;  %v4278_v54 = vadd.f32 %v4277_v6, %v4265_v21 }
 0xb59   :  { %4303 = vadd.xlane.f32.xlu1 %v4302_v25  ;;  %4279 = vadd.xlane.f32.xlu2 %v4278_v54 }
 0xb5a   :  { %3441 = vadd.xlane.f32.xlu0 %v8132_v58  ;;  %v2563_v58 = vpop.xlane.xlu2 %2562 }
 0xb5b   :  { %v4736_v14 = vpop.eup %4735  ;;  %v2577_v43 = vsel %vm2576_vm9, %v2530_v10, %v2563_v58 }
 0xb5c   :  { %v4292_v42 = vmul.f32 %v8111_v62, %v4736_v14  ;;  %v4268_v35 = vmul.f32 %v8105_v17, %v4736_v14  ;;  %v2581_v12 = vsel %vm1558_vm15, %v2577_v43, 0.0 }
 0xb5d   :  { %v3430_v17 = vpop.xlane.xlu0 %3429  ;;  %v3418_v18 = vpop.xlane.xlu1 %3417 }
 0xb5e   :  { %v4305_v34 = vsel %vm8814_vm0, %v4292_v42, 0.0  ;;  %v4281_v37 = vsel %vm8815_vm11, %v4268_v35, 0.0  ;;  %v3443_v49 = vsel %vm2576_vm9, %v3406_v52, %v3430_v17 }
 0xb5f   :  { %v4306_v39 = vadd.f32 %v4305_v34, %v4291_v63  ;;  %v4282_v5 = vadd.f32 %v4281_v37, %v4267_v23  ;;  %v3447_v27 = vsel %vm1558_vm15, %v3443_v49, 0.0 }
 0xb61   :  { %4307 = vadd.xlane.f32.xlu1 %v4306_v39  ;;  %4283 = vadd.xlane.f32.xlu2 %v4282_v5 }
 0xb62   :  { %v2534_v62 = vpop.xlane.xlu2 %2533 }
 0xb63   :  { %v2578_v44 = vsel %vm2576_vm9, %v2534_v62, %v2567_v1 }
 0xb64   :  { %v2582_v20 = vsel %vm1558_vm15, %v2578_v44, 0.0 }
 0xb65   :  { %v3410_v13 = vpop.xlane.xlu0 %3409  ;;  %v2583_v11 = vadd.f32 %v2582_v20, %v2581_v12 }
 0xb67   :  { %v2585_v7 = vadd.f32 %v2584_v38, %v2583_v11 }
 0xb6a   :  { %v2575_v4 = vpop.xlane.xlu2 %2574 }
 0xb6b   :  { %v2580_v2 = vsel %vm2576_vm9, %v2542_v31, %v2575_v4 }
 0xb6c   :  { %v2586_v53 = vsel %vm1558_vm15, %v2580_v2, 0.0 }
 0xb6d   :  { %v3438_v22 = vpop.xlane.xlu0 %3437  ;;  %v2587_v61 = vadd.f32 %v2586_v53, %v2585_v7 }
 0xb6f   :  { %v2588_v32 = vrot.slane %v2587_v61, 4 }
 0xb71   :  { %v2589_v57 = vadd.f32 %v2588_v32, %v2587_v61 }
 0xb72   :  { %v3434_v8 = vpop.xlane.xlu2 %3433 }
 0xb73   :  { %v3444_v15 = vsel %vm2576_vm9, %v3410_v13, %v3434_v8  ;;  %v2590_v23 = vrot.slane %v2589_v57, 2  ;;  %v4656_v8 = vld [vmem:[%s8647_s18] ss:$0 sm:$0xff] }
 0xb74   :  { %v3448_v16 = vsel %vm1558_vm15, %v3444_v15, 0.0 }
 0xb75   :  { %v3449_v45 = vadd.f32 %v3448_v16, %v3447_v27  ;;  %v2591_v0 = vadd.f32 %v2590_v23, %v2589_v57 }
 0xb77   :  { %v2592_v62 = vrot.slane %v2591_v0, 1 }
 0xb79   :  { %v2593_v52 = vadd.f32 %v2592_v62, %v2591_v0 }
 0xb7a   :  { %v3414_v46 = vpop.xlane.xlu2 %3413 }
 0xb7b   :  { %v3445_v48 = vsel %vm2576_vm9, %v3414_v46, %v3438_v22 }
 0xb7c   :  { %v3450_v29 = vsel %vm1558_vm15, %v3445_v48, 0.0 }
 0xb7d   :  { %v3451_v56 = vadd.f32 %v3450_v29, %v3449_v45 }
 0xbbc   :  { %v4272_v3 = vpop.xlane.xlu1 %4271  ;;  %v4296_v55 = vpop.xlane.xlu2 %4295 }
 0xbbd   :  { %v4309_v51 = vsel %vm2576_vm9, %v4272_v3, %v4296_v55 }
 0xbbe   :  { %v4313_v6 = vsel %vm1558_vm15, %v4309_v51, 0.0 }
 0xbc4   :  { %v4300_v40 = vpop.xlane.xlu1 %4299  ;;  %v4276_v47 = vpop.xlane.xlu0 %4275 }
 0xbc5   :  { %v4310_v33 = vsel %vm2576_vm9, %v4276_v47, %v4300_v40 }
 0xbc6   :  { %v4314_v26 = vsel %vm1558_vm15, %v4310_v33, 0.0 }
 0xbc7   :  { %v4315_v59 = vadd.f32 %v4314_v26, %v4313_v6 }
 0xbcc   :  { %v4304_v50 = vpop.xlane.xlu1 %4303  ;;  %v4280_v41 = vpop.xlane.xlu2 %4279 }
 0xbcd   :  { %v3442_v28 = vpop.xlane.xlu0 %3441  ;;  %v4311_v30 = vsel %vm2576_vm9, %v4280_v41, %v4304_v50 }
 0xbce   :  { %v3446_v9 = vsel %vm2576_vm9, %v3418_v18, %v3442_v28  ;;  %v4316_v25 = vsel %vm1558_vm15, %v4311_v30, 0.0 }
 0xbcf   :  { %v3452_v36 = vsel %vm1558_vm15, %v3446_v9, 0.0  ;;  %v4317_v63 = vadd.f32 %v4316_v25, %v4315_v59 }
 0xbd0   :  { %v3453_v21 = vadd.f32 %v3452_v36, %v3451_v56 }
 0xbd2   :  { %v3454_v54 = vrot.slane %v3453_v21, 4 }
 0xbd4   :  { %v3455_v14 = vadd.f32 %v3454_v54, %v3453_v21  ;;  %v4308_v42 = vpop.xlane.xlu1 %4307  ;;  %v4284_v35 = vpop.xlane.xlu2 %4283 }
 0xbd5   :  { %v4312_v24 = vsel %vm2576_vm9, %v4284_v35, %v4308_v42 }
 0xbd6   :  { %v3456_v34 = vrot.slane %v3455_v14, 2  ;;  %v4318_v37 = vsel %vm1558_vm15, %v4312_v24, 0.0  ;;  %vm4333_vm15 = vcmask 10240  }
 0xbd7   :  { %v4319_v39 = vadd.f32 %v4318_v37, %v4317_v63 }
 0xbd8   :  { %v3457_v5 = vadd.f32 %v3456_v34, %v3455_v14 }
 0xbd9   :  { %v4320_v10 = vrot.slane %v4319_v39, 4 }
 0xbda   :  { %v3458_v1 = vrot.slane %v3457_v5, 1 }
 0xbdb   :  { %v4321_v58 = vadd.f32 %v4320_v10, %v4319_v39 }
 0xbdc   :  { %v3459_v17 = vadd.f32 %v3458_v1, %v3457_v5 }
 0xbdd   :  { %v4322_v31 = vrot.slane %v4321_v58, 2 }
 0xbde   :  { %v4326_v18 = vsel %vm8816_vm1, %v2593_v52, %v3459_v17 }
 0xbdf   :  { %v4323_v60 = vadd.f32 %v4322_v31, %v4321_v58 }
 0xbe1   :  { %v4324_v4 = vrot.slane %v4323_v60, 1 }
 0xbe3   :  { %v4325_v13 = vadd.f32 %v4324_v4, %v4323_v60 }
 0xbe5   :  { %v4327_v46 = vsel %vm1025_vm3, %v4326_v18, %v4325_v13 }
 0xbe6   :  { %v4332_v22 = vadd.f32 %v4656_v8, %v4327_v46 }
 0xbe8   :  { %4334 = vst.msk [vmem:[%s8648_s19] sm:$0x7] %vm4333_vm15, %v4332_v22 }
 0xbe9   :  { %4339 = vsyncpa [#allocation4], 1 }

</bundles_post_ra>
